<compile_context>
chip_gen: v7x
topology: tpu7x:2x2x1
jax: 0.10.0
libtpu: 0.0.40
codegen_flags: <defaults>
</compile_context>

<pallas_src>
import functools

import jax
import jax.numpy as jnp
from jax.experimental import pallas as pl
from jax.experimental.pallas import tpu as pltpu

EPS = 1e-5  # nn.InstanceNorm2d default eps


# ---------------------------------------------------------------- kernel helpers
def _instance_norm(acc):
    """InstanceNorm2d (affine=False) over the spatial axis of an (H*W, C) f32 tile."""
    mean = jnp.mean(acc, axis=0, keepdims=True)
    var = jnp.mean(jnp.square(acc - mean), axis=0, keepdims=True)
    return (acc - mean) * jax.lax.rsqrt(var + EPS)


def _conv3x3(xp, w_ref, b_ref, H, W, CP):
    """3x3 conv as 9 shifted GEMMs.  xp: (H+2, W+2, CP) bf16 (already reflect-padded)."""
    acc = jnp.zeros((H * W, CP), jnp.float32)
    for kw in range(3):
        xw = xp[:, kw:kw + W, :]                       # hoist the sublane-offset slice
        for kh in range(3):
            xs = xw[kh:kh + H].reshape(H * W, CP)      # bf16 MXU operand
            acc = acc + jnp.dot(xs, w_ref[kh * 3 + kw],
                                preferred_element_type=jnp.float32)
    return acc + b_ref[...]                            # conv bias (f32)


def _reflect_pad1(h, H, W):
    """ReflectionPad2d(1) on an (H, W, CP) tile, built from static slices in VMEM."""
    hv = jnp.concatenate([h[1:2], h, h[H - 2:H - 1]], axis=0)               # height
    return jnp.concatenate([hv[:, 1:2, :], hv, hv[:, W - 2:W - 1, :]], axis=1)  # width


def _resblock_kernel(xp_ref, w1_ref, b1_ref, w2_ref, b2_ref, o_ref, *, H, W, CP):
    """Fused ResidualBlock forward for ONE sample."""
    xp_f32 = xp_ref[0]                                  # (H+2, W+2, CP) f32
    xp = xp_f32.astype(jnp.bfloat16)                    # MXU operand

    # conv1 + InstanceNorm + ReLU
    h = jnp.maximum(_instance_norm(_conv3x3(xp, w1_ref, b1_ref, H, W, CP)), 0.0)

    # in-VMEM ReflectionPad2d(1) of the intermediate (never touches HBM)
    hp = _reflect_pad1(h.reshape(H, W, CP).astype(jnp.bfloat16), H, W)

    # conv2 + InstanceNorm
    h2 = _instance_norm(_conv3x3(hp, w2_ref, b2_ref, H, W, CP)).reshape(H, W, CP)

    # residual add against the exact f32 input (interior of the padded tile)
    o_ref[...] = (xp_f32[1:H + 1, 1:W + 1, :] + h2).reshape(1, H, W, CP)


# ---------------------------------------------------------------- pallas_call wrapper
def residual_block_forward(x, w1, b1, w2, b2):
    """x: (N, C, H, W) f32.  w1, w2: (C, C, 3, 3) PyTorch OIHW.  b1, b2: (C,)."""
    N, C, H, W = x.shape
    CP = ((C + 127) // 128) * 128                       # lane-dense channel padding

    # NCHW -> NHWC (channels on the lane axis), zero-pad channels, reflect-pad spatial.
    x_nhwc = jnp.transpose(x, (0, 2, 3, 1)).astype(jnp.float32)
    x_cpad = jnp.pad(x_nhwc, ((0, 0), (0, 0), (0, 0), (0, CP - C)))
    xp = jnp.pad(x_cpad, ((0, 0), (1, 1), (1, 1), (0, 0)), mode="reflect")  # f32

    def prep_w(w):
        # OIHW -> (kh, kw, I, O) -> (9, Cin_pad, Cout_pad), bf16 for the MXU.
        wt = jnp.transpose(w, (2, 3, 1, 0)).reshape(9, C, C)
        return jnp.pad(wt, ((0, 0), (0, CP - C), (0, CP - C))).astype(jnp.bfloat16)

    def prep_b(b):
        return jnp.pad(b, (0, CP - C)).reshape(1, CP).astype(jnp.float32)

    w1m, w2m = prep_w(w1), prep_w(w2)
    b1m, b2m = prep_b(b1), prep_b(b2)

    y = pl.pallas_call(
        functools.partial(_resblock_kernel, H=H, W=W, CP=CP),
        out_shape=jax.ShapeDtypeStruct((N, H, W, CP), jnp.float32),
        grid=(N,),
        in_specs=[
            pl.BlockSpec((1, H + 2, W + 2, CP), lambda n: (n, 0, 0, 0)),
            pl.BlockSpec((9, CP, CP), lambda n: (0, 0, 0)),   # resident across grid
            pl.BlockSpec((1, CP), lambda n: (0, 0)),
            pl.BlockSpec((9, CP, CP), lambda n: (0, 0, 0)),   # resident across grid
            pl.BlockSpec((1, CP), lambda n: (0, 0)),
        ],
        out_specs=pl.BlockSpec((1, H, W, CP), lambda n: (n, 0, 0, 0)),
        compiler_params=pltpu.CompilerParams(
            dimension_semantics=("parallel",),         # samples independent -> megacore
            vmem_limit_bytes=32 * 1024 * 1024,         # safe on v5e/v6e/v7x
        ),
    )(xp, w1m, b1m, w2m, b2m)

    return jnp.transpose(y[..., :C], (0, 3, 1, 2))     # back to NCHW, drop channel pad


# ---------------------------------------------------------------- pure-JAX f32 reference
def reference_forward(x, w1, b1, w2, b2):
    def conv3_reflect(inp, w, b):
        p = jnp.pad(inp, ((0, 0), (0, 0), (1, 1), (1, 1)), mode="reflect")
        y = jax.lax.conv_general_dilated(
            p, w, (1, 1), "VALID", dimension_numbers=("NCHW", "OIHW", "NCHW"))
        return y + b.reshape(1, -1, 1, 1)

    def inorm(y):
        m = jnp.mean(y, axis=(2, 3), keepdims=True)
        v = jnp.mean(jnp.square(y - m), axis=(2, 3), keepdims=True)
        return (y - m) * jax.lax.rsqrt(v + EPS)

    h = jnp.maximum(inorm(conv3_reflect(x, w1, b1)), 0.0)
    h = inorm(conv3_reflect(h, w2, b2))
    return x + h


if __name__ == "__main__":
    key = jax.random.PRNGKey(0)
    N, C, H, W = 2, 4, 16, 16                          # in_features = 4

    k1, k2, k3, k4, k5 = jax.random.split(key, 5)
    x = jax.random.normal(k1, (N, C, H, W), jnp.float32)
    bound = 1.0 / (C * 9) ** 0.5                       # PyTorch Conv2d default init range
    w1 = jax.random.uniform(k2, (C, C, 3, 3), jnp.float32, -bound, bound)
    b1 = jax.random.uniform(k3, (C,), jnp.float32, -bound, bound)
    w2 = jax.random.uniform(k4, (C, C, 3, 3), jnp.float32, -bound, bound)
    b2 = jax.random.uniform(k5, (C,), jnp.float32, -bound, bound)

    out = jax.jit(residual_block_forward)(x, w1, b1, w2, b2)
    out = jax.block_until_ready(out)
    assert out.shape == (N, C, H, W)

    ref = reference_forward(x, w1, b1, w2, b2)
    # bf16 MXU operands -> loosened tolerance vs the f32 reference (stats/adds kept f32).
    err = float(jnp.max(jnp.abs(out - ref)))
    assert jnp.allclose(out, ref, atol=5e-2, rtol=5e-2), err

    print("KERNEL_OK")
</pallas_src>

<mosaic_0001>
module attributes {stable_mosaic.version = 11 : i64} {
  func.func @_resblock_kernel(%arg0: i32, %arg1: memref<1x18x18x128xf32, #tpu.memory_space<vmem>>, %arg2: memref<9x128x128xbf16, #tpu.memory_space<vmem>>, %arg3: memref<1x128xf32, #tpu.memory_space<vmem>>, %arg4: memref<9x128x128xbf16, #tpu.memory_space<vmem>>, %arg5: memref<1x128xf32, #tpu.memory_space<vmem>>, %arg6: memref<1x16x16x128xf32, #tpu.memory_space<vmem>>) attributes {dimension_semantics = [#tpu.dimension_semantics<parallel>], iteration_bounds = array<i64: 2>, scalar_prefetch = 0 : i64, scratch_operands = 0 : i64, tpu.core_type = #tpu.core_type<tc>, window_params = [{transform_indices = @transform_0, window_bounds = array<i64: 1, 18, 18, 128>}, {pipeline_mode = #tpu.pipeline_mode<synchronous>, transform_indices = @transform_1, window_bounds = array<i64: 9, 128, 128>}, {pipeline_mode = #tpu.pipeline_mode<synchronous>, transform_indices = @transform_2, window_bounds = array<i64: 1, 128>}, {pipeline_mode = #tpu.pipeline_mode<synchronous>, transform_indices = @transform_3, window_bounds = array<i64: 9, 128, 128>}, {pipeline_mode = #tpu.pipeline_mode<synchronous>, transform_indices = @transform_4, window_bounds = array<i64: 1, 128>}, {transform_indices = @transform_5, window_bounds = array<i64: 1, 16, 16, 128>}]} {
    %c0 = arith.constant 0 : index
    %c0_0 = arith.constant 0 : index
    %c0_1 = arith.constant 0 : index
    %c0_2 = arith.constant 0 : index
    %0 = vector.load %arg1[%c0, %c0_0, %c0_1, %c0_2] : memref<1x18x18x128xf32, #tpu.memory_space<vmem>>, vector<1x18x18x128xf32>
    %1 = vector.shape_cast %0 : vector<1x18x18x128xf32> to vector<18x18x128xf32>
    %2 = arith.truncf %1 : vector<18x18x128xf32> to vector<18x18x128xbf16>
    %cst = arith.constant 0.000000e+00 : f32
    %3 = vector.broadcast %cst : f32 to vector<256x128xf32>
    %4 = vector.extract_strided_slice %2 {offsets = [0, 0, 0], sizes = [18, 16, 128], strides = [1, 1, 1]} : vector<18x18x128xbf16> to vector<18x16x128xbf16>
    %5 = vector.extract_strided_slice %4 {offsets = [0, 0, 0], sizes = [16, 16, 128], strides = [1, 1, 1]} : vector<18x16x128xbf16> to vector<16x16x128xbf16>
    %6 = vector.shape_cast %5 : vector<16x16x128xbf16> to vector<256x128xbf16>
    %c0_3 = arith.constant 0 : index
    %c0_4 = arith.constant 0 : index
    %c0_5 = arith.constant 0 : index
    %7 = vector.load %arg2[%c0_3, %c0_4, %c0_5] : memref<9x128x128xbf16, #tpu.memory_space<vmem>>, vector<1x128x128xbf16>
    %8 = vector.shape_cast %7 : vector<1x128x128xbf16> to vector<128x128xbf16>
    %cst_6 = arith.constant dense<0.000000e+00> : vector<256x128xf32>
    %9 = tpu.matmul %6, %8, %cst_6 {dimension_numbers = #tpu.dot_dimension_numbers<[1], [0], [0], [1], [0, 0, 1, 1], [], []>} : vector<256x128xbf16>, vector<128x128xbf16>, vector<256x128xf32> -> vector<256x128xf32>
    %10 = arith.addf %3, %9 : vector<256x128xf32>
    %11 = vector.extract_strided_slice %4 {offsets = [1, 0, 0], sizes = [16, 16, 128], strides = [1, 1, 1]} : vector<18x16x128xbf16> to vector<16x16x128xbf16>
    %12 = vector.shape_cast %11 : vector<16x16x128xbf16> to vector<256x128xbf16>
    %c3 = arith.constant 3 : index
    %c0_7 = arith.constant 0 : index
    %c0_8 = arith.constant 0 : index
    %13 = vector.load %arg2[%c3, %c0_7, %c0_8] : memref<9x128x128xbf16, #tpu.memory_space<vmem>>, vector<1x128x128xbf16>
    %14 = vector.shape_cast %13 : vector<1x128x128xbf16> to vector<128x128xbf16>
    %cst_9 = arith.constant dense<0.000000e+00> : vector<256x128xf32>
    %15 = tpu.matmul %12, %14, %cst_9 {dimension_numbers = #tpu.dot_dimension_numbers<[1], [0], [0], [1], [0, 0, 1, 1], [], []>} : vector<256x128xbf16>, vector<128x128xbf16>, vector<256x128xf32> -> vector<256x128xf32>
    %16 = arith.addf %10, %15 : vector<256x128xf32>
    %17 = vector.extract_strided_slice %4 {offsets = [2, 0, 0], sizes = [16, 16, 128], strides = [1, 1, 1]} : vector<18x16x128xbf16> to vector<16x16x128xbf16>
    %18 = vector.shape_cast %17 : vector<16x16x128xbf16> to vector<256x128xbf16>
    %c6 = arith.constant 6 : index
    %c0_10 = arith.constant 0 : index
    %c0_11 = arith.constant 0 : index
    %19 = vector.load %arg2[%c6, %c0_10, %c0_11] : memref<9x128x128xbf16, #tpu.memory_space<vmem>>, vector<1x128x128xbf16>
    %20 = vector.shape_cast %19 : vector<1x128x128xbf16> to vector<128x128xbf16>
    %cst_12 = arith.constant dense<0.000000e+00> : vector<256x128xf32>
    %21 = tpu.matmul %18, %20, %cst_12 {dimension_numbers = #tpu.dot_dimension_numbers<[1], [0], [0], [1], [0, 0, 1, 1], [], []>} : vector<256x128xbf16>, vector<128x128xbf16>, vector<256x128xf32> -> vector<256x128xf32>
    %22 = arith.addf %16, %21 : vector<256x128xf32>
    %23 = vector.extract_strided_slice %2 {offsets = [0, 1, 0], sizes = [18, 16, 128], strides = [1, 1, 1]} : vector<18x18x128xbf16> to vector<18x16x128xbf16>
    %24 = vector.extract_strided_slice %23 {offsets = [0, 0, 0], sizes = [16, 16, 128], strides = [1, 1, 1]} : vector<18x16x128xbf16> to vector<16x16x128xbf16>
    %25 = vector.shape_cast %24 : vector<16x16x128xbf16> to vector<256x128xbf16>
    %c1 = arith.constant 1 : index
    %c0_13 = arith.constant 0 : index
    %c0_14 = arith.constant 0 : index
    %26 = vector.load %arg2[%c1, %c0_13, %c0_14] : memref<9x128x128xbf16, #tpu.memory_space<vmem>>, vector<1x128x128xbf16>
    %27 = vector.shape_cast %26 : vector<1x128x128xbf16> to vector<128x128xbf16>
    %cst_15 = arith.constant dense<0.000000e+00> : vector<256x128xf32>
    %28 = tpu.matmul %25, %27, %cst_15 {dimension_numbers = #tpu.dot_dimension_numbers<[1], [0], [0], [1], [0, 0, 1, 1], [], []>} : vector<256x128xbf16>, vector<128x128xbf16>, vector<256x128xf32> -> vector<256x128xf32>
    %29 = arith.addf %22, %28 : vector<256x128xf32>
    %30 = vector.extract_strided_slice %23 {offsets = [1, 0, 0], sizes = [16, 16, 128], strides = [1, 1, 1]} : vector<18x16x128xbf16> to vector<16x16x128xbf16>
    %31 = vector.shape_cast %30 : vector<16x16x128xbf16> to vector<256x128xbf16>
    %c4 = arith.constant 4 : index
    %c0_16 = arith.constant 0 : index
    %c0_17 = arith.constant 0 : index
    %32 = vector.load %arg2[%c4, %c0_16, %c0_17] : memref<9x128x128xbf16, #tpu.memory_space<vmem>>, vector<1x128x128xbf16>
    %33 = vector.shape_cast %32 : vector<1x128x128xbf16> to vector<128x128xbf16>
    %cst_18 = arith.constant dense<0.000000e+00> : vector<256x128xf32>
    %34 = tpu.matmul %31, %33, %cst_18 {dimension_numbers = #tpu.dot_dimension_numbers<[1], [0], [0], [1], [0, 0, 1, 1], [], []>} : vector<256x128xbf16>, vector<128x128xbf16>, vector<256x128xf32> -> vector<256x128xf32>
    %35 = arith.addf %29, %34 : vector<256x128xf32>
    %36 = vector.extract_strided_slice %23 {offsets = [2, 0, 0], sizes = [16, 16, 128], strides = [1, 1, 1]} : vector<18x16x128xbf16> to vector<16x16x128xbf16>
    %37 = vector.shape_cast %36 : vector<16x16x128xbf16> to vector<256x128xbf16>
    %c7 = arith.constant 7 : index
    %c0_19 = arith.constant 0 : index
    %c0_20 = arith.constant 0 : index
    %38 = vector.load %arg2[%c7, %c0_19, %c0_20] : memref<9x128x128xbf16, #tpu.memory_space<vmem>>, vector<1x128x128xbf16>
    %39 = vector.shape_cast %38 : vector<1x128x128xbf16> to vector<128x128xbf16>
    %cst_21 = arith.constant dense<0.000000e+00> : vector<256x128xf32>
    %40 = tpu.matmul %37, %39, %cst_21 {dimension_numbers = #tpu.dot_dimension_numbers<[1], [0], [0], [1], [0, 0, 1, 1], [], []>} : vector<256x128xbf16>, vector<128x128xbf16>, vector<256x128xf32> -> vector<256x128xf32>
    %41 = arith.addf %35, %40 : vector<256x128xf32>
    %42 = vector.extract_strided_slice %2 {offsets = [0, 2, 0], sizes = [18, 16, 128], strides = [1, 1, 1]} : vector<18x18x128xbf16> to vector<18x16x128xbf16>
    %43 = vector.extract_strided_slice %42 {offsets = [0, 0, 0], sizes = [16, 16, 128], strides = [1, 1, 1]} : vector<18x16x128xbf16> to vector<16x16x128xbf16>
    %44 = vector.shape_cast %43 : vector<16x16x128xbf16> to vector<256x128xbf16>
    %c2 = arith.constant 2 : index
    %c0_22 = arith.constant 0 : index
    %c0_23 = arith.constant 0 : index
    %45 = vector.load %arg2[%c2, %c0_22, %c0_23] : memref<9x128x128xbf16, #tpu.memory_space<vmem>>, vector<1x128x128xbf16>
    %46 = vector.shape_cast %45 : vector<1x128x128xbf16> to vector<128x128xbf16>
    %cst_24 = arith.constant dense<0.000000e+00> : vector<256x128xf32>
    %47 = tpu.matmul %44, %46, %cst_24 {dimension_numbers = #tpu.dot_dimension_numbers<[1], [0], [0], [1], [0, 0, 1, 1], [], []>} : vector<256x128xbf16>, vector<128x128xbf16>, vector<256x128xf32> -> vector<256x128xf32>
    %48 = arith.addf %41, %47 : vector<256x128xf32>
    %49 = vector.extract_strided_slice %42 {offsets = [1, 0, 0], sizes = [16, 16, 128], strides = [1, 1, 1]} : vector<18x16x128xbf16> to vector<16x16x128xbf16>
    %50 = vector.shape_cast %49 : vector<16x16x128xbf16> to vector<256x128xbf16>
    %c5 = arith.constant 5 : index
    %c0_25 = arith.constant 0 : index
    %c0_26 = arith.constant 0 : index
    %51 = vector.load %arg2[%c5, %c0_25, %c0_26] : memref<9x128x128xbf16, #tpu.memory_space<vmem>>, vector<1x128x128xbf16>
    %52 = vector.shape_cast %51 : vector<1x128x128xbf16> to vector<128x128xbf16>
    %cst_27 = arith.constant dense<0.000000e+00> : vector<256x128xf32>
    %53 = tpu.matmul %50, %52, %cst_27 {dimension_numbers = #tpu.dot_dimension_numbers<[1], [0], [0], [1], [0, 0, 1, 1], [], []>} : vector<256x128xbf16>, vector<128x128xbf16>, vector<256x128xf32> -> vector<256x128xf32>
    %54 = arith.addf %48, %53 : vector<256x128xf32>
    %55 = vector.extract_strided_slice %42 {offsets = [2, 0, 0], sizes = [16, 16, 128], strides = [1, 1, 1]} : vector<18x16x128xbf16> to vector<16x16x128xbf16>
    %56 = vector.shape_cast %55 : vector<16x16x128xbf16> to vector<256x128xbf16>
    %c8 = arith.constant 8 : index
    %c0_28 = arith.constant 0 : index
    %c0_29 = arith.constant 0 : index
    %57 = vector.load %arg2[%c8, %c0_28, %c0_29] : memref<9x128x128xbf16, #tpu.memory_space<vmem>>, vector<1x128x128xbf16>
    %58 = vector.shape_cast %57 : vector<1x128x128xbf16> to vector<128x128xbf16>
    %cst_30 = arith.constant dense<0.000000e+00> : vector<256x128xf32>
    %59 = tpu.matmul %56, %58, %cst_30 {dimension_numbers = #tpu.dot_dimension_numbers<[1], [0], [0], [1], [0, 0, 1, 1], [], []>} : vector<256x128xbf16>, vector<128x128xbf16>, vector<256x128xf32> -> vector<256x128xf32>
    %60 = arith.addf %54, %59 : vector<256x128xf32>
    %c0_31 = arith.constant 0 : index
    %c0_32 = arith.constant 0 : index
    %61 = vector.load %arg3[%c0_31, %c0_32] : memref<1x128xf32, #tpu.memory_space<vmem>>, vector<1x128xf32>
    %62 = vector.broadcast %61 : vector<1x128xf32> to vector<256x128xf32>
    %63 = arith.addf %60, %62 : vector<256x128xf32>
    %cst_33 = arith.constant dense<0.000000e+00> : vector<128xf32>
    %64 = vector.multi_reduction <add>, %63, %cst_33 [0] : vector<256x128xf32> to vector<128xf32>
    %65 = vector.shape_cast %64 : vector<128xf32> to vector<1x128xf32>
    %cst_34 = arith.constant 2.560000e+02 : f32
    %66 = vector.broadcast %cst_34 : f32 to vector<1x128xf32>
    %67 = arith.divf %65, %66 : vector<1x128xf32>
    %68 = vector.broadcast %67 : vector<1x128xf32> to vector<256x128xf32>
    %69 = arith.subf %63, %68 : vector<256x128xf32>
    %70 = arith.mulf %69, %69 : vector<256x128xf32>
    %cst_35 = arith.constant dense<0.000000e+00> : vector<128xf32>
    %71 = vector.multi_reduction <add>, %70, %cst_35 [0] : vector<256x128xf32> to vector<128xf32>
    %72 = vector.shape_cast %71 : vector<128xf32> to vector<1x128xf32>
    %cst_36 = arith.constant 2.560000e+02 : f32
    %73 = vector.broadcast %cst_36 : f32 to vector<1x128xf32>
    %74 = arith.divf %72, %73 : vector<1x128xf32>
    %75 = vector.broadcast %67 : vector<1x128xf32> to vector<256x128xf32>
    %76 = arith.subf %63, %75 : vector<256x128xf32>
    %cst_37 = arith.constant 9.99999974E-6 : f32
    %77 = vector.broadcast %cst_37 : f32 to vector<1x128xf32>
    %78 = arith.addf %74, %77 : vector<1x128xf32>
    %79 = math.rsqrt %78 : vector<1x128xf32>
    %80 = vector.broadcast %79 : vector<1x128xf32> to vector<256x128xf32>
    %81 = arith.mulf %76, %80 : vector<256x128xf32>
    %cst_38 = arith.constant 0.000000e+00 : f32
    %82 = vector.broadcast %cst_38 : f32 to vector<256x128xf32>
    %83 = arith.maximumf %81, %82 : vector<256x128xf32>
    %84 = vector.shape_cast %83 : vector<256x128xf32> to vector<16x16x128xf32>
    %85 = arith.truncf %84 : vector<16x16x128xf32> to vector<16x16x128xbf16>
    %86 = vector.extract_strided_slice %85 {offsets = [1, 0, 0], sizes = [1, 16, 128], strides = [1, 1, 1]} : vector<16x16x128xbf16> to vector<1x16x128xbf16>
    %87 = vector.extract_strided_slice %85 {offsets = [14, 0, 0], sizes = [1, 16, 128], strides = [1, 1, 1]} : vector<16x16x128xbf16> to vector<1x16x128xbf16>
    %88 = tpu.concatenate %86, %85, %87 in 0 : vector<1x16x128xbf16>, vector<16x16x128xbf16>, vector<1x16x128xbf16> -> vector<18x16x128xbf16>
    %89 = vector.extract_strided_slice %88 {offsets = [0, 1, 0], sizes = [18, 1, 128], strides = [1, 1, 1]} : vector<18x16x128xbf16> to vector<18x1x128xbf16>
    %90 = vector.extract_strided_slice %88 {offsets = [0, 14, 0], sizes = [18, 1, 128], strides = [1, 1, 1]} : vector<18x16x128xbf16> to vector<18x1x128xbf16>
    %91 = tpu.concatenate %89, %88, %90 in 1 : vector<18x1x128xbf16>, vector<18x16x128xbf16>, vector<18x1x128xbf16> -> vector<18x18x128xbf16>
    %cst_39 = arith.constant 0.000000e+00 : f32
    %92 = vector.broadcast %cst_39 : f32 to vector<256x128xf32>
    %93 = vector.extract_strided_slice %91 {offsets = [0, 0, 0], sizes = [18, 16, 128], strides = [1, 1, 1]} : vector<18x18x128xbf16> to vector<18x16x128xbf16>
    %94 = vector.extract_strided_slice %93 {offsets = [0, 0, 0], sizes = [16, 16, 128], strides = [1, 1, 1]} : vector<18x16x128xbf16> to vector<16x16x128xbf16>
    %95 = vector.shape_cast %94 : vector<16x16x128xbf16> to vector<256x128xbf16>
    %c0_40 = arith.constant 0 : index
    %c0_41 = arith.constant 0 : index
    %c0_42 = arith.constant 0 : index
    %96 = vector.load %arg4[%c0_40, %c0_41, %c0_42] : memref<9x128x128xbf16, #tpu.memory_space<vmem>>, vector<1x128x128xbf16>
    %97 = vector.shape_cast %96 : vector<1x128x128xbf16> to vector<128x128xbf16>
    %cst_43 = arith.constant dense<0.000000e+00> : vector<256x128xf32>
    %98 = tpu.matmul %95, %97, %cst_43 {dimension_numbers = #tpu.dot_dimension_numbers<[1], [0], [0], [1], [0, 0, 1, 1], [], []>} : vector<256x128xbf16>, vector<128x128xbf16>, vector<256x128xf32> -> vector<256x128xf32>
    %99 = arith.addf %92, %98 : vector<256x128xf32>
    %100 = vector.extract_strided_slice %93 {offsets = [1, 0, 0], sizes = [16, 16, 128], strides = [1, 1, 1]} : vector<18x16x128xbf16> to vector<16x16x128xbf16>
    %101 = vector.shape_cast %100 : vector<16x16x128xbf16> to vector<256x128xbf16>
    %c3_44 = arith.constant 3 : index
    %c0_45 = arith.constant 0 : index
    %c0_46 = arith.constant 0 : index
    %102 = vector.load %arg4[%c3_44, %c0_45, %c0_46] : memref<9x128x128xbf16, #tpu.memory_space<vmem>>, vector<1x128x128xbf16>
    %103 = vector.shape_cast %102 : vector<1x128x128xbf16> to vector<128x128xbf16>
    %cst_47 = arith.constant dense<0.000000e+00> : vector<256x128xf32>
    %104 = tpu.matmul %101, %103, %cst_47 {dimension_numbers = #tpu.dot_dimension_numbers<[1], [0], [0], [1], [0, 0, 1, 1], [], []>} : vector<256x128xbf16>, vector<128x128xbf16>, vector<256x128xf32> -> vector<256x128xf32>
    %105 = arith.addf %99, %104 : vector<256x128xf32>
    %106 = vector.extract_strided_slice %93 {offsets = [2, 0, 0], sizes = [16, 16, 128], strides = [1, 1, 1]} : vector<18x16x128xbf16> to vector<16x16x128xbf16>
    %107 = vector.shape_cast %106 : vector<16x16x128xbf16> to vector<256x128xbf16>
    %c6_48 = arith.constant 6 : index
    %c0_49 = arith.constant 0 : index
    %c0_50 = arith.constant 0 : index
    %108 = vector.load %arg4[%c6_48, %c0_49, %c0_50] : memref<9x128x128xbf16, #tpu.memory_space<vmem>>, vector<1x128x128xbf16>
    %109 = vector.shape_cast %108 : vector<1x128x128xbf16> to vector<128x128xbf16>
    %cst_51 = arith.constant dense<0.000000e+00> : vector<256x128xf32>
    %110 = tpu.matmul %107, %109, %cst_51 {dimension_numbers = #tpu.dot_dimension_numbers<[1], [0], [0], [1], [0, 0, 1, 1], [], []>} : vector<256x128xbf16>, vector<128x128xbf16>, vector<256x128xf32> -> vector<256x128xf32>
    %111 = arith.addf %105, %110 : vector<256x128xf32>
    %112 = vector.extract_strided_slice %91 {offsets = [0, 1, 0], sizes = [18, 16, 128], strides = [1, 1, 1]} : vector<18x18x128xbf16> to vector<18x16x128xbf16>
    %113 = vector.extract_strided_slice %112 {offsets = [0, 0, 0], sizes = [16, 16, 128], strides = [1, 1, 1]} : vector<18x16x128xbf16> to vector<16x16x128xbf16>
    %114 = vector.shape_cast %113 : vector<16x16x128xbf16> to vector<256x128xbf16>
    %c1_52 = arith.constant 1 : index
    %c0_53 = arith.constant 0 : index
    %c0_54 = arith.constant 0 : index
    %115 = vector.load %arg4[%c1_52, %c0_53, %c0_54] : memref<9x128x128xbf16, #tpu.memory_space<vmem>>, vector<1x128x128xbf16>
    %116 = vector.shape_cast %115 : vector<1x128x128xbf16> to vector<128x128xbf16>
    %cst_55 = arith.constant dense<0.000000e+00> : vector<256x128xf32>
    %117 = tpu.matmul %114, %116, %cst_55 {dimension_numbers = #tpu.dot_dimension_numbers<[1], [0], [0], [1], [0, 0, 1, 1], [], []>} : vector<256x128xbf16>, vector<128x128xbf16>, vector<256x128xf32> -> vector<256x128xf32>
    %118 = arith.addf %111, %117 : vector<256x128xf32>
    %119 = vector.extract_strided_slice %112 {offsets = [1, 0, 0], sizes = [16, 16, 128], strides = [1, 1, 1]} : vector<18x16x128xbf16> to vector<16x16x128xbf16>
    %120 = vector.shape_cast %119 : vector<16x16x128xbf16> to vector<256x128xbf16>
    %c4_56 = arith.constant 4 : index
    %c0_57 = arith.constant 0 : index
    %c0_58 = arith.constant 0 : index
    %121 = vector.load %arg4[%c4_56, %c0_57, %c0_58] : memref<9x128x128xbf16, #tpu.memory_space<vmem>>, vector<1x128x128xbf16>
    %122 = vector.shape_cast %121 : vector<1x128x128xbf16> to vector<128x128xbf16>
    %cst_59 = arith.constant dense<0.000000e+00> : vector<256x128xf32>
    %123 = tpu.matmul %120, %122, %cst_59 {dimension_numbers = #tpu.dot_dimension_numbers<[1], [0], [0], [1], [0, 0, 1, 1], [], []>} : vector<256x128xbf16>, vector<128x128xbf16>, vector<256x128xf32> -> vector<256x128xf32>
    %124 = arith.addf %118, %123 : vector<256x128xf32>
    %125 = vector.extract_strided_slice %112 {offsets = [2, 0, 0], sizes = [16, 16, 128], strides = [1, 1, 1]} : vector<18x16x128xbf16> to vector<16x16x128xbf16>
    %126 = vector.shape_cast %125 : vector<16x16x128xbf16> to vector<256x128xbf16>
    %c7_60 = arith.constant 7 : index
    %c0_61 = arith.constant 0 : index
    %c0_62 = arith.constant 0 : index
    %127 = vector.load %arg4[%c7_60, %c0_61, %c0_62] : memref<9x128x128xbf16, #tpu.memory_space<vmem>>, vector<1x128x128xbf16>
    %128 = vector.shape_cast %127 : vector<1x128x128xbf16> to vector<128x128xbf16>
    %cst_63 = arith.constant dense<0.000000e+00> : vector<256x128xf32>
    %129 = tpu.matmul %126, %128, %cst_63 {dimension_numbers = #tpu.dot_dimension_numbers<[1], [0], [0], [1], [0, 0, 1, 1], [], []>} : vector<256x128xbf16>, vector<128x128xbf16>, vector<256x128xf32> -> vector<256x128xf32>
    %130 = arith.addf %124, %129 : vector<256x128xf32>
    %131 = vector.extract_strided_slice %91 {offsets = [0, 2, 0], sizes = [18, 16, 128], strides = [1, 1, 1]} : vector<18x18x128xbf16> to vector<18x16x128xbf16>
    %132 = vector.extract_strided_slice %131 {offsets = [0, 0, 0], sizes = [16, 16, 128], strides = [1, 1, 1]} : vector<18x16x128xbf16> to vector<16x16x128xbf16>
    %133 = vector.shape_cast %132 : vector<16x16x128xbf16> to vector<256x128xbf16>
    %c2_64 = arith.constant 2 : index
    %c0_65 = arith.constant 0 : index
    %c0_66 = arith.constant 0 : index
    %134 = vector.load %arg4[%c2_64, %c0_65, %c0_66] : memref<9x128x128xbf16, #tpu.memory_space<vmem>>, vector<1x128x128xbf16>
    %135 = vector.shape_cast %134 : vector<1x128x128xbf16> to vector<128x128xbf16>
    %cst_67 = arith.constant dense<0.000000e+00> : vector<256x128xf32>
    %136 = tpu.matmul %133, %135, %cst_67 {dimension_numbers = #tpu.dot_dimension_numbers<[1], [0], [0], [1], [0, 0, 1, 1], [], []>} : vector<256x128xbf16>, vector<128x128xbf16>, vector<256x128xf32> -> vector<256x128xf32>
    %137 = arith.addf %130, %136 : vector<256x128xf32>
    %138 = vector.extract_strided_slice %131 {offsets = [1, 0, 0], sizes = [16, 16, 128], strides = [1, 1, 1]} : vector<18x16x128xbf16> to vector<16x16x128xbf16>
    %139 = vector.shape_cast %138 : vector<16x16x128xbf16> to vector<256x128xbf16>
    %c5_68 = arith.constant 5 : index
    %c0_69 = arith.constant 0 : index
    %c0_70 = arith.constant 0 : index
    %140 = vector.load %arg4[%c5_68, %c0_69, %c0_70] : memref<9x128x128xbf16, #tpu.memory_space<vmem>>, vector<1x128x128xbf16>
    %141 = vector.shape_cast %140 : vector<1x128x128xbf16> to vector<128x128xbf16>
    %cst_71 = arith.constant dense<0.000000e+00> : vector<256x128xf32>
    %142 = tpu.matmul %139, %141, %cst_71 {dimension_numbers = #tpu.dot_dimension_numbers<[1], [0], [0], [1], [0, 0, 1, 1], [], []>} : vector<256x128xbf16>, vector<128x128xbf16>, vector<256x128xf32> -> vector<256x128xf32>
    %143 = arith.addf %137, %142 : vector<256x128xf32>
    %144 = vector.extract_strided_slice %131 {offsets = [2, 0, 0], sizes = [16, 16, 128], strides = [1, 1, 1]} : vector<18x16x128xbf16> to vector<16x16x128xbf16>
    %145 = vector.shape_cast %144 : vector<16x16x128xbf16> to vector<256x128xbf16>
    %c8_72 = arith.constant 8 : index
    %c0_73 = arith.constant 0 : index
    %c0_74 = arith.constant 0 : index
    %146 = vector.load %arg4[%c8_72, %c0_73, %c0_74] : memref<9x128x128xbf16, #tpu.memory_space<vmem>>, vector<1x128x128xbf16>
    %147 = vector.shape_cast %146 : vector<1x128x128xbf16> to vector<128x128xbf16>
    %cst_75 = arith.constant dense<0.000000e+00> : vector<256x128xf32>
    %148 = tpu.matmul %145, %147, %cst_75 {dimension_numbers = #tpu.dot_dimension_numbers<[1], [0], [0], [1], [0, 0, 1, 1], [], []>} : vector<256x128xbf16>, vector<128x128xbf16>, vector<256x128xf32> -> vector<256x128xf32>
    %149 = arith.addf %143, %148 : vector<256x128xf32>
    %c0_76 = arith.constant 0 : index
    %c0_77 = arith.constant 0 : index
    %150 = vector.load %arg5[%c0_76, %c0_77] : memref<1x128xf32, #tpu.memory_space<vmem>>, vector<1x128xf32>
    %151 = vector.broadcast %150 : vector<1x128xf32> to vector<256x128xf32>
    %152 = arith.addf %149, %151 : vector<256x128xf32>
    %cst_78 = arith.constant dense<0.000000e+00> : vector<128xf32>
    %153 = vector.multi_reduction <add>, %152, %cst_78 [0] : vector<256x128xf32> to vector<128xf32>
    %154 = vector.shape_cast %153 : vector<128xf32> to vector<1x128xf32>
    %cst_79 = arith.constant 2.560000e+02 : f32
    %155 = vector.broadcast %cst_79 : f32 to vector<1x128xf32>
    %156 = arith.divf %154, %155 : vector<1x128xf32>
    %157 = vector.broadcast %156 : vector<1x128xf32> to vector<256x128xf32>
    %158 = arith.subf %152, %157 : vector<256x128xf32>
    %159 = arith.mulf %158, %158 : vector<256x128xf32>
    %cst_80 = arith.constant dense<0.000000e+00> : vector<128xf32>
    %160 = vector.multi_reduction <add>, %159, %cst_80 [0] : vector<256x128xf32> to vector<128xf32>
    %161 = vector.shape_cast %160 : vector<128xf32> to vector<1x128xf32>
    %cst_81 = arith.constant 2.560000e+02 : f32
    %162 = vector.broadcast %cst_81 : f32 to vector<1x128xf32>
    %163 = arith.divf %161, %162 : vector<1x128xf32>
    %164 = vector.broadcast %156 : vector<1x128xf32> to vector<256x128xf32>
    %165 = arith.subf %152, %164 : vector<256x128xf32>
    %cst_82 = arith.constant 9.99999974E-6 : f32
    %166 = vector.broadcast %cst_82 : f32 to vector<1x128xf32>
    %167 = arith.addf %163, %166 : vector<1x128xf32>
    %168 = math.rsqrt %167 : vector<1x128xf32>
    %169 = vector.broadcast %168 : vector<1x128xf32> to vector<256x128xf32>
    %170 = arith.mulf %165, %169 : vector<256x128xf32>
    %171 = vector.shape_cast %170 : vector<256x128xf32> to vector<16x16x128xf32>
    %172 = vector.extract_strided_slice %1 {offsets = [1, 1, 0], sizes = [16, 16, 128], strides = [1, 1, 1]} : vector<18x18x128xf32> to vector<16x16x128xf32>
    %173 = arith.addf %172, %171 : vector<16x16x128xf32>
    %174 = vector.shape_cast %173 : vector<16x16x128xf32> to vector<1x16x16x128xf32>
    %c0_83 = arith.constant 0 : index
    %c0_84 = arith.constant 0 : index
    %c0_85 = arith.constant 0 : index
    %c0_86 = arith.constant 0 : index
    %175 = vector.load %arg6[%c0_83, %c0_84, %c0_85, %c0_86] : memref<1x16x16x128xf32, #tpu.memory_space<vmem>>, vector<1x16x16x128xf32>
    tpu.vector_store %arg6[%c0_83, %c0_84, %c0_85, %c0_86], %174 {strides = array<i32>} : memref<1x16x16x128xf32, #tpu.memory_space<vmem>>, vector<1x16x16x128xf32>,
    return
  }
  func.func @transform_0(%arg0: i32) -> (i32, i32, i32, i32) {
    %c0_i32 = arith.constant 0 : i32
    %c0_i32_0 = arith.constant 0 : i32
    %c0_i32_1 = arith.constant 0 : i32
    %c0_i32_2 = arith.constant 0 : i32
    return %arg0, %c0_i32, %c0_i32_0, %c0_i32_1 : i32, i32, i32, i32
  }
  func.func @transform_1(%arg0: i32) -> (i32, i32, i32) {
    %c0_i32 = arith.constant 0 : i32
    %c0_i32_0 = arith.constant 0 : i32
    %c0_i32_1 = arith.constant 0 : i32
    %c0_i32_2 = arith.constant 0 : i32
    return %c0_i32, %c0_i32_0, %c0_i32_1 : i32, i32, i32
  }
  func.func @transform_2(%arg0: i32) -> (i32, i32) {
    %c0_i32 = arith.constant 0 : i32
    %c0_i32_0 = arith.constant 0 : i32
    %c0_i32_1 = arith.constant 0 : i32
    return %c0_i32, %c0_i32_0 : i32, i32
  }
  func.func @transform_3(%arg0: i32) -> (i32, i32, i32) {
    %c0_i32 = arith.constant 0 : i32
    %c0_i32_0 = arith.constant 0 : i32
    %c0_i32_1 = arith.constant 0 : i32
    %c0_i32_2 = arith.constant 0 : i32
    return %c0_i32, %c0_i32_0, %c0_i32_1 : i32, i32, i32
  }
  func.func @transform_4(%arg0: i32) -> (i32, i32) {
    %c0_i32 = arith.constant 0 : i32
    %c0_i32_0 = arith.constant 0 : i32
    %c0_i32_1 = arith.constant 0 : i32
    return %c0_i32, %c0_i32_0 : i32, i32
  }
  func.func @transform_5(%arg0: i32) -> (i32, i32, i32, i32) {
    %c0_i32 = arith.constant 0 : i32
    %c0_i32_0 = arith.constant 0 : i32
    %c0_i32_1 = arith.constant 0 : i32
    %c0_i32_2 = arith.constant 0 : i32
    return %arg0, %c0_i32, %c0_i32_0, %c0_i32_1 : i32, i32, i32, i32
  }
}

</mosaic_0001>

<bundles_post_ra>
// kernel: residual_block_forward.1
= control target key start
LH: loop header
LB: loop body
LE: loop exit
PB: predicated region body
PF: predicated region fallthrough
CT: control target
= control target key end

     0   :  { %s8924_s18 = smov 0   ;;  %s11320_s0 = inlined_call_operand.vmem [shape: f32[2,18,18,128], index: 0, kind: input, shape index: {}]   ;;  %s11321_s1 = inlined_call_operand.vmem [shape: bf16[9,128,128], index: 1, kind: input, shape index: {}]   ;;  %s11322_s2 = inlined_call_operand.vmem [shape: f32[1,128], index: 2, kind: input, shape index: {}]   ;;  %s11323_s3 = inlined_call_operand.vmem [shape: bf16[9,128,128], index: 3, kind: input, shape index: {}]   ;;  %s11324_s4 = inlined_call_operand.vmem [shape: f32[1,128], index: 4, kind: input, shape index: {}]   ;;  %s11325_s5 = inlined_call_operand.vmem [shape: f32[2,16,16,128], index: 5, kind: output, shape index: {}]  }
   0x1 LB: > { %s6460_s19 = sadd.s32 4294967295, %s8892_s18   ;;  %p6464_p0 = scmp.ge.s32.totalorder %s8892_s18, 1  ;;  %s8892_s18 = sphi %s8924_s18, %s15_s18  }
   0x2   : > { %p187_p1 = scmp.lt.s32.totalorder %s8892_s18, 3 }
   0x4   : > { %p188_p2 = pnand %p6464_p0, %p187_p1 }
   0x5   : > { %v8690_v0 = vld [vmem:[%s11321_s1 + $0xc0] sm:$0xff] (!%p188_p2)   ;;  %p215_p3 = scmp.lt.s32.totalorder (!%p188_p2), %s6460_s19, 1  ;;  %v8691_v1 = vld [vmem:[%s11321_s1 + $0xc8] sm:$0xff] (!%p188_p2)   ;;  %v8692_v2 = vld [vmem:[%s11321_s1 + $0xd0] sm:$0xff] (!%p188_p2)   ;;  %vm1025_vm0 = vsmask.f32 (!%p188_p2), 7424 }
   0x6   : > { %191 = sbr.rel (%p188_p2) target bundleno = 1917 (0x77d), region = 40  ;;  %7305 = vmatprep.subr.bf16.mxu0 (!%p188_p2), %v8690_v0  ;;  %v8693_v3 = vld [vmem:[%s11321_s1 + $0xd8] sm:$0xff] (!%p188_p2)   ;;  %v8694_v7 = vld [vmem:[%s11321_s1 + $0xe0] sm:$0xff] (!%p188_p2)   ;;  %v8695_v8 = vld [vmem:[%s11321_s1 + $0xe8] sm:$0xff] (!%p188_p2)   ;;  %vm2066_vm1 = vcmask (!%p188_p2), 1046528   ;;  %vm3371_vm2 = vcmask (!%p188_p2), 1040384  }
   0x7   : > { %7306 = vmatpush3.bf16.msra.mxu0 (!%p188_p2), %v8690_v0  ;;  %v8696_v9 = vld [vmem:[%s11321_s1 + $0xf0] sm:$0xff] (!%p188_p2)   ;;  %v8697_v10 = vld [vmem:[%s11321_s1 + $0xf8] sm:$0xff] (!%p188_p2)   ;;  %v8698_v13 = vld [vmem:[%s11321_s1] sm:$0xff] (!%p188_p2)   ;;  %vm3372_vm3 = vsmask.f32 (!%p188_p2), 256 }
   0x8   : > { %7307 = vmatprep.subr.bf16.mxu0 (!%p188_p2), %v8691_v1  ;;  %v8699_v18 = vld [vmem:[%s11321_s1 + $0x8] sm:$0xff] (!%p188_p2)   ;;  %v8700_v23 = vld [vmem:[%s11321_s1 + $0x10] sm:$0xff] (!%p188_p2)   ;;  %v8701_v25 = vld [vmem:[%s11321_s1 + $0x18] sm:$0xff] (!%p188_p2)  }
   0x9   : > { %v8702_v31 = vld [vmem:[%s11321_s1 + $0x20] sm:$0xff] (!%p188_p2)   ;;  %v8703_v33 = vld [vmem:[%s11321_s1 + $0x28] sm:$0xff] (!%p188_p2)   ;;  %v8704_v39 = vld [vmem:[%s11321_s1 + $0x30] sm:$0xff] (!%p188_p2)  }
   0xa   : > { %v8705_v41 = vld [vmem:[%s11321_s1 + $0x38] sm:$0xff] (!%p188_p2)   ;;  %v8706_v47 = vld [vmem:[%s11321_s1 + $0x180] sm:$0xff] (!%p188_p2)   ;;  %vm9969_vm4 = vmand (!%p188_p2), %vm3371_vm2, %vm3372_vm3 }
   0xb   : > { %7308 = vmatpush3.bf16.msra.mxu0 (!%p188_p2), %v8691_v1 }
   0xc   : > { %7309 = vmatprep.subr.bf16.mxu0 (!%p188_p2), %v8692_v2 }
   0xd   : > { %s11369_s19 = smov (!%p215_p3, %s6460_s19), 1 }
   0xe   : > { %s8681_s26 = smul.u32 432, %s11369_s19  ;;  %s6872_s30 = sshll.u32 %s11369_s19, 8 }
   0xf   : > { %7310 = vmatpush3.bf16.msra.mxu0 %v8692_v2  ;;  %s11115_s7 = scalar_lea.vmem %s11325_s5, %s6872_s30 }
  0x10   : > { %s8947_s29 = scalar_lea.vmem %s11320_s0, %s8681_s26  ;;  %7311 = vmatprep.subr.bf16.mxu0 %v8693_v3 }
  0x11   : > { %v229_v4 = vld [vmem:[%s8947_s29 + $0x18] sm:$0xff]  ;;  %v230_v5 = vld [vmem:[%s8947_s29 + $0x20] sm:$0xff]  ;;  %v232_v11 = vld [vmem:[%s8947_s29 + $0x30] sm:$0xff] }
  0x12   : > { %v8954_v6 = vpack.c.bf16 %v230_v5, %v229_v4  ;;  %v233_v12 = vld [vmem:[%s8947_s29 + $0x38] sm:$0xff]  ;;  %v235_v14 = vld [vmem:[%s8947_s29 + $0x48] sm:$0xff]  ;;  %v236_v15 = vld [vmem:[%s8947_s29 + $0x50] sm:$0xff] }
  0x13   : > { %7312 = vmatpush3.bf16.msra.mxu0 %v8693_v3  ;;  %v8976_v16 = vpack.c.bf16 %v233_v12, %v232_v11  ;;  %v8978_v17 = vpack.c.bf16 %v236_v15, %v235_v14  ;;  %v238_v19 = vld [vmem:[%s8947_s29 + $0x60] sm:$0xff]  ;;  %v239_v20 = vld [vmem:[%s8947_s29 + $0x68] sm:$0xff]  ;;  %v241_v21 = vld [vmem:[%s8947_s29 + $0x78] sm:$0xff] }
  0x14   : > { %7321 = vmatprep.mubr.bf16.mxu0 %v8954_v6  ;;  %7313 = vmatprep.subr.bf16.mxu0 %v8694_v7  ;;  %v242_v22 = vld [vmem:[%s8947_s29 + $0x80] sm:$0xff]  ;;  %v8992_v24 = vpack.c.bf16 %v239_v20, %v238_v19  ;;  %v244_v27 = vld [vmem:[%s8947_s29 + $0x90] sm:$0xff]  ;;  %v245_v28 = vld [vmem:[%s8947_s29 + $0x98] sm:$0xff] }
  0x15   : > { %v8997_v26 = vpack.c.bf16 %v242_v22, %v241_v21  ;;  %v247_v29 = vld [vmem:[%s8947_s29 + $0xa8] sm:$0xff]  ;;  %v248_v30 = vld [vmem:[%s8947_s29 + $0xb0] sm:$0xff]  ;;  %v9008_v32 = vpack.c.bf16 %v245_v28, %v244_v27  ;;  %v250_v35 = vld [vmem:[%s8947_s29 + $0xc0] sm:$0xff] }
  0x16   : > { %v9013_v34 = vpack.c.bf16 %v248_v30, %v247_v29  ;;  %v251_v36 = vld [vmem:[%s8947_s29 + $0xc8] sm:$0xff]  ;;  %v253_v37 = vld [vmem:[%s8947_s29 + $0xd8] sm:$0xff]  ;;  %v254_v38 = vld [vmem:[%s8947_s29 + $0xe0] sm:$0xff] }
  0x17   : > { %7314 = vmatpush3.bf16.msra.mxu0 %v8694_v7  ;;  %v9024_v40 = vpack.c.bf16 %v251_v36, %v250_v35  ;;  %v9029_v42 = vpack.c.bf16 %v254_v38, %v253_v37  ;;  %v256_v43 = vld [vmem:[%s8947_s29 + $0xf0] sm:$0xff]  ;;  %v257_v44 = vld [vmem:[%s8947_s29 + $0xf8] sm:$0xff]  ;;  %v259_v45 = vld [vmem:[%s8947_s29 + $0x108] sm:$0xff]  ;;  %v1041_v38 = vshll.u32 %v8954_v6, 16 }
  0x18   : > { %7315 = vmatprep.subr.bf16.mxu0 %v8695_v8  ;;  %v260_v46 = vld [vmem:[%s8947_s29 + $0x110] sm:$0xff]  ;;  %v9040_v48 = vpack.c.bf16 %v257_v44, %v256_v43  ;;  %v262_v50 = vld [vmem:[%s8947_s29 + $0x120] sm:$0xff]  ;;  %v263_v51 = vld [vmem:[%s8947_s29 + $0x128] sm:$0xff]  ;;  %v1053_v44 = vshll.u32 %v8976_v16, 16 }
  0x19   : > { %v9042_v49 = vpack.c.bf16 %v260_v46, %v259_v45  ;;  %v265_v52 = vld [vmem:[%s8947_s29 + $0x138] sm:$0xff]  ;;  %v266_v53 = vld [vmem:[%s8947_s29 + $0x140] sm:$0xff]  ;;  %v9050_v54 = vpack.c.bf16 %v263_v51, %v262_v50  ;;  %v268_v56 = vld [vmem:[%s8947_s29 + $0x150] sm:$0xff]  ;;  %v1039_v46 = vshrl.u32 %v8954_v6, 16 }
  0x1a   : > { %v9052_v55 = vpack.c.bf16 %v266_v53, %v265_v52  ;;  %v269_v57 = vld [vmem:[%s8947_s29 + $0x158] sm:$0xff]  ;;  %v271_v58 = vld [vmem:[%s8947_s29 + $0x168] sm:$0xff]  ;;  %v272_v59 = vld [vmem:[%s8947_s29 + $0x170] sm:$0xff]  ;;  %v1051_v52 = vshrl.u32 %v8976_v16, 16  ;;  %v1055_v53 = vrot.slane %v1053_v44, 1  ;;  %v1099_v44 = vshrl.u32 %v9008_v32, 16 }
  0x1b   : > { %7316 = vmatpush3.bf16.msra.mxu0 %v8695_v8  ;;  %v9060_v60 = vpack.c.bf16 %v269_v57, %v268_v56  ;;  %v9062_v61 = vpack.c.bf16 %v272_v59, %v271_v58  ;;  %v274_v62 = vld [vmem:[%s8947_s29 + $0x180] sm:$0xff]  ;;  %v275_v63 = vld [vmem:[%s8947_s29 + $0x188] sm:$0xff]  ;;  %v8708_v5 = vld [vmem:[%s11321_s1 + $0x190] sm:$0xff]  }
  0x1c   : > { %7317 = vmatprep.subr.bf16.mxu0 %v8696_v9  ;;  %v226_v0 = vld [vmem:[%s8947_s29] sm:$0xff]  ;;  %v227_v1 = vld [vmem:[%s8947_s29 + $0x8] sm:$0xff]  ;;  %v9070_v2 = vpack.c.bf16 %v275_v63, %v274_v62  ;;  %v8709_v7 = vld [vmem:[%s11321_s1 + $0x198] sm:$0xff]  }
  0x1d   : > { %v9072_v3 = vpack.c.bf16 %v227_v1, %v226_v0  ;;  %v8707_v4 = vld [vmem:[%s11321_s1 + $0x188] sm:$0xff]   ;;  %v8710_v8 = vld [vmem:[%s11321_s1 + $0x1a0] sm:$0xff]   ;;  %v8713_v11 = vld [vmem:[%s11321_s1 + $0x1b8] sm:$0xff]   ;;  %v1065_v0 = vshll.u32 %v8978_v17, 16  ;;  %v1056_v1 = vor.u32 %v1055_v53, %v1051_v52 }
  0x1e   : > { %v8714_v12 = vld [vmem:[%s11321_s1 + $0x40] sm:$0xff]   ;;  %v8716_v14 = vld [vmem:[%s11321_s1 + $0x50] sm:$0xff]   ;;  %v8717_v15 = vld [vmem:[%s11321_s1 + $0x58] sm:$0xff]  }
  0x1f   : > { %7318 = vmatpush3.bf16.msra.mxu0 %v8696_v9  ;;  %v8711_v9 = vld [vmem:[%s11321_s1 + $0x1a8] sm:$0xff]   ;;  %v8720_v20 = vld [vmem:[%s11321_s1 + $0x70] sm:$0xff]   ;;  %v8721_v21 = vld [vmem:[%s11321_s1 + $0x78] sm:$0xff]   ;;  %v1029_v27 = vshll.u32 %v9072_v3, 16  ;;  %v1027_v28 = vshrl.u32 %v9072_v3, 16 }
  0x20   : > { %7319 = vmatprep.subr.bf16.mxu0 %v8697_v10  ;;  %v8719_v19 = vld [vmem:[%s11321_s1 + $0x68] sm:$0xff]   ;;  %v8722_v22 = vld [vmem:[%s11321_s1 + $0x100] sm:$0xff]   ;;  %v277_v35 = vld [vmem:[%s8947_s29 + $0x198] sm:$0xff] }
  0x21   : > { %v1031_v29 = vrot.slane %v1029_v27, 1  ;;  %v278_v36 = vld [vmem:[%s8947_s29 + $0x1a0] sm:$0xff]  ;;  %v237_v57 = vld [vmem:[%s8947_s29 + $0x58] sm:$0x3]  ;;  %v240_v58 = vld [vmem:[%s8947_s29 + $0x70] sm:$0x3] }
  0x22   : > { %v9170_v45 = vpack.c.bf16 %v278_v36, %v277_v35  ;;  %v9180_v63 = vpack.c.bf16 %v237_v57, %v237_v57  ;;  %v1087_v36 = vshrl.u32 %v8997_v26, 16  ;;  %v252_v52 = vld [vmem:[%s8947_s29 + $0xd0] sm:$0x3] }
  0x23   : > { %7320 = vmatpush3.bf16.msra.mxu0 %v8697_v10  ;;  %v8712_v10 = vld [vmem:[%s11321_s1 + $0x1b0] sm:$0xff]  }
  0x24   : > { %7353 = vmatprep.subr.bf16.mxu0 %v8698_v13 }
  0x26   : > { %7322 = vmatmul.mubr.bf16.vlgmr.msra.gmra.mrb[0].mxu0 %v8976_v16 }
  0x27   : > { %7354 = vmatpush3.bf16.msra.mxu0 %v8698_v13  ;;  %7325 = vmatprep.mubr.bf16.mxu0 %v8978_v17  ;;  %v8715_v13 = vld [vmem:[%s11321_s1 + $0x48] sm:$0xff]  }
  0x28   : > { %7355 = vmatprep.subr.bf16.mxu0 %v8699_v18 }
  0x2b   : > { %7356 = vmatpush3.bf16.msra.mxu0 %v8699_v18  ;;  %v8718_v18 = vld [vmem:[%s11321_s1 + $0x60] sm:$0xff]  }
  0x2c   : > { %7357 = vmatprep.subr.bf16.mxu0 %v8700_v23 }
  0x2e   : > { %7326 = vmatmul.mubr.bf16.gmra.mrb[4].mxu0 %v8992_v24 }
  0x2f   : > { %7329 = vmatprep.mubr.bf16.mxu0 %v8997_v26  ;;  %7358 = vmatpush3.bf16.msra.mxu0 %v8700_v23  ;;  %v228_v23 = vld [vmem:[%s8947_s29 + $0x10] sm:$0x3] }
  0x30   : > { %7359 = vmatprep.subr.bf16.mxu0 %v8701_v25 }
  0x33   : > { %7360 = vmatpush3.bf16.msra.mxu0 %v8701_v25  ;;  %v9153_v25 = vpack.c.bf16 %v228_v23, %v228_v23 }
  0x34   : > { %7361 = vmatprep.subr.bf16.mxu0 %v8702_v31 }
  0x35   : > { %v1034_v30 = vshll.u32 %v9153_v25, 16 }
  0x36   : > { %7330 = vmatmul.mubr.bf16.gmra.mrb[8].mxu0 %v9008_v32 }
  0x37   : > { %7333 = vmatprep.mubr.bf16.mxu0 %v9013_v34  ;;  %7362 = vmatpush3.bf16.msra.mxu0 %v8702_v31  ;;  %v231_v31 = vld [vmem:[%s8947_s29 + $0x28] sm:$0x3] }
  0x38   : > { %7363 = vmatprep.subr.bf16.mxu0 %v8703_v33  ;;  %v9164_v37 = vpack.c.bf16 %v231_v31, %v231_v31  ;;  %v8724_v31 = vld [vmem:[%s11321_s1 + $0x110] sm:$0xff]  }
  0x3a   : > { %v1046_v50 = vshll.u32 %v9164_v37, 16 }
  0x3b   : > { %7364 = vmatpush3.bf16.msra.mxu0 %v8703_v33  ;;  %v234_v33 = vld [vmem:[%s8947_s29 + $0x40] sm:$0x3] }
  0x3c   : > { %7365 = vmatprep.subr.bf16.mxu0 %v8704_v39  ;;  %v9167_v43 = vpack.c.bf16 %v234_v33, %v234_v33  ;;  %v1048_v62 = vrot.slane %v1046_v50, 1  ;;  %v249_v50 = vld [vmem:[%s8947_s29 + $0xb8] sm:$0x3] }
  0x3d   : > { %v9229_v57 = vpack.c.bf16 %v249_v50, %v249_v50 }
  0x3e   : > { %7334 = vmatmul.mubr.bf16.gmra.mrb[12].mxu0 %v9024_v40  ;;  %v1058_v56 = vshll.u32 %v9167_v43, 16 }
  0x3f   : > { %7337 = vmatprep.mubr.bf16.mxu0 %v9029_v42  ;;  %7366 = vmatpush3.bf16.msra.mxu0 %v8704_v39  ;;  %v1032_v39 = vor.u32 %v1031_v29, %v1027_v28  ;;  %v1089_v28 = vshll.u32 %v8997_v26, 16 }
  0x40   : > { %7367 = vmatprep.subr.bf16.mxu0 %v8705_v41 }
  0x43   : > { %7368 = vmatpush3.bf16.msra.mxu0 %v8705_v41  ;;  %v1036_v41 = vrot.slane %v1034_v30, 1 }
  0x44   : > { %7401 = vmatprep.subr.bf16.mxu0 %v8706_v47 }
  0x45   : > { %v1037_v51 = vsel %vm1025_vm0, %v1032_v39, %v1036_v41 }
  0x46   : > { %7338 = vmatmul.mubr.bf16.gmra.mrb[16].mxu0 %v9040_v48 }
  0x47   : > { %7341 = vmatprep.mubr.bf16.mxu0 %v9042_v49 }
  0x4e   : > { %7342 = vmatmul.mubr.bf16.gmra.mrb[20].mxu0 %v9050_v54 }
  0x4f   : > { %7345 = vmatprep.mubr.bf16.mxu0 %v9052_v55 }
  0x56   : > { %7346 = vmatmul.mubr.bf16.gmra.mrb[24].mxu0 %v9060_v60 }
  0x57   : > { %7349 = vmatprep.mubr.bf16.mxu0 %v9062_v61 }
  0x5e   : > { %7350 = vmatmul.mubr.bf16.gmra.mrb[28].mxu0 %v9070_v2 }
  0x5f   : > { %7369 = vmatprep.mubr.bf16.mxu0 %v9072_v3 }
  0x66   : > { %7370 = vmatmul.mubr.bf16.vlgmr.msra.gmra.mrb[0].mxu0 %v8954_v6 }
  0x67   : > { %7402 = vmatpush3.bf16.msra.mxu0 %v8706_v47  ;;  %7373 = vmatprep.mubr.bf16.mxu0 %v8976_v16  ;;  %v1043_v47 = vrot.slane %v1041_v38, 1  ;;  %v1091_v38 = vrot.slane %v1089_v28, 1 }
  0x68   : > { %7403 = vmatprep.subr.bf16.mxu0 %v8707_v4 }
  0x69   : > { %v1044_v59 = vor.u32 %v1043_v47, %v1039_v46  ;;  %v1092_v53 = vor.u32 %v1091_v38, %v1087_v36  ;;  %v1149_v38 = vshll.u32 %v9040_v48, 16 }
  0x6b   : > { %7404 = vmatpush3.bf16.msra.mxu0 %v8707_v4  ;;  %v1060_v4 = vrot.slane %v1058_v56, 1 }
  0x6c   : > { %7405 = vmatprep.subr.bf16.mxu0 %v8708_v5 }
  0x6e   : > { %7374 = vmatmul.mubr.bf16.gmra.mrb[4].mxu0 %v8978_v17 }
  0x6f   : > { %7377 = vmatprep.mubr.bf16.mxu0 %v8992_v24  ;;  %7406 = vmatpush3.bf16.msra.mxu0 %v8708_v5  ;;  %v9183_v5 = vpack.c.bf16 %v240_v58, %v240_v58  ;;  %v1113_v58 = vshll.u32 %v9013_v34, 16 }
  0x70   : > { %7407 = vmatprep.subr.bf16.mxu0 %v8709_v7 }
  0x73   : > { %7408 = vmatpush3.bf16.msra.mxu0 %v8709_v7  ;;  %v1077_v7 = vshll.u32 %v8992_v24, 16 }
  0x74   : > { %7409 = vmatprep.subr.bf16.mxu0 %v8710_v8 }
  0x76   : > { %7378 = vmatmul.mubr.bf16.gmra.mrb[8].mxu0 %v8997_v26 }
  0x77   : > { %7381 = vmatprep.mubr.bf16.mxu0 %v9008_v32  ;;  %7410 = vmatpush3.bf16.msra.mxu0 %v8710_v8  ;;  %v9187_v8 = vsel %vm1025_vm0, %v1044_v59, %v1048_v62 }
  0x78   : > { %7411 = vmatprep.subr.bf16.mxu0 %v8711_v9 }
  0x7b   : > { %7412 = vmatpush3.bf16.msra.mxu0 %v8711_v9  ;;  %v1063_v9 = vshrl.u32 %v8978_v17, 16 }
  0x7c   : > { %7413 = vmatprep.subr.bf16.mxu0 %v8712_v10 }
  0x7e   : > { %7382 = vmatmul.mubr.bf16.gmra.mrb[12].mxu0 %v9013_v34 }
  0x7f   : > { %7385 = vmatprep.mubr.bf16.mxu0 %v9024_v40  ;;  %7414 = vmatpush3.bf16.msra.mxu0 %v8712_v10  ;;  %v1067_v10 = vrot.slane %v1065_v0, 1  ;;  %v9232_v0 = vpack.c.bf16 %v252_v52, %v252_v52  ;;  %v1147_v52 = vshrl.u32 %v9040_v48, 16 }
  0x80   : > { %7415 = vmatprep.subr.bf16.mxu0 %v8713_v11 }
  0x83   : > { %7416 = vmatpush3.bf16.msra.mxu0 %v8713_v11  ;;  %v1070_v11 = vshll.u32 %v9180_v63, 16 }
  0x84   : > { %7449 = vmatprep.subr.bf16.mxu0 %v8714_v12 }
  0x85   : > { %v1072_v23 = vrot.slane %v1070_v11, 1  ;;  %v1118_v11 = vshll.u32 %v9229_v57, 16 }
  0x86   : > { %7386 = vmatmul.mubr.bf16.gmra.mrb[16].mxu0 %v9029_v42 }
  0x87   : > { %7389 = vmatprep.mubr.bf16.mxu0 %v9040_v48  ;;  %v1120_v28 = vrot.slane %v1118_v11, 1 }
  0x8e   : > { %7390 = vmatmul.mubr.bf16.gmra.mrb[20].mxu0 %v9042_v49 }
  0x8f   : > { %7393 = vmatprep.mubr.bf16.mxu0 %v9050_v54 }
  0x96   : > { %7394 = vmatmul.mubr.bf16.gmra.mrb[24].mxu0 %v9052_v55 }
  0x97   : > { %7397 = vmatprep.mubr.bf16.mxu0 %v9060_v60 }
  0x9e   : > { %7398 = vmatmul.mubr.bf16.gmra.mrb[28].mxu0 %v9062_v61 }
  0x9f   : > { %7417 = vmatprep.mubr.bf16.mxu0 %v8976_v16 }
  0xa6   : > { %7418 = vmatmul.mubr.bf16.vlgmr.msra.gmra.mrb[0].mxu0 %v8978_v17 }
  0xa7   : > { %7450 = vmatpush3.bf16.msra.mxu0 %v8714_v12  ;;  %7421 = vmatprep.mubr.bf16.mxu0 %v8992_v24  ;;  %v9192_v12 = vsel %vm1025_vm0, %v1056_v1, %v1060_v4  ;;  %v1125_v1 = vshll.u32 %v9024_v40, 16  ;;  %v8726_v4 = vld [vmem:[%s11321_s1 + $0x120] sm:$0xff]  }
  0xa8   : > { %7451 = vmatprep.subr.bf16.mxu0 %v8715_v13 }
  0xab   : > { %7452 = vmatpush3.bf16.msra.mxu0 %v8715_v13  ;;  %v8723_v13 = vld [vmem:[%s11321_s1 + $0x108] sm:$0xff]  }
  0xac   : > { %7453 = vmatprep.subr.bf16.mxu0 %v8716_v14 }
  0xae   : > { %7422 = vmatmul.mubr.bf16.gmra.mrb[4].mxu0 %v8997_v26 }
  0xaf   : > { %7425 = vmatprep.mubr.bf16.mxu0 %v9008_v32  ;;  %7454 = vmatpush3.bf16.msra.mxu0 %v8716_v14  ;;  %v1075_v14 = vshrl.u32 %v8992_v24, 16 }
  0xb0   : > { %7455 = vmatprep.subr.bf16.mxu0 %v8717_v15 }
  0xb3   : > { %7456 = vmatpush3.bf16.msra.mxu0 %v8717_v15  ;;  %v1079_v15 = vrot.slane %v1077_v7, 1 }
  0xb4   : > { %7457 = vmatprep.subr.bf16.mxu0 %v8718_v18 }
  0xb5   : > { %v1080_v29 = vor.u32 %v1079_v15, %v1075_v14  ;;  %v1123_v14 = vshrl.u32 %v9024_v40, 16  ;;  %v1127_v15 = vrot.slane %v1125_v1, 1 }
  0xb6   : > { %7426 = vmatmul.mubr.bf16.gmra.mrb[8].mxu0 %v9013_v34 }
  0xb7   : > { %7429 = vmatprep.mubr.bf16.mxu0 %v9024_v40  ;;  %7458 = vmatpush3.bf16.msra.mxu0 %v8718_v18  ;;  %v1082_v18 = vshll.u32 %v9183_v5, 16 }
  0xb8   : > { %7459 = vmatprep.subr.bf16.mxu0 %v8719_v19 }
  0xb9   : > { %v1084_v30 = vrot.slane %v1082_v18, 1  ;;  %v1130_v18 = vshll.u32 %v9232_v0, 16 }
  0xbb   : > { %7460 = vmatpush3.bf16.msra.mxu0 %v8719_v19  ;;  %v243_v19 = vld [vmem:[%s8947_s29 + $0x88] sm:$0x3]  ;;  %v9218_v41 = vsel %vm1025_vm0, %v1080_v29, %v1084_v30  ;;  %v1137_v30 = vshll.u32 %v9029_v42, 16 }
  0xbc   : > { %7461 = vmatprep.subr.bf16.mxu0 %v8720_v20  ;;  %v9203_v27 = vpack.c.bf16 %v243_v19, %v243_v19  ;;  %v255_v19 = vld [vmem:[%s8947_s29 + $0xe8] sm:$0x3] }
  0xbd   : > { %v9255_v29 = vpack.c.bf16 %v255_v19, %v255_v19  ;;  %v8730_v19 = vld [vmem:[%s11321_s1 + $0x1c0] sm:$0xff]  }
  0xbe   : > { %7430 = vmatmul.mubr.bf16.gmra.mrb[12].mxu0 %v9029_v42  ;;  %v1094_v39 = vshll.u32 %v9203_v27, 16 }
  0xbf   : > { %7433 = vmatprep.mubr.bf16.mxu0 %v9040_v48  ;;  %7462 = vmatpush3.bf16.msra.mxu0 %v8720_v20  ;;  %v246_v20 = vld [vmem:[%s8947_s29 + $0xa0] sm:$0x3]  ;;  %v1142_v50 = vshll.u32 %v9255_v29, 16 }
  0xc0   : > { %7463 = vmatprep.subr.bf16.mxu0 %v8721_v21  ;;  %v9209_v33 = vpack.c.bf16 %v246_v20, %v246_v20  ;;  %v1096_v56 = vrot.slane %v1094_v39, 1  ;;  %v8727_v20 = vld [vmem:[%s11321_s1 + $0x128] sm:$0xff]   ;;  %v8728_v39 = vld [vmem:[%s11321_s1 + $0x130] sm:$0xff]  }
  0xc2   : > { %v1106_v47 = vshll.u32 %v9209_v33, 16  ;;  %v9239_v7 = vsel %vm1025_vm0, %v1092_v53, %v1096_v56  ;;  %v1151_v53 = vrot.slane %v1149_v38, 1 }
  0xc3   : > { %7464 = vmatpush3.bf16.msra.mxu0 %v8721_v21  ;;  %v1068_v21 = vor.u32 %v1067_v10, %v1063_v9  ;;  %v1111_v9 = vshrl.u32 %v9013_v34, 16  ;;  %v1115_v10 = vrot.slane %v1113_v58, 1  ;;  %v261_v58 = vld [vmem:[%s8947_s29 + $0x118] sm:$0x3] }
  0xc4   : > { %7497 = vmatprep.subr.bf16.mxu0 %v8722_v22  ;;  %v1108_v62 = vrot.slane %v1106_v47, 1  ;;  %v1139_v47 = vrot.slane %v1137_v30, 1  ;;  %v1152_v11 = vor.u32 %v1151_v53, %v1147_v52  ;;  %v1185_v53 = vshll.u32 %v9052_v55, 16 }
  0xc5   : > { %v9213_v35 = vsel %vm1025_vm0, %v1068_v21, %v1072_v23  ;;  %v258_v21 = vld [vmem:[%s8947_s29 + $0x100] sm:$0x3]  ;;  %v1116_v23 = vor.u32 %v1115_v10, %v1111_v9  ;;  %v9281_v9 = vpack.c.bf16 %v261_v58, %v261_v58  ;;  %v1161_v10 = vshll.u32 %v9042_v49, 16 }
  0xc6   : > { %7434 = vmatmul.mubr.bf16.gmra.mrb[16].mxu0 %v9042_v49  ;;  %v9258_v36 = vpack.c.bf16 %v258_v21, %v258_v21  ;;  %v1159_v21 = vshrl.u32 %v9042_v49, 16 }
  0xc7   : > { %7437 = vmatprep.mubr.bf16.mxu0 %v9050_v54 }
  0xc8   : > { %v1154_v56 = vshll.u32 %v9258_v36, 16 }
  0xce   : > { %7438 = vmatmul.mubr.bf16.gmra.mrb[20].mxu0 %v9052_v55 }
  0xcf   : > { %7441 = vmatprep.mubr.bf16.mxu0 %v9060_v60 }
  0xd6   : > { %7442 = vmatmul.mubr.bf16.gmra.mrb[24].mxu0 %v9062_v61 }
  0xd7   : > { %7445 = vmatprep.mubr.bf16.mxu0 %v9070_v2 }
  0xde   : > { %7446 = vmatmul.mubr.bf16.gmra.mrb[28].mxu0 %v9170_v45 }
  0xdf   : > { %7465 = vmatprep.mubr.bf16.mxu0 %v1037_v51  ;;  %v8725_v51 = vld [vmem:[%s11321_s1 + $0x118] sm:$0xff]  }
  0xe6   : > { %7466 = vmatmul.mubr.bf16.vlgmr.msra.gmra.mrb[0].mxu0 %v9187_v8 }
  0xe7   : > { %7498 = vmatpush3.bf16.msra.mxu0 %v8722_v22  ;;  %7469 = vmatprep.mubr.bf16.mxu0 %v9192_v12  ;;  %v1101_v22 = vshll.u32 %v9008_v32, 16 }
  0xe8   : > { %7499 = vmatprep.subr.bf16.mxu0 %v8723_v13 }
  0xe9   : > { %v1103_v46 = vrot.slane %v1101_v22, 1  ;;  %v1132_v22 = vrot.slane %v1130_v18, 1  ;;  %v1173_v18 = vshll.u32 %v9050_v54, 16 }
  0xeb   : > { %7500 = vmatpush3.bf16.msra.mxu0 %v8723_v13  ;;  %v1104_v59 = vor.u32 %v1103_v46, %v1099_v44  ;;  %v9265_v44 = vsel %vm1025_vm0, %v1116_v23, %v1120_v28  ;;  %v1135_v46 = vshrl.u32 %v9029_v42, 16  ;;  %v1163_v23 = vrot.slane %v1161_v10, 1 }
  0xec   : > { %7501 = vmatprep.subr.bf16.mxu0 %v8724_v31  ;;  %v1166_v28 = vshll.u32 %v9281_v9, 16  ;;  %v1187_v10 = vrot.slane %v1185_v53, 1  ;;  %v1207_v53 = vshrl.u32 %v9062_v61, 16 }
  0xed   : > { %v9244_v13 = vsel %vm1025_vm0, %v1104_v59, %v1108_v62  ;;  %v8729_v59 = vld [vmem:[%s11321_s1 + $0x138] sm:$0xff]   ;;  %v264_v62 = vld [vmem:[%s8947_s29 + $0x130] sm:$0x3]  ;;  %v1140_v1 = vor.u32 %v1139_v47, %v1135_v46  ;;  %v270_v46 = vld [vmem:[%s8947_s29 + $0x160] sm:$0x3]  ;;  %v1164_v47 = vor.u32 %v1163_v23, %v1159_v21 }
  0xee   : > { %7470 = vmatmul.mubr.bf16.gmra.mrb[4].mxu0 %v9213_v35 }
  0xef   : > { %7473 = vmatprep.mubr.bf16.mxu0 %v9218_v41  ;;  %7502 = vmatpush3.bf16.msra.mxu0 %v8724_v31  ;;  %v1128_v31 = vor.u32 %v1127_v15, %v1123_v14  ;;  %v1156_v14 = vrot.slane %v1154_v56, 1  ;;  %v9284_v15 = vpack.c.bf16 %v264_v62, %v264_v62  ;;  %v1197_v62 = vshll.u32 %v9060_v60, 16 }
  0xf0   : > { %7503 = vmatprep.subr.bf16.mxu0 %v8725_v51 }
  0xf1   : > { %v9296_v30 = vsel %vm1025_vm0, %v1152_v11, %v1156_v14  ;;  %v1178_v38 = vshll.u32 %v9284_v15, 16  ;;  %v1199_v21 = vrot.slane %v1197_v62, 1 }
  0xf3   : > { %7504 = vmatpush3.bf16.msra.mxu0 %v8725_v51  ;;  %v9270_v51 = vsel %vm1025_vm0, %v1128_v31, %v1132_v22  ;;  %v1171_v31 = vshrl.u32 %v9050_v54, 16  ;;  %v1175_v22 = vrot.slane %v1173_v18, 1  ;;  %v1180_v58 = vrot.slane %v1178_v38, 1 }
  0xf4   : > { %7505 = vmatprep.subr.bf16.mxu0 %v8726_v4  ;;  %v1195_v18 = vshrl.u32 %v9060_v60, 16 }
  0xf5   : > { %v1176_v56 = vor.u32 %v1175_v22, %v1171_v31 }
  0xf6   : > { %7474 = vmatmul.mubr.bf16.gmra.mrb[8].mxu0 %v9239_v7 }
  0xf7   : > { %7477 = vmatprep.mubr.bf16.mxu0 %v9244_v13  ;;  %7506 = vmatpush3.bf16.msra.mxu0 %v8726_v4  ;;  %v1144_v4 = vrot.slane %v1142_v50, 1  ;;  %v1168_v50 = vrot.slane %v1166_v28, 1  ;;  %v9316_v14 = vsel %vm1025_vm0, %v1176_v56, %v1180_v58  ;;  %v273_v28 = vld [vmem:[%s8947_s29 + $0x178] sm:$0x3] }
  0xf8   : > { %7507 = vmatprep.subr.bf16.mxu0 %v8727_v20  ;;  %v9323_v38 = vpack.c.bf16 %v273_v28, %v273_v28  ;;  %v8736_v28 = vld [vmem:[%s11321_s1 + $0x1f0] sm:$0xff]  }
  0xfa   : > { %v1214_v58 = vshll.u32 %v9323_v38, 16 }
  0xfb   : > { %7508 = vmatpush3.bf16.msra.mxu0 %v8727_v20  ;;  %v9291_v20 = vsel %vm1025_vm0, %v1140_v1, %v1144_v4  ;;  %v9311_v1 = vsel %vm1025_vm0, %v1164_v47, %v1168_v50  ;;  %v1183_v4 = vshrl.u32 %v9052_v55, 16 }
  0xfc   : > { %7509 = vmatprep.subr.bf16.mxu0 %v8728_v39 }
  0xfd   : > { %v1188_v31 = vor.u32 %v1187_v10, %v1183_v4  ;;  %v1216_v10 = vrot.slane %v1214_v58, 1 }
  0xfe   : > { %7478 = vmatmul.mubr.bf16.gmra.mrb[12].mxu0 %v9265_v44 }
  0xff   : > { %7481 = vmatprep.mubr.bf16.mxu0 %v9270_v51  ;;  %7510 = vmatpush3.bf16.msra.mxu0 %v8728_v39  ;;  %v267_v39 = vld [vmem:[%s8947_s29 + $0x148] sm:$0x3] }
 0x100   : > { %7511 = vmatprep.subr.bf16.mxu0 %v8729_v59  ;;  %v9304_v52 = vpack.c.bf16 %v267_v39, %v267_v39  ;;  %v1209_v39 = vshll.u32 %v9062_v61, 16 }
 0x102   : > { %v1190_v11 = vshll.u32 %v9304_v52, 16  ;;  %v1211_v56 = vrot.slane %v1209_v39, 1  ;;  %v276_v39 = vld [vmem:[%s8947_s29 + $0x190] sm:$0x3] }
 0x103   : > { %7512 = vmatpush3.bf16.msra.mxu0 %v8729_v59  ;;  %v9307_v59 = vpack.c.bf16 %v270_v46, %v270_v46  ;;  %v1200_v46 = vor.u32 %v1199_v21, %v1195_v18  ;;  %v8731_v18 = vld [vmem:[%s11321_s1 + $0x1c8] sm:$0xff]   ;;  %v8732_v21 = vld [vmem:[%s11321_s1 + $0x1d0] sm:$0xff]  }
 0x104   : > { %7545 = vmatprep.subr.bf16.mxu0 %v8730_v19  ;;  %v1192_v22 = vrot.slane %v1190_v11, 1  ;;  %v1212_v4 = vor.u32 %v1211_v56, %v1207_v53  ;;  %v1493_v53 = vshrl.u32 %v9070_v2, 16 }
 0x105   : > { %v1202_v23 = vshll.u32 %v9307_v59, 16 }
 0x106   : > { %7482 = vmatmul.mubr.bf16.gmra.mrb[16].mxu0 %v9291_v20  ;;  %v9327_v50 = vsel %vm1025_vm0, %v1188_v31, %v1192_v22  ;;  %v9337_v11 = vsel %vm1025_vm0, %v1212_v4, %v1216_v10  ;;  %v8737_v31 = vld [vmem:[%s11321_s1 + $0x1f8] sm:$0xff]   ;;  %v8738_v22 = vld [vmem:[%s11321_s1 + $0x80] sm:$0xff]  }
 0x107   : > { %7485 = vmatprep.mubr.bf16.mxu0 %v9296_v30  ;;  %v1204_v47 = vrot.slane %v1202_v23, 1  ;;  %v8735_v23 = vld [vmem:[%s11321_s1 + $0x1e8] sm:$0xff]  }
 0x109   : > { %v9332_v62 = vsel %vm1025_vm0, %v1200_v46, %v1204_v47  ;;  %v9378_v46 = vpack.c.bf16 %v276_v39, %v276_v39  ;;  %v1495_v47 = vshll.u32 %v9070_v2, 16  ;;  %v2070_v39 = vrot.slane %v8954_v6, 1 }
 0x10a   : > { %v2076_v6 = vrot.slane %v8978_v17, 1  ;;  %v8749_v17 = vld [vmem:[%s11321_s1 + $0x158] sm:$0xff]  }
 0x10b   : > { %v1497_v56 = vrot.slane %v1495_v47, 1  ;;  %v1500_v58 = vshll.u32 %v9378_v46, 16  ;;  %v2071_v47 = vrot.slane %v9164_v37, 1  ;;  %v2079_v37 = vrot.slane %v8992_v24, 1 }
 0x10c   : > { %v2082_v24 = vrot.slane %v8997_v26, 1  ;;  %v8751_v26 = vld [vmem:[%s11321_s1 + $0x168] sm:$0xff]  }
 0x10d   : > { %v1498_v4 = vor.u32 %v1497_v56, %v1493_v53  ;;  %v1502_v10 = vrot.slane %v1500_v58, 1  ;;  %v2074_v53 = vrot.slane %v9167_v43, 1  ;;  %v9439_v56 = vsel %vm2066_vm1, %v2070_v39, %v2071_v47  ;;  %v8748_v58 = vld [vmem:[%s11321_s1 + $0x150] sm:$0xff]  }
 0x10e   : > { %7486 = vmatmul.mubr.bf16.gmra.mrb[20].mxu0 %v9311_v1  ;;  %v2080_v43 = vrot.slane %v9183_v5, 1  ;;  %v2085_v5 = vrot.slane %v9008_v32, 1  ;;  %v2088_v32 = vrot.slane %v9013_v34, 1  ;;  %v8753_v34 = vld [vmem:[%s11321_s1 + $0x178] sm:$0xff]   ;;  %v2391_v39 = vrot.slane %v9070_v2, 1 }
 0x10f   : > { %7489 = vmatprep.mubr.bf16.mxu0 %v9316_v14  ;;  %v2392_v47 = vrot.slane %v9378_v46, 1  ;;  %v2655_v2 = vrot.slane %v9170_v45, 1 }
 0x116   : > { %7490 = vmatmul.mubr.bf16.gmra.mrb[24].mxu0 %v9327_v50 }
 0x117   : > { %7493 = vmatprep.mubr.bf16.mxu0 %v9332_v62 }
 0x11e   : > { %7494 = vmatmul.mubr.bf16.gmra.mrb[28].mxu0 %v9337_v11 }
 0x11f   : > { %7513 = vmatprep.mubr.bf16.mxu0 %v9187_v8  ;;  %v8733_v8 = vld [vmem:[%s11321_s1 + $0x1d8] sm:$0xff]  }
 0x126   : > { %7514 = vmatmul.mubr.bf16.vlgmr.msra.gmra.mrb[0].mxu0 %v9192_v12 }
 0x127   : > { %7546 = vmatpush3.bf16.msra.mxu0 %v8730_v19  ;;  %7517 = vmatprep.mubr.bf16.mxu0 %v9213_v35  ;;  %v8734_v19 = vld [vmem:[%s11321_s1 + $0x1e0] sm:$0xff]  }
 0x128   : > { %7547 = vmatprep.subr.bf16.mxu0 %v8731_v18 }
 0x12b   : > { %7548 = vmatpush3.bf16.msra.mxu0 %v8731_v18  ;;  %v1503_v18 = vsel %vm1025_vm0, %v1498_v4, %v1502_v10  ;;  %v9460_v10 = vsel %vm2066_vm1, %v2079_v37, %v2080_v43 }
 0x12c   : > { %7549 = vmatprep.subr.bf16.mxu0 %v8732_v21 }
 0x12e   : > { %7518 = vmatmul.mubr.bf16.gmra.mrb[4].mxu0 %v9218_v41 }
 0x12f   : > { %7521 = vmatprep.mubr.bf16.mxu0 %v9239_v7  ;;  %7550 = vmatpush3.bf16.msra.mxu0 %v8732_v21  ;;  %v8739_v21 = vld [vmem:[%s11321_s1 + $0x88] sm:$0xff]  }
 0x130   : > { %7551 = vmatprep.subr.bf16.mxu0 %v8733_v8 }
 0x133   : > { %7552 = vmatpush3.bf16.msra.mxu0 %v8733_v8  ;;  %v8740_v8 = vld [vmem:[%s11321_s1 + $0x90] sm:$0xff]  }
 0x134   : > { %7553 = vmatprep.subr.bf16.mxu0 %v8734_v19 }
 0x136   : > { %7522 = vmatmul.mubr.bf16.gmra.mrb[8].mxu0 %v9244_v13 }
 0x137   : > { %7525 = vmatprep.mubr.bf16.mxu0 %v9265_v44  ;;  %7554 = vmatpush3.bf16.msra.mxu0 %v8734_v19  ;;  %v1764_v19 = vshrl.u32 %v9170_v45, 16 }
 0x138   : > { %7555 = vmatprep.subr.bf16.mxu0 %v8735_v23 }
 0x13b   : > { %7556 = vmatpush3.bf16.msra.mxu0 %v8735_v23 }
 0x13c   : > { %7557 = vmatprep.subr.bf16.mxu0 %v8736_v28 }
 0x13e   : > { %7526 = vmatmul.mubr.bf16.gmra.mrb[12].mxu0 %v9270_v51 }
 0x13f   : > { %7529 = vmatprep.mubr.bf16.mxu0 %v9291_v20  ;;  %7558 = vmatpush3.bf16.msra.mxu0 %v8736_v28 }
 0x140   : > { %7559 = vmatprep.subr.bf16.mxu0 %v8737_v31 }
 0x143   : > { %7560 = vmatpush3.bf16.msra.mxu0 %v8737_v31 }
 0x144   : > { %7593 = vmatprep.subr.bf16.mxu0 %v8738_v22 }
 0x146   : > { %7530 = vmatmul.mubr.bf16.gmra.mrb[16].mxu0 %v9296_v30 }
 0x147   : > { %7533 = vmatprep.mubr.bf16.mxu0 %v9311_v1 }
 0x14e   : > { %7534 = vmatmul.mubr.bf16.gmra.mrb[20].mxu0 %v9316_v14 }
 0x14f   : > { %7537 = vmatprep.mubr.bf16.mxu0 %v9327_v50 }
 0x156   : > { %7538 = vmatmul.mubr.bf16.gmra.mrb[24].mxu0 %v9332_v62 }
 0x157   : > { %7541 = vmatprep.mubr.bf16.mxu0 %v9337_v11 }
 0x15e   : > { %7542 = vmatmul.mubr.bf16.gmra.mrb[28].mxu0 %v1503_v18 }
 0x15f   : > { %7561 = vmatprep.mubr.bf16.mxu0 %v9192_v12  ;;  %v8741_v12 = vld [vmem:[%s11321_s1 + $0x98] sm:$0xff]  }
 0x166   : > { %7562 = vmatmul.mubr.bf16.vlgmr.msra.gmra.mrb[0].mxu0 %v9213_v35  ;;  %v8742_v35 = vld [vmem:[%s11321_s1 + $0xa0] sm:$0xff]  }
 0x167   : > { %7594 = vmatpush3.bf16.msra.mxu0 %v8738_v22  ;;  %7565 = vmatprep.mubr.bf16.mxu0 %v9218_v41  ;;  %v8743_v41 = vld [vmem:[%s11321_s1 + $0xa8] sm:$0xff]  }
 0x168   : > { %7595 = vmatprep.subr.bf16.mxu0 %v8739_v21 }
 0x16b   : > { %7596 = vmatpush3.bf16.msra.mxu0 %v8739_v21  ;;  %v8750_v21 = vld [vmem:[%s11321_s1 + $0x160] sm:$0xff]  }
 0x16c   : > { %7597 = vmatprep.subr.bf16.mxu0 %v8740_v8 }
 0x16e   : > { %7566 = vmatmul.mubr.bf16.gmra.mrb[4].mxu0 %v9239_v7  ;;  %v8744_v7 = vld [vmem:[%s11321_s1 + $0xb0] sm:$0xff]  }
 0x16f   : > { %7569 = vmatprep.mubr.bf16.mxu0 %v9244_v13  ;;  %7598 = vmatpush3.bf16.msra.mxu0 %v8740_v8  ;;  %v8745_v13 = vld [vmem:[%s11321_s1 + $0xb8] sm:$0xff]  }
 0x170   : > { %7599 = vmatprep.subr.bf16.mxu0 %v8741_v12 }
 0x173   : > { %7600 = vmatpush3.bf16.msra.mxu0 %v8741_v12 }
 0x174   : > { %7601 = vmatprep.subr.bf16.mxu0 %v8742_v35 }
 0x176   : > { %7570 = vmatmul.mubr.bf16.gmra.mrb[8].mxu0 %v9265_v44  ;;  %v8746_v44 = vld [vmem:[%s11321_s1 + $0x140] sm:$0xff]  }
 0x177   : > { %7573 = vmatprep.mubr.bf16.mxu0 %v9270_v51  ;;  %7602 = vmatpush3.bf16.msra.mxu0 %v8742_v35  ;;  %v279_v51 = vld [vmem:[%s8947_s29 + $0x1a8] sm:$0x3]  ;;  %v2092_v35 = vrot.slane %v9232_v0, 1  ;;  %v2097_v0 = vrot.slane %v9040_v48, 1  ;;  %v2101_v48 = vrot.slane %v9281_v9, 1  ;;  %v2109_v9 = vrot.slane %v9060_v60, 1 }
 0x178   : > { %7603 = vmatprep.subr.bf16.mxu0 %v8743_v41  ;;  %v8756_v60 = vld [vmem:[%s11321_s1 + $0x210] sm:$0xff]  }
 0x17b   : > { %7604 = vmatpush3.bf16.msra.mxu0 %v8743_v41  ;;  %v8752_v41 = vld [vmem:[%s11321_s1 + $0x170] sm:$0xff]  }
 0x17c   : > { %7605 = vmatprep.subr.bf16.mxu0 %v8744_v7 }
 0x17e   : > { %7574 = vmatmul.mubr.bf16.gmra.mrb[12].mxu0 %v9291_v20  ;;  %v9424_v20 = vpack.c.bf16 %v279_v51, %v279_v51  ;;  %v8754_v51 = vld [vmem:[%s11321_s1 + $0x200] sm:$0xff]  }
 0x17f   : > { %7577 = vmatprep.mubr.bf16.mxu0 %v9296_v30  ;;  %7606 = vmatpush3.bf16.msra.mxu0 %v8744_v7  ;;  %v1766_v30 = vshll.u32 %v9170_v45, 16 }
 0x180   : > { %7607 = vmatprep.subr.bf16.mxu0 %v8745_v13  ;;  %v1771_v28 = vshll.u32 %v9424_v20, 16  ;;  %v2656_v46 = vrot.slane %v9424_v20, 1 }
 0x181   : > { %v1768_v23 = vrot.slane %v1766_v30, 1 }
 0x182   : > { %v1773_v31 = vrot.slane %v1771_v28, 1 }
 0x183   : > { %7608 = vmatpush3.bf16.msra.mxu0 %v8745_v13 }
 0x184   : > { %7641 = vmatprep.subr.bf16.mxu0 %v8746_v44 }
 0x186   : > { %7578 = vmatmul.mubr.bf16.gmra.mrb[16].mxu0 %v9311_v1  ;;  %v1769_v1 = vor.u32 %v1768_v23, %v1764_v19 }
 0x187   : > { %7581 = vmatprep.mubr.bf16.mxu0 %v9316_v14  ;;  %v2067_v14 = vrot.slane %v9072_v3, 1 }
 0x18e   : > { %7582 = vmatmul.mubr.bf16.gmra.mrb[20].mxu0 %v9327_v50  ;;  %v2068_v50 = vrot.slane %v9153_v25, 1  ;;  %v8747_v25 = vld [vmem:[%s11321_s1 + $0x148] sm:$0xff]  }
 0x18f   : > { %7585 = vmatprep.mubr.bf16.mxu0 %v9332_v62  ;;  %v1774_v62 = vsel %vm1025_vm0, %v1769_v1, %v1773_v31  ;;  %v2106_v1 = vrot.slane %v9052_v55, 1  ;;  %v8755_v55 = vld [vmem:[%s11321_s1 + $0x208] sm:$0xff]  }
 0x190   : > { %v2069_v22 = vsel %vm2066_vm1, %v2067_v14, %v2068_v50  ;;  %v2112_v14 = vrot.slane %v9062_v61, 1  ;;  %v2113_v50 = vrot.slane %v9323_v38, 1  ;;  %v8757_v61 = vld [vmem:[%s11321_s1 + $0x218] sm:$0xff]   ;;  %v8760_v38 = vld [vmem:[%s11321_s1 + $0x230] sm:$0xff]  }
 0x196   : > { %7586 = vmatmul.mubr.bf16.gmra.mrb[24].mxu0 %v9337_v11  ;;  %v2073_v11 = vrot.slane %v8976_v16, 1  ;;  %v2077_v16 = vrot.slane %v9180_v63, 1  ;;  %v2083_v63 = vrot.slane %v9203_v27, 1  ;;  %v2089_v27 = vrot.slane %v9229_v57, 1 }
 0x197   : > { %7589 = vmatprep.mubr.bf16.mxu0 %v1503_v18  ;;  %v2086_v18 = vrot.slane %v9209_v33, 1  ;;  %v2091_v33 = vrot.slane %v9024_v40, 1  ;;  %v2094_v40 = vrot.slane %v9029_v42, 1  ;;  %v2095_v57 = vrot.slane %v9255_v29, 1 }
 0x198   : > { %v9442_v3 = vsel %vm2066_vm1, %v2073_v11, %v2074_v53  ;;  %v9457_v4 = vsel %vm2066_vm1, %v2076_v6, %v2077_v16  ;;  %v9475_v8 = vsel %vm2066_vm1, %v2082_v24, %v2083_v63  ;;  %v9493_v7 = vsel %vm2066_vm1, %v2088_v32, %v2089_v27 }
 0x199   : > { %v9478_v12 = vsel %vm2066_vm1, %v2085_v5, %v2086_v18  ;;  %v9496_v13 = vsel %vm2066_vm1, %v2091_v33, %v2092_v35  ;;  %v9511_v30 = vsel %vm2066_vm1, %v2094_v40, %v2095_v57  ;;  %v2100_v42 = vrot.slane %v9042_v49, 1 }
 0x19a   : > { %v2103_v29 = vrot.slane %v9050_v54, 1  ;;  %v2107_v49 = vrot.slane %v9304_v52, 1  ;;  %v2110_v54 = vrot.slane %v9307_v59, 1  ;;  %v8758_v52 = vld [vmem:[%s11321_s1 + $0x220] sm:$0xff]   ;;  %v8759_v59 = vld [vmem:[%s11321_s1 + $0x228] sm:$0xff]   ;;  %v2393_v11 = vsel %vm2066_vm1, %v2391_v39, %v2392_v47 }
 0x19b   : > { %v9523_v23 = vsel %vm2066_vm1, %v2100_v42, %v2101_v48  ;;  %v2657_v53 = vsel %vm2066_vm1, %v2655_v2, %v2656_v46 }
 0x19c   : > { %v2111_v31 = vsel %vm2066_vm1, %v2109_v9, %v2110_v54 }
 0x19e   : > { %7590 = vmatmul.mubr.bf16.gmra.mrb[28].mxu0 %v1774_v62  ;;  %v2114_v62 = vsel %vm2066_vm1, %v2112_v14, %v2113_v50 }
 0x19f   : > { %7609 = vmatprep.mubr.bf16.mxu0 %v2069_v22  ;;  %v8761_v22 = vld [vmem:[%s11321_s1 + $0x238] sm:$0xff]  }
 0x1a6   : > { %7610 = vmatmul.mubr.bf16.vlgmr.msra.gmra.mrb[0].mxu0 %v9439_v56 }
 0x1a7   : > { %7642 = vmatpush3.bf16.msra.mxu0 %v8746_v44  ;;  %7613 = vmatprep.mubr.bf16.mxu0 %v9442_v3  ;;  %v2098_v44 = vrot.slane %v9258_v36, 1  ;;  %v2104_v36 = vrot.slane %v9284_v15, 1  ;;  %v2108_v15 = vsel %vm2066_vm1, %v2106_v1, %v2107_v49 }
 0x1a8   : > { %7643 = vmatprep.subr.bf16.mxu0 %v8747_v25 }
 0x1a9   : > { %v9514_v19 = vsel %vm2066_vm1, %v2097_v0, %v2098_v44  ;;  %v9526_v28 = vsel %vm2066_vm1, %v2103_v29, %v2104_v36 }
 0x1ab   : > { %7644 = vmatpush3.bf16.msra.mxu0 %v8747_v25 }
 0x1ac   : > { %7645 = vmatprep.subr.bf16.mxu0 %v8748_v58 }
 0x1ae   : > { %7614 = vmatmul.mubr.bf16.gmra.mrb[4].mxu0 %v9457_v4 }
 0x1af   : > { %7617 = vmatprep.mubr.bf16.mxu0 %v9460_v10  ;;  %7646 = vmatpush3.bf16.msra.mxu0 %v8748_v58 }
 0x1b0   : > { %7647 = vmatprep.subr.bf16.mxu0 %v8749_v17 }
 0x1b3   : > { %7648 = vmatpush3.bf16.msra.mxu0 %v8749_v17 }
 0x1b4   : > { %7649 = vmatprep.subr.bf16.mxu0 %v8750_v21 }
 0x1b6   : > { %7618 = vmatmul.mubr.bf16.gmra.mrb[8].mxu0 %v9475_v8 }
 0x1b7   : > { %7621 = vmatprep.mubr.bf16.mxu0 %v9478_v12  ;;  %7650 = vmatpush3.bf16.msra.mxu0 %v8750_v21 }
 0x1b8   : > { %7651 = vmatprep.subr.bf16.mxu0 %v8751_v26 }
 0x1bb   : > { %7652 = vmatpush3.bf16.msra.mxu0 %v8751_v26 }
 0x1bc   : > { %7653 = vmatprep.subr.bf16.mxu0 %v8752_v41 }
 0x1be   : > { %7622 = vmatmul.mubr.bf16.gmra.mrb[12].mxu0 %v9493_v7 }
 0x1bf   : > { %7625 = vmatprep.mubr.bf16.mxu0 %v9496_v13  ;;  %7654 = vmatpush3.bf16.msra.mxu0 %v8752_v41 }
 0x1c0   : > { %7655 = vmatprep.subr.bf16.mxu0 %v8753_v34 }
 0x1c3   : > { %7656 = vmatpush3.bf16.msra.mxu0 %v8753_v34 }
 0x1c4   : > { %7689 = vmatprep.subr.bf16.mxu0 %v8754_v51 }
 0x1c6   : > { %7626 = vmatmul.mubr.bf16.gmra.mrb[16].mxu0 %v9511_v30 }
 0x1c7   : > { %7629 = vmatprep.mubr.bf16.mxu0 %v9514_v19 }
 0x1ce   : > { %7630 = vmatmul.mubr.bf16.gmra.mrb[20].mxu0 %v9523_v23 }
 0x1cf   : > { %7633 = vmatprep.mubr.bf16.mxu0 %v9526_v28 }
 0x1d6   : > { %7634 = vmatmul.mubr.bf16.gmra.mrb[24].mxu0 %v2108_v15 }
 0x1d7   : > { %7637 = vmatprep.mubr.bf16.mxu0 %v2111_v31 }
 0x1de   : > { %7638 = vmatmul.mubr.bf16.gmra.mrb[28].mxu0 %v2114_v62 }
 0x1df   : > { %7657 = vmatprep.mubr.bf16.mxu0 %v9439_v56 }
 0x1e6   : > { %7658 = vmatmul.mubr.bf16.vlgmr.msra.gmra.mrb[0].mxu0 %v9442_v3 }
 0x1e7   : > { %7690 = vmatpush3.bf16.msra.mxu0 %v8754_v51  ;;  %7661 = vmatprep.mubr.bf16.mxu0 %v9457_v4 }
 0x1e8   : > { %7691 = vmatprep.subr.bf16.mxu0 %v8755_v55 }
 0x1eb   : > { %7692 = vmatpush3.bf16.msra.mxu0 %v8755_v55 }
 0x1ec   : > { %7693 = vmatprep.subr.bf16.mxu0 %v8756_v60 }
 0x1ee   : > { %7662 = vmatmul.mubr.bf16.gmra.mrb[4].mxu0 %v9460_v10 }
 0x1ef   : > { %7665 = vmatprep.mubr.bf16.mxu0 %v9475_v8  ;;  %7694 = vmatpush3.bf16.msra.mxu0 %v8756_v60 }
 0x1f0   : > { %7695 = vmatprep.subr.bf16.mxu0 %v8757_v61 }
 0x1f3   : > { %7696 = vmatpush3.bf16.msra.mxu0 %v8757_v61 }
 0x1f4   : > { %7697 = vmatprep.subr.bf16.mxu0 %v8758_v52 }
 0x1f6   : > { %7666 = vmatmul.mubr.bf16.gmra.mrb[8].mxu0 %v9478_v12 }
 0x1f7   : > { %7669 = vmatprep.mubr.bf16.mxu0 %v9493_v7  ;;  %7698 = vmatpush3.bf16.msra.mxu0 %v8758_v52 }
 0x1f8   : > { %7699 = vmatprep.subr.bf16.mxu0 %v8759_v59 }
 0x1fb   : > { %7700 = vmatpush3.bf16.msra.mxu0 %v8759_v59 }
 0x1fc   : > { %7701 = vmatprep.subr.bf16.mxu0 %v8760_v38 }
 0x1fe   : > { %7670 = vmatmul.mubr.bf16.gmra.mrb[12].mxu0 %v9496_v13 }
 0x1ff   : > { %7673 = vmatprep.mubr.bf16.mxu0 %v9511_v30  ;;  %7702 = vmatpush3.bf16.msra.mxu0 %v8760_v38 }
 0x200   : > { %7703 = vmatprep.subr.bf16.mxu0 %v8761_v22 }
 0x203   : > { %7704 = vmatpush3.bf16.msra.mxu0 %v8761_v22 }
 0x206   : > { %7674 = vmatmul.mubr.bf16.gmra.mrb[16].mxu0 %v9514_v19 }
 0x207   : > { %7677 = vmatprep.mubr.bf16.mxu0 %v9523_v23 }
 0x20e   : > { %7678 = vmatmul.mubr.bf16.gmra.mrb[20].mxu0 %v9526_v28 }
 0x20f   : > { %7681 = vmatprep.mubr.bf16.mxu0 %v2108_v15 }
 0x216   : > { %7682 = vmatmul.mubr.bf16.gmra.mrb[24].mxu0 %v2111_v31 }
 0x217   : > { %7685 = vmatprep.mubr.bf16.mxu0 %v2114_v62 }
 0x21e   : > { %7686 = vmatmul.mubr.bf16.gmra.mrb[28].mxu0 %v2393_v11 }
 0x21f   : > { %7705 = vmatprep.mubr.bf16.mxu0 %v9442_v3  ;;  %v9592_v3 = vld [vmem:[%s11322_s2] ss:$0 sm:$0xff] }
 0x226   : > { %7706 = vmatmul.mubr.bf16.vlgmr.msra.gmra.mrb[0].mxu0 %v9457_v4 }
 0x227   : > { %7709 = vmatprep.mubr.bf16.mxu0 %v9460_v10 }
 0x22e   : > { %7710 = vmatmul.mubr.bf16.gmra.mrb[4].mxu0 %v9475_v8 }
 0x22f   : > { %7713 = vmatprep.mubr.bf16.mxu0 %v9478_v12 }
 0x236   : > { %7714 = vmatmul.mubr.bf16.gmra.mrb[8].mxu0 %v9493_v7 }
 0x237   : > { %7717 = vmatprep.mubr.bf16.mxu0 %v9496_v13 }
 0x23e   : > { %7718 = vmatmul.mubr.bf16.gmra.mrb[12].mxu0 %v9511_v30 }
 0x23f   : > { %7721 = vmatprep.mubr.bf16.mxu0 %v9514_v19 }
 0x246   : > { %7722 = vmatmul.mubr.bf16.gmra.mrb[16].mxu0 %v9523_v23 }
 0x247   : > { %7725 = vmatprep.mubr.bf16.mxu0 %v9526_v28 }
 0x24e   : > { %7726 = vmatmul.mubr.bf16.gmra.mrb[20].mxu0 %v2108_v15 }
 0x24f   : > { %7729 = vmatprep.mubr.bf16.mxu0 %v2111_v31 }
 0x256   : > { %7730 = vmatmul.mubr.bf16.gmra.mrb[24].mxu0 %v2114_v62 }
 0x257   : > { %7733 = vmatprep.mubr.bf16.mxu0 %v2393_v11 }
 0x25e   : > { %7734 = vmatmul.mubr.bf16.gmra.mrb[28].mxu0 %v2657_v53 }
 0x2f9   : > { %v7707_v56 = vpop.f32.mrb[0].mxu0 }
 0x2fa   : > { %v2758_v25 = vpop.f32.mrb[1].mxu0  ;;  %v9601_v45 = vadd.f32 %v7707_v56, %v9592_v3 }
 0x2fb   : > { %v7708_v6 = vpop.f32.mrb[2].mxu0  ;;  %v9595_v37 = vadd.f32 %v9592_v3, %v2758_v25 }
 0x2fc   : > { %v2761_v16 = vpop.f32.mrb[3].mxu0  ;;  %v9606_v58 = vadd.f32 %v7708_v6, %v9592_v3 }
 0x2fd   : > { %v9598_v43 = vadd.f32 %v9592_v3, %v2761_v16 }
 0x2ff   : > { %v2956_v20 = vadd.f32 %v9598_v43, %v9595_v37 }
 0x301   : > { %v2957_v4 = vadd.f32 %v2956_v20, %v9601_v45  ;;  %v7711_v10 = vpop.f32.mrb[4].mxu0 }
 0x302   : > { %v2774_v17 = vpop.f32.mrb[5].mxu0  ;;  %v9618_v12 = vadd.f32 %v7711_v10, %v9592_v3 }
 0x303   : > { %v9610_v24 = vadd.f32 %v9592_v3, %v2774_v17  ;;  %v2958_v63 = vadd.f32 %v2957_v4, %v9606_v58  ;;  %v7712_v5 = vpop.f32.mrb[6].mxu0 }
 0x304   : > { %v2777_v18 = vpop.f32.mrb[7].mxu0  ;;  %v9622_v32 = vadd.f32 %v7712_v5, %v9592_v3 }
 0x305   : > { %v2959_v21 = vadd.f32 %v2958_v63, %v9610_v24  ;;  %v9615_v8 = vadd.f32 %v9592_v3, %v2777_v18 }
 0x307   : > { %v2960_v26 = vadd.f32 %v2959_v21, %v9615_v8 }
 0x309   : > { %v2961_v27 = vadd.f32 %v2960_v26, %v9618_v12  ;;  %v7715_v33 = vpop.f32.mrb[8].mxu0 }
 0x30a   : > { %v2790_v35 = vpop.f32.mrb[9].mxu0  ;;  %v9634_v0 = vadd.f32 %v7715_v33, %v9592_v3 }
 0x30b   : > { %v9626_v41 = vadd.f32 %v9592_v3, %v2790_v35  ;;  %v2962_v7 = vadd.f32 %v2961_v27, %v9622_v32  ;;  %v7716_v13 = vpop.f32.mrb[10].mxu0 }
 0x30c   : > { %v2793_v34 = vpop.f32.mrb[11].mxu0  ;;  %v9638_v51 = vadd.f32 %v7716_v13, %v9592_v3 }
 0x30d   : > { %v2963_v40 = vadd.f32 %v2962_v7, %v9626_v41  ;;  %v9631_v57 = vadd.f32 %v9592_v3, %v2793_v34 }
 0x30f   : > { %v2964_v44 = vadd.f32 %v2963_v40, %v9631_v57 }
 0x311   : > { %v2965_v30 = vadd.f32 %v2964_v44, %v9634_v0  ;;  %v7719_v19 = vpop.f32.mrb[12].mxu0 }
 0x312   : > { %v2806_v42 = vpop.f32.mrb[13].mxu0  ;;  %v9650_v49 = vadd.f32 %v7719_v19, %v9592_v3 }
 0x313   : > { %v9642_v48 = vadd.f32 %v9592_v3, %v2806_v42  ;;  %v2966_v29 = vadd.f32 %v2965_v30, %v9638_v51  ;;  %v7720_v36 = vpop.f32.mrb[14].mxu0 }
 0x314   : > { %v2809_v23 = vpop.f32.mrb[15].mxu0  ;;  %v9654_v54 = vadd.f32 %v7720_v36, %v9592_v3 }
 0x315   : > { %v2967_v28 = vadd.f32 %v2966_v29, %v9642_v48  ;;  %v9647_v1 = vadd.f32 %v9592_v3, %v2809_v23 }
 0x317   : > { %v2968_v9 = vadd.f32 %v2967_v28, %v9647_v1 }
 0x319   : > { %v2969_v15 = vadd.f32 %v2968_v9, %v9650_v49  ;;  %v7723_v31 = vpop.f32.mrb[16].mxu0 }
 0x31a   : > { %v2822_v14 = vpop.f32.mrb[17].mxu0  ;;  %v9666_v59 = vadd.f32 %v7723_v31, %v9592_v3 }
 0x31b   : > { %v9658_v50 = vadd.f32 %v9592_v3, %v2822_v14  ;;  %v2970_v62 = vadd.f32 %v2969_v15, %v9654_v54  ;;  %v7724_v55 = vpop.f32.mrb[18].mxu0 }
 0x31c   : > { %v2825_v60 = vpop.f32.mrb[19].mxu0  ;;  %v9670_v22 = vadd.f32 %v7724_v55, %v9592_v3 }
 0x31d   : > { %v2971_v61 = vadd.f32 %v2970_v62, %v9658_v50  ;;  %v9663_v52 = vadd.f32 %v9592_v3, %v2825_v60  ;;  %v8762_v60 = vld [vmem:[%s11323_s3 + $0xc0] sm:$0xff]  }
 0x31e   : > { %7737 = vmatprep.subr.bf16.mxu1 %v8762_v60 }
 0x31f   : > { %v2972_v38 = vadd.f32 %v2971_v61, %v9663_v52  ;;  %7738 = vmatpush3.bf16.msra.mxu1 %v8762_v60 }
 0x321   : > { %v2973_v39 = vadd.f32 %v2972_v38, %v9666_v59  ;;  %v7727_v47 = vpop.f32.mrb[20].mxu0 }
 0x322   : > { %v2838_v11 = vpop.f32.mrb[21].mxu0  ;;  %v9682_v16 = vadd.f32 %v7727_v47, %v9592_v3 }
 0x323   : > { %v9674_v2 = vadd.f32 %v9592_v3, %v2838_v11  ;;  %v2974_v46 = vadd.f32 %v2973_v39, %v9670_v22  ;;  %v7728_v53 = vpop.f32.mrb[22].mxu0  ;;  %v8763_v39 = vld [vmem:[%s11323_s3 + $0xc8] sm:$0xff]   ;;  %v8764_v11 = vld [vmem:[%s11323_s3 + $0xd0] sm:$0xff]  }
 0x324   : > { %v2841_v56 = vpop.f32.mrb[23].mxu0  ;;  %v2947_v4 = vadd.f32 %v7728_v53, %v9592_v3  ;;  %7739 = vmatprep.subr.bf16.mxu1 %v8763_v39  ;;  %v8765_v53 = vld [vmem:[%s11323_s3 + $0xd8] sm:$0xff]  }
 0x325   : > { %v2975_v25 = vadd.f32 %v2974_v46, %v9674_v2  ;;  %v9679_v6 = vadd.f32 %v9592_v3, %v2841_v56  ;;  %7740 = vmatpush3.bf16.msra.mxu1 %v8763_v39 }
 0x326   : > { %7741 = vmatprep.subr.bf16.mxu1 %v8764_v11 }
 0x327   : > { %v2976_v20 = vadd.f32 %v2975_v25, %v9679_v6 }
 0x329   : > { %v2977_v10 = vadd.f32 %v2976_v20, %v9682_v16  ;;  %v7731_v17 = vpop.f32.mrb[24].mxu0  ;;  %7742 = vmatpush3.bf16.msra.mxu1 %v8764_v11 }
 0x32a   : > { %v2854_v63 = vpop.f32.mrb[25].mxu0  ;;  %v2950_v35 = vadd.f32 %v7731_v17, %v9592_v3  ;;  %7743 = vmatprep.subr.bf16.mxu1 %v8765_v53 }
 0x32b   : > { %v2948_v5 = vadd.f32 %v9592_v3, %v2854_v63  ;;  %v2978_v18 = vadd.f32 %v2977_v10, %v2947_v4  ;;  %v7732_v21 = vpop.f32.mrb[26].mxu0 }
 0x32c   : > { %v2857_v26 = vpop.f32.mrb[27].mxu0  ;;  %v2951_v13 = vadd.f32 %v7732_v21, %v9592_v3 }
 0x32d   : > { %v2979_v27 = vadd.f32 %v2978_v18, %v2948_v5  ;;  %v2949_v33 = vadd.f32 %v9592_v3, %v2857_v26  ;;  %7744 = vmatpush3.bf16.msra.mxu1 %v8765_v53 }
 0x32f   : > { %v2980_v7 = vadd.f32 %v2979_v27, %v2949_v33 }
 0x331   : > { %v2981_v34 = vadd.f32 %v2980_v7, %v2950_v35  ;;  %v7735_v40 = vpop.f32.mrb[28].mxu0 }
 0x332   : > { %v2870_v44 = vpop.f32.mrb[29].mxu0  ;;  %v2954_v28 = vadd.f32 %v7735_v40, %v9592_v3 }
 0x333   : > { %v2952_v30 = vadd.f32 %v9592_v3, %v2870_v44  ;;  %v2982_v19 = vadd.f32 %v2981_v34, %v2951_v13  ;;  %v7736_v42 = vpop.f32.mrb[30].mxu0  ;;  %v8769_v44 = vld [vmem:[%s11323_s3 + $0xf8] sm:$0xff]  }
 0x334   : > { %v2873_v29 = vpop.f32.mrb[31].mxu0  ;;  %v2955_v15 = vadd.f32 %v7736_v42, %v9592_v3 }
 0x335   : > { %v2983_v36 = vadd.f32 %v2982_v19, %v2952_v30  ;;  %v2953_v23 = vadd.f32 %v9592_v3, %v2873_v29 }
 0x337   : > { %v2984_v9 = vadd.f32 %v2983_v36, %v2953_v23  ;;  %v9816_v36 = vld [vmem:[%s11323_s3] sm:$0xff]  }
 0x339   : > { %v2985_v31 = vadd.f32 %v2984_v9, %v2954_v28 }
 0x33b   : > { %v2986_v14 = vadd.f32 %v2985_v31, %v2955_v15 }
 0x33d   : > { %v2987_v62 = vrot.slane %v2986_v14, 4 }
 0x33f   : > { %v2988_v55 = vadd.f32 %v2987_v62, %v2986_v14 }
 0x341   : > { %v2989_v61 = vrot.slane %v2988_v55, 2 }
 0x343   : > { %v2990_v38 = vadd.f32 %v2989_v61, %v2988_v55 }
 0x345   : > { %v2991_v47 = vrot.slane %v2990_v38, 1 }
 0x347   : > { %v2992_v3 = vadd.f32 %v2991_v47, %v2990_v38 }
 0x349   : > { %v2994_v46 = vmul.f32 0.00390625, %v2992_v3 }
 0x34b   : > { %v9708_v56 = vsub.f32 %v9626_v41, %v2994_v46  ;;  %v9711_v25 = vsub.f32 %v9631_v57, %v2994_v46  ;;  %v9714_v20 = vsub.f32 %v9634_v0, %v2994_v46  ;;  %v9717_v10 = vsub.f32 %v9638_v51, %v2994_v46 }
 0x34c   : > { %v9720_v17 = vsub.f32 %v9642_v48, %v2994_v46  ;;  %v9723_v63 = vsub.f32 %v9647_v1, %v2994_v46  ;;  %v9726_v18 = vsub.f32 %v9650_v49, %v2994_v46  ;;  %v9729_v41 = vsub.f32 %v9654_v54, %v2994_v46  ;;  %v8766_v1 = vld [vmem:[%s11323_s3 + $0xe0] sm:$0xff]  }
 0x34d   : > { %v9732_v57 = vsub.f32 %v9658_v50, %v2994_v46  ;;  %v9735_v0 = vsub.f32 %v9663_v52, %v2994_v46  ;;  %v9738_v51 = vsub.f32 %v9666_v59, %v2994_v46  ;;  %v9741_v48 = vsub.f32 %v9670_v22, %v2994_v46  ;;  %7745 = vmatprep.subr.bf16.mxu1 %v8766_v1 }
 0x34e   : > { %v9747_v49 = vsub.f32 %v9674_v2, %v2994_v46  ;;  %v9750_v54 = vsub.f32 %v9679_v6, %v2994_v46  ;;  %v9753_v50 = vsub.f32 %v9682_v16, %v2994_v46  ;;  %v9755_v52 = vsub.f32 %v2947_v4, %v2994_v46  ;;  %7746 = vmatpush3.bf16.msra.mxu1 %v8766_v1 }
 0x34f   : > { %v9757_v59 = vsub.f32 %v2948_v5, %v2994_v46  ;;  %v9759_v21 = vsub.f32 %v2949_v33, %v2994_v46  ;;  %v9761_v22 = vsub.f32 %v2950_v35, %v2994_v46  ;;  %v9763_v26 = vsub.f32 %v2951_v13, %v2994_v46  ;;  %v8767_v5 = vld [vmem:[%s11323_s3 + $0xe8] sm:$0xff]  }
 0x350   : > { %v9765_v27 = vsub.f32 %v2952_v30, %v2994_v46  ;;  %v9767_v2 = vsub.f32 %v2953_v23, %v2994_v46  ;;  %v9769_v6 = vsub.f32 %v2954_v28, %v2994_v46  ;;  %v9771_v7 = vsub.f32 %v2955_v15, %v2994_v46  ;;  %7747 = vmatprep.subr.bf16.mxu1 %v8767_v5 }
 0x351   : > { %v9774_v16 = vsub.f32 %v9595_v37, %v2994_v46  ;;  %v9777_v4 = vsub.f32 %v9598_v43, %v2994_v46  ;;  %v9783_v33 = vsub.f32 %v9601_v45, %v2994_v46  ;;  %v8768_v37 = vld [vmem:[%s11323_s3 + $0xf0] sm:$0xff]   ;;  %v9793_v43 = vsub.f32 %v9606_v58, %v2994_v46 }
 0x352   : > { %7748 = vmatpush3.bf16.msra.mxu1 %v8767_v5  ;;  %v9796_v34 = vsub.f32 %v9610_v24, %v2994_v46  ;;  %v9804_v30 = vsub.f32 %v9615_v8, %v2994_v46  ;;  %v9809_v24 = vsub.f32 %v9618_v12, %v2994_v46  ;;  %v9819_v8 = vsub.f32 %v9622_v32, %v2994_v46 }
 0x353   : > { %v3027_v35 = vmul.f32 %v9774_v16, %v9774_v16  ;;  %v3028_v13 = vmul.f32 %v9777_v4, %v9777_v4  ;;  %7749 = vmatprep.subr.bf16.mxu1 %v8768_v37  ;;  %v3029_v45 = vmul.f32 %v9783_v33, %v9783_v33  ;;  %v3030_v58 = vmul.f32 %v9793_v43, %v9793_v43 }
 0x354   : > { %v3031_v42 = vmul.f32 %v9796_v34, %v9796_v34  ;;  %v3032_v23 = vmul.f32 %v9804_v30, %v9804_v30  ;;  %v3033_v12 = vmul.f32 %v9809_v24, %v9809_v24  ;;  %v3034_v15 = vmul.f32 %v9819_v8, %v9819_v8 }
 0x355   : > { %v3059_v40 = vadd.f32 %v3028_v13, %v3027_v35  ;;  %v3035_v14 = vmul.f32 %v9708_v56, %v9708_v56  ;;  %v3036_v32 = vmul.f32 %v9711_v25, %v9711_v25  ;;  %v3037_v60 = vmul.f32 %v9714_v20, %v9714_v20 }
 0x356   : > { %7750 = vmatpush3.bf16.msra.mxu1 %v8768_v37  ;;  %v3038_v38 = vmul.f32 %v9717_v10, %v9717_v10  ;;  %v3039_v47 = vmul.f32 %v9720_v17, %v9720_v17  ;;  %v3040_v11 = vmul.f32 %v9723_v63, %v9723_v63  ;;  %v3041_v53 = vmul.f32 %v9726_v18, %v9726_v18 }
 0x357   : > { %v3060_v19 = vadd.f32 %v3059_v40, %v3029_v45  ;;  %7751 = vmatprep.subr.bf16.mxu1 %v8769_v44  ;;  %v3042_v5 = vmul.f32 %v9729_v41, %v9729_v41  ;;  %v3043_v13 = vmul.f32 %v9732_v57, %v9732_v57  ;;  %v3044_v45 = vmul.f32 %v9735_v0, %v9735_v0 }
 0x359   : > { %v3061_v29 = vadd.f32 %v3060_v19, %v3030_v58  ;;  %v3046_v19 = vmul.f32 %v9741_v48, %v9741_v48 }
 0x35a   : > { %7752 = vmatpush3.bf16.msra.mxu1 %v8769_v44  ;;  %v3045_v44 = vmul.f32 %v9738_v51, %v9738_v51 }
 0x35b   : > { %v3062_v28 = vadd.f32 %v3061_v29, %v3031_v42  ;;  %7785 = vmatprep.subr.bf16.mxu1 %v9816_v36  ;;  %v3047_v29 = vmul.f32 %v9747_v49, %v9747_v49 }
 0x35d   : > { %v3063_v9 = vadd.f32 %v3062_v28, %v3032_v23  ;;  %v3048_v28 = vmul.f32 %v9750_v54, %v9750_v54 }
 0x35f   : > { %v3064_v31 = vadd.f32 %v3063_v9, %v3033_v12  ;;  %v3049_v9 = vmul.f32 %v9753_v50, %v9753_v50 }
 0x361   : > { %v3065_v62 = vadd.f32 %v3064_v31, %v3034_v15  ;;  %v3050_v31 = vmul.f32 %v9755_v52, %v9755_v52 }
 0x363   : > { %v3066_v55 = vadd.f32 %v3065_v62, %v3035_v14  ;;  %v3051_v62 = vmul.f32 %v9757_v59, %v9757_v59 }
 0x365   : > { %v3067_v61 = vadd.f32 %v3066_v55, %v3036_v32  ;;  %v3052_v55 = vmul.f32 %v9759_v21, %v9759_v21 }
 0x367   : > { %v3068_v39 = vadd.f32 %v3067_v61, %v3037_v60  ;;  %v3053_v61 = vmul.f32 %v9761_v22, %v9761_v22 }
 0x369   : > { %v3069_v3 = vadd.f32 %v3068_v39, %v3038_v38  ;;  %v3054_v39 = vmul.f32 %v9763_v26, %v9763_v26 }
 0x36b   : > { %v3070_v46 = vadd.f32 %v3069_v3, %v3039_v47  ;;  %v3055_v3 = vmul.f32 %v9765_v27, %v9765_v27 }
 0x36d   : > { %v3071_v1 = vadd.f32 %v3070_v46, %v3040_v11  ;;  %v3056_v46 = vmul.f32 %v9767_v2, %v9767_v2 }
 0x36f   : > { %v3072_v35 = vadd.f32 %v3071_v1, %v3041_v53  ;;  %v3057_v1 = vmul.f32 %v9769_v6, %v9769_v6 }
 0x371   : > { %v3073_v37 = vadd.f32 %v3072_v35, %v3042_v5  ;;  %v3058_v35 = vmul.f32 %v9771_v7, %v9771_v7 }
 0x373   : > { %v3074_v40 = vadd.f32 %v3073_v37, %v3043_v13 }
 0x375   : > { %v3075_v58 = vadd.f32 %v3074_v40, %v3044_v45 }
 0x377   : > { %v3076_v42 = vadd.f32 %v3075_v58, %v3045_v44 }
 0x379   : > { %v3077_v23 = vadd.f32 %v3076_v42, %v3046_v19 }
 0x37b   : > { %v3078_v12 = vadd.f32 %v3077_v23, %v3047_v29 }
 0x37d   : > { %v3079_v15 = vadd.f32 %v3078_v12, %v3048_v28 }
 0x37f   : > { %v3080_v14 = vadd.f32 %v3079_v15, %v3049_v9 }
 0x381   : > { %v3081_v32 = vadd.f32 %v3080_v14, %v3050_v31 }
 0x383   : > { %v3082_v60 = vadd.f32 %v3081_v32, %v3051_v62 }
 0x385   : > { %v3083_v38 = vadd.f32 %v3082_v60, %v3052_v55 }
 0x387   : > { %v3084_v47 = vadd.f32 %v3083_v38, %v3053_v61 }
 0x389   : > { %v3085_v11 = vadd.f32 %v3084_v47, %v3054_v39 }
 0x38b   : > { %v3086_v53 = vadd.f32 %v3085_v11, %v3055_v3 }
 0x38d   : > { %v3087_v5 = vadd.f32 %v3086_v53, %v3056_v46 }
 0x38f   : > { %v3088_v13 = vadd.f32 %v3087_v5, %v3057_v1 }
 0x391   : > { %v3089_v37 = vadd.f32 %v3088_v13, %v3058_v35 }
 0x393   : > { %v3090_v45 = vrot.slane %v3089_v37, 4 }
 0x395   : > { %v3091_v40 = vadd.f32 %v3090_v45, %v3089_v37 }
 0x397   : > { %v3092_v44 = vrot.slane %v3091_v40, 2 }
 0x399   : > { %v3093_v58 = vadd.f32 %v3092_v44, %v3091_v40 }
 0x39b   : > { %v3094_v19 = vrot.slane %v3093_v58, 1 }
 0x39d   : > { %v3095_v42 = vadd.f32 %v3094_v19, %v3093_v58 }
 0x39f   : > { %v3096_v29 = vmul.f32 0.00390625, %v3095_v42 }
 0x3a1   : > { %v3097_v23 = vadd.f32 1e-05, %v3096_v29 }
 0x3a3   : > { %8834 = vrsqrt.f32 %v3097_v23 }
 0x3ad   : > { %v8835_v28 = vpop.eup %8834 }
 0x3ae   : > { %v3101_v12 = vmul.f32 %v8835_v28, %v9783_v33  ;;  %v3102_v9 = vmul.f32 %v8835_v28, %v9793_v43  ;;  %v3099_v15 = vmul.f32 %v8835_v28, %v9774_v16  ;;  %v3100_v31 = vmul.f32 %v8835_v28, %v9777_v4 }
 0x3af   : > { %v3103_v14 = vmul.f32 %v8835_v28, %v9796_v34  ;;  %v3104_v62 = vmul.f32 %v8835_v28, %v9804_v30  ;;  %v9883_v60 = vmul.f32 %v8835_v28, %v9765_v27  ;;  %v9886_v61 = vmul.f32 %v8835_v28, %v9767_v2 }
 0x3b0   : > { %v3133_v32 = vmax.f32 %v3101_v12, 0.0  ;;  %v3134_v55 = vmax.f32 %v3102_v9, 0.0  ;;  %v3131_v38 = vmax.f32 %v3099_v15, 0.0  ;;  %v3132_v33 = vmax.f32 %v3100_v31, 0.0 }
 0x3b1   : > { %v3135_v39 = vmax.f32 %v3103_v14, 0.0  ;;  %v3136_v43 = vmax.f32 %v3104_v62, 0.0  ;;  %v3159_v16 = vmax.f32 %v9883_v60, 0.0  ;;  %v3160_v4 = vmax.f32 %v9886_v61, 0.0 }
 0x3b2   : > { %v9888_v47 = vpack.c.bf16 %v3134_v55, %v3133_v32  ;;  %v3105_v34 = vmul.f32 %v8835_v28, %v9809_v24  ;;  %v3106_v30 = vmul.f32 %v8835_v28, %v9819_v8  ;;  %v3107_v27 = vmul.f32 %v8835_v28, %v9708_v56 }
 0x3b3   : > { %v3108_v3 = vmul.f32 %v8835_v28, %v9711_v25  ;;  %v3109_v2 = vmul.f32 %v8835_v28, %v9714_v20  ;;  %v3110_v11 = vmul.f32 %v8835_v28, %v9717_v10  ;;  %v3111_v46 = vmul.f32 %v8835_v28, %v9720_v17 }
 0x3b4   : > { %v3163_v53 = vpack.c.bf16 %v3132_v33, %v3131_v38  ;;  %v9899_v1 = vpack.c.bf16 %v3136_v43, %v3135_v39  ;;  %v3112_v5 = vmul.f32 %v8835_v28, %v9723_v63  ;;  %v9903_v35 = vmul.f32 %v8835_v28, %v9726_v18  ;;  %v8780_v43 = vld [vmem:[%s11323_s3 + $0x190] sm:$0xff]  }
 0x3b5   : > { %v9906_v24 = vmul.f32 %v8835_v28, %v9729_v41  ;;  %v3180_v56 = vshrl.u32 %v9888_v47, 16  ;;  %v9910_v25 = vmul.f32 %v8835_v28, %v9732_v57  ;;  %v9913_v20 = vmul.f32 %v8835_v28, %v9735_v0 }
 0x3b6   : > { %v9916_v10 = vmul.f32 %v8835_v28, %v9738_v51  ;;  %v9919_v17 = vmul.f32 %v8835_v28, %v9741_v48  ;;  %v9922_v63 = vmul.f32 %v8835_v28, %v9747_v49  ;;  %v9925_v18 = vmul.f32 %v8835_v28, %v9750_v54 }
 0x3b7   : > { %v3137_v41 = vmax.f32 %v3105_v34, 0.0  ;;  %v3138_v8 = vmax.f32 %v3106_v30, 0.0  ;;  %v3139_v13 = vmax.f32 %v3107_v27, 0.0  ;;  %v3140_v57 = vmax.f32 %v3108_v3, 0.0 }
 0x3b8   : > { %v3183_v37 = vshrl.u32 %v3163_v53, 16  ;;  %v3186_v0 = vshrl.u32 %v9899_v1, 16  ;;  %v9929_v45 = vmul.f32 %v8835_v28, %v9753_v50  ;;  %v9932_v51 = vmul.f32 %v8835_v28, %v9755_v52 }
 0x3b9   : > { %v9935_v48 = vmul.f32 %v8835_v28, %v9757_v59  ;;  %v3243_v49 = vrot.slane %v3180_v56, 7  ;;  %v9938_v54 = vmul.f32 %v8835_v28, %v9759_v21  ;;  %v9941_v40 = vmul.f32 %v8835_v28, %v9761_v22 }
 0x3ba   : > { %v9944_v44 = vmul.f32 %v8835_v28, %v9763_v26  ;;  %v9947_v58 = vmul.f32 %v8835_v28, %v9769_v6  ;;  %v9950_v50 = vmul.f32 %v8835_v28, %v9771_v7  ;;  %v3141_v52 = vmax.f32 %v3109_v2, 0.0 }
 0x3bb   : > { %v9952_v19 = vpack.c.bf16 %v3138_v8, %v3137_v41  ;;  %v3244_v59 = vshll.u32 %v9888_v47, 16  ;;  %v3142_v42 = vmax.f32 %v3110_v11, 0.0  ;;  %v9955_v21 = vpack.c.bf16 %v3140_v57, %v3139_v13  ;;  %v8772_v57 = vld [vmem:[%s11323_s3 + $0x10] sm:$0xff]  }
 0x3bc   : > { %v3247_v29 = vrot.slane %v3183_v37, 7  ;;  %v3251_v22 = vrot.slane %v3186_v0, 7  ;;  %v3143_v23 = vmax.f32 %v3111_v46, 0.0  ;;  %v3144_v12 = vmax.f32 %v3112_v5, 0.0 }
 0x3bd   : > { %v3145_v26 = vmax.f32 %v9903_v35, 0.0  ;;  %v3246_v9 = vor.u32 %v3244_v59, %v3243_v49  ;;  %v3146_v6 = vmax.f32 %v9906_v24, 0.0  ;;  %v3147_v7 = vmax.f32 %v9910_v25, 0.0 }
 0x3be   : > { %v3248_v28 = vshll.u32 %v3163_v53, 16  ;;  %v3252_v15 = vshll.u32 %v9899_v1, 16  ;;  %v3148_v31 = vmax.f32 %v9913_v20, 0.0  ;;  %v3149_v14 = vmax.f32 %v9916_v10, 0.0  ;;  %v8771_v53 = vld [vmem:[%s11323_s3 + $0x8] sm:$0xff]  }
 0x3bf   : > { %v3150_v62 = vmax.f32 %v9919_v17, 0.0  ;;  %v3189_v32 = vshrl.u32 %v9952_v19, 16  ;;  %v3151_v55 = vmax.f32 %v9922_v63, 0.0  ;;  %v3192_v38 = vshrl.u32 %v9955_v21, 16 }
 0x3c0   : > { %v3254_v33 = vor.u32 %v3252_v15, %v3251_v22  ;;  %v3250_v39 = vor.u32 %v3248_v28, %v3247_v29  ;;  %v9973_v47 = vpack.c.bf16 %v3142_v42, %v3141_v52  ;;  %v3256_v34 = vshll.u32 %v9952_v19, 16 }
 0x3c1   : > { %v3339_v30 = vrot.slane %v3244_v59, 7  ;;  %v9978_v27 = vsel %vm9969_vm4, %v3180_v56, %v3246_v9  ;;  %v9980_v3 = vpack.c.bf16 %v3144_v12, %v3143_v23  ;;  %v3340_v2 = vrot.slane %v3248_v28, 7 }
 0x3c2   : > { %v3341_v11 = vrot.slane %v3252_v15, 7  ;;  %v9984_v46 = vsel %vm9969_vm4, %v3183_v37, %v3250_v39  ;;  %v3152_v1 = vmax.f32 %v9925_v18, 0.0  ;;  %v3153_v5 = vmax.f32 %v9929_v45, 0.0 }
 0x3c3   : > { %v3255_v35 = vrot.slane %v3189_v32, 7  ;;  %v3260_v24 = vshll.u32 %v9955_v21, 16  ;;  %7753 = vmatprep.mubr.bf16.mxu1 %v9984_v46  ;;  %v3154_v56 = vmax.f32 %v9932_v51, 0.0  ;;  %v9994_v25 = vpack.c.bf16 %v3146_v6, %v3145_v26  ;;  %v8773_v6 = vld [vmem:[%s11323_s3 + $0x18] sm:$0xff]  }
 0x3c4   : > { %v3259_v20 = vrot.slane %v3192_v38, 7  ;;  %7754 = vmatmul.mubr.bf16.vlgmr.msra.gmra.mrb[0].mxu1 %v9978_v27  ;;  %v10001_v10 = vsel %vm9969_vm4, %v3186_v0, %v3254_v33  ;;  %v3195_v17 = vshrl.u32 %v9973_v47, 16  ;;  %v3264_v63 = vshll.u32 %v9973_v47, 16 }
 0x3c5   : > { %v3342_v18 = vrot.slane %v3256_v34, 7  ;;  %7757 = vmatprep.mubr.bf16.mxu1 %v10001_v10  ;;  %7786 = vmatpush3.bf16.msra.mxu1 %v9816_v36  ;;  %v10009_v41 = vsel %vm9969_vm4, %v3243_v49, %v3339_v30  ;;  %v10011_v8 = vpack.c.bf16 %v3148_v31, %v3147_v7  ;;  %v3198_v13 = vshrl.u32 %v9980_v3, 16 }
 0x3c6   : > { %7787 = vmatprep.subr.bf16.mxu1 %v8771_v53  ;;  %v10019_v37 = vsel %vm9969_vm4, %v3247_v29, %v3340_v2  ;;  %v10023_v36 = vsel %vm9969_vm4, %v3251_v22, %v3341_v11  ;;  %v3155_v0 = vmax.f32 %v9935_v48, 0.0  ;;  %v3258_v45 = vor.u32 %v3256_v34, %v3255_v35  ;;  %v8774_v2 = vld [vmem:[%s11323_s3 + $0x20] sm:$0xff]  }
 0x3c7   : > { %v3268_v51 = vshll.u32 %v9980_v3, 16  ;;  %v3343_v49 = vrot.slane %v3260_v24, 7  ;;  %v3156_v52 = vmax.f32 %v9938_v54, 0.0  ;;  %v10028_v19 = vpack.c.bf16 %v3150_v62, %v3149_v14 }
 0x3c8   : > { %v3201_v59 = vshrl.u32 %v9994_v25, 16  ;;  %v3262_v42 = vor.u32 %v3260_v24, %v3259_v20  ;;  %v3263_v29 = vrot.slane %v3195_v17, 7  ;;  %v3272_v23 = vshll.u32 %v9994_v25, 16 }
 0x3c9   : > { %v3344_v22 = vrot.slane %v3264_v63, 7  ;;  %7788 = vmatpush3.bf16.msra.mxu1 %v8771_v53  ;;  %v10036_v48 = vsel %vm9969_vm4, %v3255_v35, %v3342_v18  ;;  %v3157_v12 = vmax.f32 %v9941_v40, 0.0  ;;  %v10039_v26 = vpack.c.bf16 %v3152_v1, %v3151_v55 }
 0x3ca   : > { %v3204_v54 = vshrl.u32 %v10011_v8, 16  ;;  %v3267_v9 = vrot.slane %v3198_v13, 7  ;;  %7789 = vmatprep.subr.bf16.mxu1 %v8772_v57  ;;  %v3276_v7 = vshll.u32 %v10011_v8, 16  ;;  %v3345_v28 = vrot.slane %v3268_v51, 7 }
 0x3cb   : > { %v10050_v15 = vsel %vm9969_vm4, %v3189_v32, %v3258_v45  ;;  %v10054_v40 = vsel %vm9969_vm4, %v3259_v20, %v3343_v49  ;;  %v3158_v31 = vmax.f32 %v9944_v44, 0.0  ;;  %v10057_v14 = vpack.c.bf16 %v3154_v56, %v3153_v5 }
 0x3cc   : > { %v3207_v62 = vshrl.u32 %v10028_v19, 16  ;;  %7758 = vmatmul.mubr.bf16.gmra.mrb[4].mxu1 %v10050_v15  ;;  %v10065_v55 = vsel %vm9969_vm4, %v3192_v38, %v3262_v42  ;;  %v3271_v32 = vrot.slane %v3201_v59, 7  ;;  %v3280_v33 = vshll.u32 %v10028_v19, 16 }
 0x3cd   : > { %v3346_v44 = vrot.slane %v3272_v23, 7  ;;  %7761 = vmatprep.mubr.bf16.mxu1 %v10065_v55  ;;  %7790 = vmatpush3.bf16.msra.mxu1 %v8772_v57  ;;  %v10075_v39 = vsel %vm9969_vm4, %v3263_v29, %v3344_v22  ;;  %v3161_v21 = vmax.f32 %v9947_v58, 0.0  ;;  %v10078_v34 = vpack.c.bf16 %v3156_v52, %v3155_v0 }
 0x3ce   : > { %v3210_v38 = vshrl.u32 %v10039_v26, 16  ;;  %v3266_v30 = vor.u32 %v3264_v63, %v3263_v29  ;;  %7791 = vmatprep.subr.bf16.mxu1 %v8773_v6  ;;  %v3275_v11 = vrot.slane %v3204_v54, 7  ;;  %v3284_v53 = vshll.u32 %v10039_v26, 16 }
 0x3cf   : > { %v3347_v1 = vrot.slane %v3276_v7, 7  ;;  %v10089_v5 = vsel %vm9969_vm4, %v3267_v9, %v3345_v28  ;;  %v3162_v58 = vmax.f32 %v9950_v50, 0.0  ;;  %v10092_v35 = vpack.c.bf16 %v3158_v31, %v3157_v12  ;;  %v8776_v12 = vld [vmem:[%s11323_s3 + $0x30] sm:$0xff]  }
 0x3d0   : > { %v3213_v24 = vshrl.u32 %v10057_v14, 16  ;;  %v3270_v56 = vor.u32 %v3268_v51, %v3267_v9  ;;  %v3279_v20 = vrot.slane %v3207_v62, 7  ;;  %v3288_v63 = vshll.u32 %v10057_v14, 16  ;;  %v8775_v51 = vld [vmem:[%s11323_s3 + $0x28] sm:$0xff]  }
 0x3d1   : > { %v3348_v18 = vrot.slane %v3280_v33, 7  ;;  %7792 = vmatpush3.bf16.msra.mxu1 %v8773_v6  ;;  %v10102_v57 = vsel %vm9969_vm4, %v3271_v32, %v3346_v44  ;;  %v10108_v50 = vpack.c.bf16 %v3160_v4, %v3159_v16  ;;  %v3216_v0 = vshrl.u32 %v10078_v34, 16 }
 0x3d2   : > { %v3283_v45 = vrot.slane %v3210_v38, 7  ;;  %7793 = vmatprep.subr.bf16.mxu1 %v8774_v2  ;;  %v3292_v49 = vshll.u32 %v10078_v34, 16  ;;  %v3349_v52 = vrot.slane %v3284_v53, 7  ;;  %v10123_v60 = vsel %vm9969_vm4, %v3195_v17, %v3266_v30 }
 0x3d3   : > { %v10127_v61 = vsel %vm9969_vm4, %v3275_v11, %v3347_v1  ;;  %v10129_v16 = vpack.c.bf16 %v3162_v58, %v3161_v21  ;;  %v3219_v4 = vshrl.u32 %v10092_v35, 16  ;;  %v10137_v42 = vsel %vm9969_vm4, %v3198_v13, %v3270_v56 }
 0x3d4   : > { %7762 = vmatmul.mubr.bf16.gmra.mrb[8].mxu1 %v10123_v60  ;;  %v3287_v47 = vrot.slane %v3213_v24, 7  ;;  %v3296_v17 = vshll.u32 %v10092_v35, 16  ;;  %v3350_v29 = vrot.slane %v3288_v63, 7  ;;  %v10147_v22 = vsel %vm9969_vm4, %v3279_v20, %v3348_v18 }
 0x3d5   : > { %7765 = vmatprep.mubr.bf16.mxu1 %v10137_v42  ;;  %7794 = vmatpush3.bf16.msra.mxu1 %v8774_v2  ;;  %v3222_v3 = vshrl.u32 %v10108_v50, 16  ;;  %v3300_v13 = vshll.u32 %v10108_v50, 16  ;;  %v3274_v9 = vor.u32 %v3272_v23, %v3271_v32  ;;  %v3291_v6 = vrot.slane %v3216_v0, 7  ;;  %v8777_v23 = vld [vmem:[%s11323_s3 + $0x38] sm:$0xff]  }
 0x3d6   : > { %7795 = vmatprep.subr.bf16.mxu1 %v8775_v51  ;;  %v3351_v28 = vrot.slane %v3292_v49, 7  ;;  %v10160_v31 = vsel %vm9969_vm4, %v3283_v45, %v3349_v52  ;;  %v3225_v44 = vshrl.u32 %v10129_v16, 16  ;;  %v3278_v21 = vor.u32 %v3276_v7, %v3275_v11 }
 0x3d7   : > { %v3295_v30 = vrot.slane %v3219_v4, 7  ;;  %v3304_v2 = vshll.u32 %v10129_v16, 16  ;;  %v3352_v1 = vrot.slane %v3296_v17, 7  ;;  %v10166_v58 = vsel %vm9969_vm4, %v3287_v47, %v3350_v29  ;;  %v8786_v29 = vld [vmem:[%s11323_s3 + $0x40] sm:$0xff]  }
 0x3d8   : > { %v3299_v32 = vrot.slane %v3222_v3, 7  ;;  %v3353_v35 = vrot.slane %v3300_v13, 7  ;;  %v10175_v7 = vsel %vm9969_vm4, %v3201_v59, %v3274_v9  ;;  %v10179_v11 = vsel %vm9969_vm4, %v3291_v6, %v3351_v28  ;;  %v8778_v59 = vld [vmem:[%s11323_s3 + $0x180] sm:$0xff]   ;;  %v8792_v28 = vld [vmem:[%s11323_s3 + $0x70] sm:$0xff]  }
 0x3d9   : > { %7796 = vmatpush3.bf16.msra.mxu1 %v8775_v51  ;;  %v10186_v56 = vsel %vm9969_vm4, %v3204_v54, %v3278_v21  ;;  %v3303_v18 = vrot.slane %v3225_v44, 7  ;;  %v3354_v50 = vrot.slane %v3304_v2, 7  ;;  %v10191_v25 = vsel %vm9969_vm4, %v3295_v30, %v3352_v1  ;;  %v8790_v9 = vld [vmem:[%s11323_s3 + $0x60] sm:$0xff]  }
 0x3da   : > { %7797 = vmatprep.subr.bf16.mxu1 %v8776_v12  ;;  %v3282_v8 = vor.u32 %v3280_v33, %v3279_v20  ;;  %v10200_v54 = vsel %vm9969_vm4, %v3299_v32, %v3353_v35  ;;  %v3286_v51 = vor.u32 %v3284_v53, %v3283_v45  ;;  %v3290_v53 = vor.u32 %v3288_v63, %v3287_v47  ;;  %v8781_v45 = vld [vmem:[%s11323_s3 + $0x198] sm:$0xff]   ;;  %v8784_v47 = vld [vmem:[%s11323_s3 + $0x1b0] sm:$0xff]   ;;  %v8794_v21 = vld [vmem:[%s11323_s3 + $0x100] sm:$0xff]  }
 0x3db   : > { %v10206_v52 = vsel %vm9969_vm4, %v3303_v18, %v3354_v50  ;;  %v3294_v20 = vor.u32 %v3292_v49, %v3291_v6  ;;  %v3306_v34 = vor.u32 %v3304_v2, %v3303_v18  ;;  %v8782_v49 = vld [vmem:[%s11323_s3 + $0x1a0] sm:$0xff]   ;;  %v8791_v6 = vld [vmem:[%s11323_s3 + $0x68] sm:$0xff]   ;;  %v4116_v1 = vshrl.u32 %v9978_v27, 16 }
 0x3dc   : > { %7766 = vmatmul.mubr.bf16.gmra.mrb[12].mxu1 %v10175_v7  ;;  %v10212_v16 = vsel %vm9969_vm4, %v3207_v62, %v3282_v8  ;;  %v10219_v33 = vsel %vm9969_vm4, %v3210_v38, %v3286_v51  ;;  %v10228_v19 = vsel %vm9969_vm4, %v3213_v24, %v3290_v53  ;;  %v3298_v62 = vor.u32 %v3296_v17, %v3295_v30  ;;  %v8785_v17 = vld [vmem:[%s11323_s3 + $0x1b8] sm:$0xff]  }
 0x3dd   : > { %7769 = vmatprep.mubr.bf16.mxu1 %v10186_v56  ;;  %7798 = vmatpush3.bf16.msra.mxu1 %v8776_v12  ;;  %v10235_v26 = vsel %vm9969_vm4, %v3216_v0, %v3294_v20  ;;  %v3302_v38 = vor.u32 %v3300_v13, %v3299_v32  ;;  %v10250_v24 = vsel %vm9969_vm4, %v3225_v44, %v3306_v34  ;;  %v8779_v0 = vld [vmem:[%s11323_s3 + $0x188] sm:$0xff]   ;;  %v8788_v13 = vld [vmem:[%s11323_s3 + $0x50] sm:$0xff]   ;;  %v8789_v12 = vld [vmem:[%s11323_s3 + $0x58] sm:$0xff]   ;;  %v4118_v30 = vshll.u32 %v9978_v27, 16 }
 0x3de   : > { %7799 = vmatprep.subr.bf16.mxu1 %v8777_v23  ;;  %v10240_v63 = vsel %vm9969_vm4, %v3219_v4, %v3298_v62  ;;  %v8783_v4 = vld [vmem:[%s11323_s3 + $0x1a8] sm:$0xff]   ;;  %v8793_v44 = vld [vmem:[%s11323_s3 + $0x78] sm:$0xff]   ;;  %v4130_v32 = vshll.u32 %v9984_v46, 16  ;;  %v4128_v8 = vshrl.u32 %v9984_v46, 16  ;;  %v4135_v51 = vshll.u32 %v10019_v37, 16 }
 0x3df   : > { %v10245_v14 = vsel %vm9969_vm4, %v3222_v3, %v3302_v38  ;;  %v8787_v3 = vld [vmem:[%s11323_s3 + $0x48] sm:$0xff]   ;;  %v4120_v2 = vrot.slane %v4118_v30, 1  ;;  %v4142_v20 = vshll.u32 %v10001_v10, 16  ;;  %v4154_v62 = vshll.u32 %v10050_v15, 16 }
 0x3e0   : > { %v4132_v50 = vrot.slane %v4130_v32, 1  ;;  %v4137_v38 = vrot.slane %v4135_v51, 1  ;;  %v8795_v34 = vld [vmem:[%s11323_s3 + $0x108] sm:$0xff]   ;;  %v4171_v32 = vshll.u32 %v10054_v40, 16  ;;  %v4190_v51 = vshll.u32 %v10137_v42, 16 }
 0x3e1   : > { %7800 = vmatpush3.bf16.msra.mxu1 %v8777_v23  ;;  %v4123_v23 = vshll.u32 %v10009_v41, 16  ;;  %v4121_v35 = vor.u32 %v4120_v2, %v4116_v1 }
 0x3e2   : > { %7833 = vmatprep.subr.bf16.mxu1 %v8778_v59  ;;  %v4133_v53 = vor.u32 %v4132_v50, %v4128_v8  ;;  %v8798_v50 = vld [vmem:[%s11323_s3 + $0x120] sm:$0xff]  }
 0x3e3   : > { %v4125_v18 = vrot.slane %v4123_v23, 1  ;;  %v4164_v23 = vshrl.u32 %v10065_v55, 16 }
 0x3e4   : > { %7770 = vmatmul.mubr.bf16.gmra.mrb[16].mxu1 %v10212_v16 }
 0x3e5   : > { %7773 = vmatprep.mubr.bf16.mxu1 %v10219_v33 }
 0x3ec   : > { %7774 = vmatmul.mubr.bf16.gmra.mrb[20].mxu1 %v10228_v19 }
 0x3ed   : > { %7777 = vmatprep.mubr.bf16.mxu1 %v10235_v26 }
 0x3f4   : > { %7778 = vmatmul.mubr.bf16.gmra.mrb[24].mxu1 %v10240_v63 }
 0x3f5   : > { %7781 = vmatprep.mubr.bf16.mxu1 %v10245_v14 }
 0x3fc   : > { %7782 = vmatmul.mubr.bf16.gmra.mrb[28].mxu1 %v10250_v24 }
 0x3fd   : > { %7801 = vmatprep.mubr.bf16.mxu1 %v9978_v27 }
 0x404   : > { %7802 = vmatmul.mubr.bf16.vlgmr.msra.gmra.mrb[0].mxu1 %v9984_v46 }
 0x405   : > { %7805 = vmatprep.mubr.bf16.mxu1 %v9978_v27  ;;  %7834 = vmatpush3.bf16.msra.mxu1 %v8778_v59  ;;  %v10338_v59 = vsel %vm1025_vm0, %v4121_v35, %v4125_v18  ;;  %v4176_v35 = vshrl.u32 %v10123_v60, 16  ;;  %v4183_v18 = vshll.u32 %v10075_v39, 16 }
 0x406   : > { %7835 = vmatprep.subr.bf16.mxu1 %v8779_v0 }
 0x409   : > { %7836 = vmatpush3.bf16.msra.mxu1 %v8779_v0  ;;  %v10349_v0 = vsel %vm1025_vm0, %v4133_v53, %v4137_v38  ;;  %v4185_v38 = vrot.slane %v4183_v18, 1 }
 0x40a   : > { %7837 = vmatprep.subr.bf16.mxu1 %v8780_v43 }
 0x40c   : > { %7806 = vmatmul.mubr.bf16.gmra.mrb[4].mxu1 %v10001_v10 }
 0x40d   : > { %7809 = vmatprep.mubr.bf16.mxu1 %v10050_v15  ;;  %7838 = vmatpush3.bf16.msra.mxu1 %v8780_v43  ;;  %v4144_v43 = vrot.slane %v4142_v20, 1  ;;  %v4202_v20 = vshll.u32 %v10175_v7, 16 }
 0x40e   : > { %7839 = vmatprep.subr.bf16.mxu1 %v8781_v45 }
 0x411   : > { %7840 = vmatpush3.bf16.msra.mxu1 %v8781_v45  ;;  %v4156_v45 = vrot.slane %v4154_v62, 1  ;;  %v4173_v62 = vrot.slane %v4171_v32, 1 }
 0x412   : > { %7841 = vmatprep.subr.bf16.mxu1 %v8782_v49 }
 0x414   : > { %7810 = vmatmul.mubr.bf16.gmra.mrb[8].mxu1 %v10065_v55 }
 0x415   : > { %7813 = vmatprep.mubr.bf16.mxu1 %v10123_v60  ;;  %7842 = vmatpush3.bf16.msra.mxu1 %v8782_v49  ;;  %v4140_v49 = vshrl.u32 %v10001_v10, 16 }
 0x416   : > { %7843 = vmatprep.subr.bf16.mxu1 %v8783_v4 }
 0x419   : > { %7844 = vmatpush3.bf16.msra.mxu1 %v8783_v4  ;;  %v4147_v4 = vshll.u32 %v10023_v36, 16 }
 0x41a   : > { %7845 = vmatprep.subr.bf16.mxu1 %v8784_v47 }
 0x41c   : > { %7814 = vmatmul.mubr.bf16.gmra.mrb[12].mxu1 %v10137_v42 }
 0x41d   : > { %7817 = vmatprep.mubr.bf16.mxu1 %v10175_v7  ;;  %7846 = vmatpush3.bf16.msra.mxu1 %v8784_v47  ;;  %v4152_v47 = vshrl.u32 %v10050_v15, 16 }
 0x41e   : > { %7847 = vmatprep.subr.bf16.mxu1 %v8785_v17 }
 0x421   : > { %7848 = vmatpush3.bf16.msra.mxu1 %v8785_v17  ;;  %v4159_v17 = vshll.u32 %v10036_v48, 16 }
 0x422   : > { %7881 = vmatprep.subr.bf16.mxu1 %v8786_v29 }
 0x424   : > { %7818 = vmatmul.mubr.bf16.gmra.mrb[16].mxu1 %v10186_v56 }
 0x425   : > { %7821 = vmatprep.mubr.bf16.mxu1 %v10212_v16 }
 0x42c   : > { %7822 = vmatmul.mubr.bf16.gmra.mrb[20].mxu1 %v10219_v33 }
 0x42d   : > { %7825 = vmatprep.mubr.bf16.mxu1 %v10228_v19 }
 0x434   : > { %7826 = vmatmul.mubr.bf16.gmra.mrb[24].mxu1 %v10235_v26 }
 0x435   : > { %7829 = vmatprep.mubr.bf16.mxu1 %v10240_v63 }
 0x43c   : > { %7830 = vmatmul.mubr.bf16.gmra.mrb[28].mxu1 %v10245_v14 }
 0x43d   : > { %7849 = vmatprep.mubr.bf16.mxu1 %v9978_v27 }
 0x444   : > { %7850 = vmatmul.mubr.bf16.vlgmr.msra.gmra.mrb[0].mxu1 %v10001_v10 }
 0x445   : > { %7853 = vmatprep.mubr.bf16.mxu1 %v10050_v15  ;;  %7882 = vmatpush3.bf16.msra.mxu1 %v8786_v29  ;;  %v8796_v29 = vld [vmem:[%s11323_s3 + $0x110] sm:$0xff]  }
 0x446   : > { %7883 = vmatprep.subr.bf16.mxu1 %v8787_v3 }
 0x449   : > { %7884 = vmatpush3.bf16.msra.mxu1 %v8787_v3  ;;  %v4145_v3 = vor.u32 %v4144_v43, %v4140_v49 }
 0x44a   : > { %7885 = vmatprep.subr.bf16.mxu1 %v8788_v13 }
 0x44c   : > { %7854 = vmatmul.mubr.bf16.gmra.mrb[4].mxu1 %v10065_v55 }
 0x44d   : > { %7857 = vmatprep.mubr.bf16.mxu1 %v10123_v60  ;;  %7886 = vmatpush3.bf16.msra.mxu1 %v8788_v13  ;;  %v4166_v13 = vshll.u32 %v10065_v55, 16 }
 0x44e   : > { %7887 = vmatprep.subr.bf16.mxu1 %v8789_v12 }
 0x44f   : > { %v4168_v30 = vrot.slane %v4166_v13, 1  ;;  %v8800_v13 = vld [vmem:[%s11323_s3 + $0x130] sm:$0xff]  }
 0x451   : > { %7888 = vmatpush3.bf16.msra.mxu1 %v8789_v12  ;;  %v4157_v12 = vor.u32 %v4156_v45, %v4152_v47  ;;  %v4169_v8 = vor.u32 %v4168_v30, %v4164_v23  ;;  %v4192_v45 = vrot.slane %v4190_v51, 1  ;;  %v4188_v47 = vshrl.u32 %v10137_v42, 16 }
 0x452   : > { %7889 = vmatprep.subr.bf16.mxu1 %v8790_v9  ;;  %v4224_v51 = vshrl.u32 %v10212_v16, 16 }
 0x453   : > { %v10386_v43 = vsel %vm1025_vm0, %v4169_v8, %v4173_v62  ;;  %v4219_v8 = vshll.u32 %v10127_v61, 16 }
 0x454   : > { %7858 = vmatmul.mubr.bf16.gmra.mrb[8].mxu1 %v10137_v42 }
 0x455   : > { %7861 = vmatprep.mubr.bf16.mxu1 %v10175_v7  ;;  %7890 = vmatpush3.bf16.msra.mxu1 %v8790_v9  ;;  %v4178_v9 = vshll.u32 %v10123_v60, 16 }
 0x456   : > { %7891 = vmatprep.subr.bf16.mxu1 %v8791_v6 }
 0x457   : > { %v4180_v1 = vrot.slane %v4178_v9, 1  ;;  %v4214_v9 = vshll.u32 %v10186_v56, 16 }
 0x459   : > { %7892 = vmatpush3.bf16.msra.mxu1 %v8791_v6  ;;  %v4149_v6 = vrot.slane %v4147_v4, 1  ;;  %v4181_v53 = vor.u32 %v4180_v1, %v4176_v35  ;;  %v4204_v4 = vrot.slane %v4202_v20, 1  ;;  %v8801_v1 = vld [vmem:[%s11323_s3 + $0x138] sm:$0xff]   ;;  %v4216_v32 = vrot.slane %v4214_v9, 1  ;;  %v8802_v20 = vld [vmem:[%s11323_s3 + $0x1c0] sm:$0xff]  }
 0x45a   : > { %7893 = vmatprep.subr.bf16.mxu1 %v8792_v28  ;;  %v4243_v9 = vshll.u32 %v10160_v31, 16 }
 0x45b   : > { %v10390_v49 = vsel %vm1025_vm0, %v4181_v53, %v4185_v38  ;;  %v4231_v53 = vshll.u32 %v10147_v22, 16  ;;  %v4238_v38 = vshll.u32 %v10219_v33, 16 }
 0x45c   : > { %7862 = vmatmul.mubr.bf16.gmra.mrb[12].mxu1 %v10186_v56 }
 0x45d   : > { %7865 = vmatprep.mubr.bf16.mxu1 %v10212_v16  ;;  %7894 = vmatpush3.bf16.msra.mxu1 %v8792_v28  ;;  %v4161_v28 = vrot.slane %v4159_v17, 1  ;;  %v4195_v17 = vshll.u32 %v10089_v5, 16 }
 0x45e   : > { %7895 = vmatprep.subr.bf16.mxu1 %v8793_v44 }
 0x45f   : > { %v10370_v2 = vsel %vm1025_vm0, %v4157_v12, %v4161_v28  ;;  %v4193_v12 = vor.u32 %v4192_v45, %v4188_v47  ;;  %v4226_v28 = vshll.u32 %v10212_v16, 16  ;;  %v4250_v45 = vshll.u32 %v10228_v19, 16 }
 0x460   : > { %v4233_v47 = vrot.slane %v4231_v53, 1 }
 0x461   : > { %7896 = vmatpush3.bf16.msra.mxu1 %v8793_v44  ;;  %v8797_v44 = vld [vmem:[%s11323_s3 + $0x118] sm:$0xff]   ;;  %v4228_v18 = vrot.slane %v4226_v28, 1  ;;  %v4255_v28 = vshll.u32 %v10166_v58, 16 }
 0x462   : > { %7929 = vmatprep.subr.bf16.mxu1 %v8794_v21 }
 0x464   : > { %7866 = vmatmul.mubr.bf16.gmra.mrb[16].mxu1 %v10219_v33 }
 0x465   : > { %7869 = vmatprep.mubr.bf16.mxu1 %v10228_v19 }
 0x46c   : > { %7870 = vmatmul.mubr.bf16.gmra.mrb[20].mxu1 %v10235_v26 }
 0x46d   : > { %7873 = vmatprep.mubr.bf16.mxu1 %v10240_v63 }
 0x474   : > { %7874 = vmatmul.mubr.bf16.gmra.mrb[24].mxu1 %v10245_v14 }
 0x475   : > { %7877 = vmatprep.mubr.bf16.mxu1 %v10250_v24 }
 0x47c   : > { %7878 = vmatmul.mubr.bf16.gmra.mrb[28].mxu1 %v10245_v14 }
 0x47d   : > { %7897 = vmatprep.mubr.bf16.mxu1 %v10338_v59 }
 0x484   : > { %7898 = vmatmul.mubr.bf16.vlgmr.msra.gmra.mrb[0].mxu1 %v10349_v0 }
 0x485   : > { %7901 = vmatprep.mubr.bf16.mxu1 %v10338_v59  ;;  %7930 = vmatpush3.bf16.msra.mxu1 %v8794_v21  ;;  %v10366_v21 = vsel %vm1025_vm0, %v4145_v3, %v4149_v6  ;;  %v4207_v3 = vshll.u32 %v10102_v57, 16 }
 0x486   : > { %7931 = vmatprep.subr.bf16.mxu1 %v8795_v34 }
 0x487   : > { %v4209_v30 = vrot.slane %v4207_v3, 1 }
 0x489   : > { %7932 = vmatpush3.bf16.msra.mxu1 %v8795_v34  ;;  %v8799_v34 = vld [vmem:[%s11323_s3 + $0x128] sm:$0xff]  }
 0x48a   : > { %7933 = vmatprep.subr.bf16.mxu1 %v8796_v29 }
 0x48c   : > { %7902 = vmatmul.mubr.bf16.gmra.mrb[4].mxu1 %v10366_v21 }
 0x48d   : > { %7905 = vmatprep.mubr.bf16.mxu1 %v10370_v2  ;;  %7934 = vmatpush3.bf16.msra.mxu1 %v8796_v29  ;;  %v4200_v29 = vshrl.u32 %v10175_v7, 16 }
 0x48e   : > { %7935 = vmatprep.subr.bf16.mxu1 %v8797_v44 }
 0x48f   : > { %v4205_v6 = vor.u32 %v4204_v4, %v4200_v29  ;;  %v4221_v4 = vrot.slane %v4219_v8, 1  ;;  %v4240_v29 = vrot.slane %v4238_v38, 1  ;;  %v4260_v38 = vshrl.u32 %v10235_v26, 16 }
 0x491   : > { %7936 = vmatpush3.bf16.msra.mxu1 %v8797_v44  ;;  %v4197_v44 = vrot.slane %v4195_v17, 1  ;;  %v10410_v35 = vsel %vm1025_vm0, %v4205_v6, %v4209_v30  ;;  %v4248_v6 = vshrl.u32 %v10228_v19, 16  ;;  %v4262_v30 = vshll.u32 %v10235_v26, 16 }
 0x492   : > { %7937 = vmatprep.subr.bf16.mxu1 %v8798_v50 }
 0x493   : > { %v10406_v23 = vsel %vm1025_vm0, %v4193_v12, %v4197_v44  ;;  %v4236_v12 = vshrl.u32 %v10219_v33, 16 }
 0x494   : > { %7906 = vmatmul.mubr.bf16.gmra.mrb[8].mxu1 %v10386_v43 }
 0x495   : > { %7909 = vmatprep.mubr.bf16.mxu1 %v10390_v49  ;;  %7938 = vmatpush3.bf16.msra.mxu1 %v8798_v50  ;;  %v4212_v50 = vshrl.u32 %v10186_v56, 16  ;;  %v4241_v44 = vor.u32 %v4240_v29, %v4236_v12  ;;  %v4286_v29 = vshll.u32 %v10245_v14, 16 }
 0x496   : > { %7939 = vmatprep.subr.bf16.mxu1 %v8799_v34 }
 0x497   : > { %v4217_v62 = vor.u32 %v4216_v32, %v4212_v50  ;;  %v4274_v32 = vshll.u32 %v10240_v63, 16  ;;  %v4257_v50 = vrot.slane %v4255_v28, 1  ;;  %v4288_v28 = vrot.slane %v4286_v29, 1 }
 0x499   : > { %7940 = vmatpush3.bf16.msra.mxu1 %v8799_v34  ;;  %v4229_v34 = vor.u32 %v4228_v18, %v4224_v51  ;;  %v10423_v17 = vsel %vm1025_vm0, %v4217_v62, %v4221_v4  ;;  %v4245_v18 = vrot.slane %v4243_v9, 1  ;;  %v4264_v51 = vrot.slane %v4262_v30, 1 }
 0x49a   : > { %7941 = vmatprep.subr.bf16.mxu1 %v8800_v13  ;;  %v4276_v62 = vrot.slane %v4274_v32, 1  ;;  %v4279_v4 = vshll.u32 %v10191_v25, 16  ;;  %v4284_v30 = vshrl.u32 %v10245_v14, 16 }
 0x49b   : > { %v10427_v3 = vsel %vm1025_vm0, %v4229_v34, %v4233_v47  ;;  %v10437_v8 = vsel %vm1025_vm0, %v4241_v44, %v4245_v18  ;;  %v4267_v34 = vshll.u32 %v10179_v11, 16  ;;  %v4265_v47 = vor.u32 %v4264_v51, %v4260_v38  ;;  %v8803_v51 = vld [vmem:[%s11323_s3 + $0x1c8] sm:$0xff]  }
 0x49c   : > { %7910 = vmatmul.mubr.bf16.gmra.mrb[12].mxu1 %v10406_v23  ;;  %v4281_v9 = vrot.slane %v4279_v4, 1  ;;  %v4289_v32 = vor.u32 %v4288_v28, %v4284_v30  ;;  %v8807_v38 = vld [vmem:[%s11323_s3 + $0x1e8] sm:$0xff]   ;;  %v8810_v4 = vld [vmem:[%s11323_s3 + $0x80] sm:$0xff]  }
 0x49d   : > { %7913 = vmatprep.mubr.bf16.mxu1 %v10410_v35  ;;  %7942 = vmatpush3.bf16.msra.mxu1 %v8800_v13  ;;  %v4252_v13 = vrot.slane %v4250_v45, 1  ;;  %v4272_v45 = vshrl.u32 %v10240_v63, 16  ;;  %v4269_v12 = vrot.slane %v4267_v34, 1  ;;  %v8808_v34 = vld [vmem:[%s11323_s3 + $0x1f0] sm:$0xff]  }
 0x49e   : > { %7943 = vmatprep.subr.bf16.mxu1 %v8801_v1 }
 0x4a1   : > { %7944 = vmatpush3.bf16.msra.mxu1 %v8801_v1  ;;  %v4253_v1 = vor.u32 %v4252_v13, %v4248_v6  ;;  %v4277_v13 = vor.u32 %v4276_v62, %v4272_v45  ;;  %v10450_v6 = vsel %vm1025_vm0, %v4265_v47, %v4269_v12  ;;  %v8804_v62 = vld [vmem:[%s11323_s3 + $0x1d0] sm:$0xff]   ;;  %v8809_v45 = vld [vmem:[%s11323_s3 + $0x1f8] sm:$0xff]   ;;  %v4571_v47 = vshll.u32 %v10250_v24, 16 }
 0x4a2   : > { %7977 = vmatprep.subr.bf16.mxu1 %v8802_v20  ;;  %v4576_v12 = vshll.u32 %v10206_v52, 16 }
 0x4a3   : > { %v10441_v53 = vsel %vm1025_vm0, %v4253_v1, %v4257_v50  ;;  %v10454_v44 = vsel %vm1025_vm0, %v4277_v13, %v4281_v9  ;;  %v4291_v1 = vshll.u32 %v10200_v54, 16  ;;  %v4573_v29 = vrot.slane %v4571_v47, 1 }
 0x4a4   : > { %7914 = vmatmul.mubr.bf16.gmra.mrb[16].mxu1 %v10423_v17  ;;  %v4569_v13 = vshrl.u32 %v10250_v24, 16  ;;  %v4578_v28 = vrot.slane %v4576_v12, 1 }
 0x4a5   : > { %7917 = vmatprep.mubr.bf16.mxu1 %v10427_v3  ;;  %v4293_v18 = vrot.slane %v4291_v1, 1  ;;  %v8811_v1 = vld [vmem:[%s11323_s3 + $0x88] sm:$0xff]  }
 0x4a6   : > { %v4574_v9 = vor.u32 %v4573_v29, %v4569_v13  ;;  %v5155_v13 = vrot.slane %v10147_v22, 1 }
 0x4a7   : > { %v10460_v50 = vsel %vm1025_vm0, %v4289_v32, %v4293_v18  ;;  %v8812_v32 = vld [vmem:[%s11323_s3 + $0x90] sm:$0xff]   ;;  %v5137_v18 = vrot.slane %v10036_v48, 1  ;;  %v5142_v48 = vrot.slane %v10123_v60, 1  ;;  %v5146_v60 = vrot.slane %v10089_v5, 1  ;;  %v8826_v5 = vld [vmem:[%s11323_s3 + $0x200] sm:$0xff]  }
 0x4a8   : > { %v4579_v30 = vsel %vm1025_vm0, %v4574_v9, %v4578_v28  ;;  %v5161_v28 = vrot.slane %v10166_v58, 1 }
 0x4ac   : > { %7918 = vmatmul.mubr.bf16.gmra.mrb[20].mxu1 %v10437_v8 }
 0x4ad   : > { %7921 = vmatprep.mubr.bf16.mxu1 %v10441_v53 }
 0x4b4   : > { %7922 = vmatmul.mubr.bf16.gmra.mrb[24].mxu1 %v10450_v6 }
 0x4b5   : > { %7925 = vmatprep.mubr.bf16.mxu1 %v10454_v44 }
 0x4bc   : > { %7926 = vmatmul.mubr.bf16.gmra.mrb[28].mxu1 %v10460_v50 }
 0x4bd   : > { %7945 = vmatprep.mubr.bf16.mxu1 %v10349_v0  ;;  %v8805_v0 = vld [vmem:[%s11323_s3 + $0x1d8] sm:$0xff]  }
 0x4c4   : > { %7946 = vmatmul.mubr.bf16.vlgmr.msra.gmra.mrb[0].mxu1 %v10338_v59 }
 0x4c5   : > { %7949 = vmatprep.mubr.bf16.mxu1 %v10366_v21  ;;  %7978 = vmatpush3.bf16.msra.mxu1 %v8802_v20  ;;  %v8806_v20 = vld [vmem:[%s11323_s3 + $0x1e0] sm:$0xff]  }
 0x4c6   : > { %7979 = vmatprep.subr.bf16.mxu1 %v8803_v51 }
 0x4c9   : > { %7980 = vmatpush3.bf16.msra.mxu1 %v8803_v51 }
 0x4ca   : > { %7981 = vmatprep.subr.bf16.mxu1 %v8804_v62 }
 0x4cc   : > { %7950 = vmatmul.mubr.bf16.gmra.mrb[4].mxu1 %v10370_v2 }
 0x4cd   : > { %7953 = vmatprep.mubr.bf16.mxu1 %v10386_v43  ;;  %7982 = vmatpush3.bf16.msra.mxu1 %v8804_v62 }
 0x4ce   : > { %7983 = vmatprep.subr.bf16.mxu1 %v8805_v0 }
 0x4d1   : > { %7984 = vmatpush3.bf16.msra.mxu1 %v8805_v0  ;;  %v5143_v0 = vrot.slane %v10075_v39, 1  ;;  %v5148_v39 = vrot.slane %v10175_v7, 1  ;;  %v5152_v7 = vrot.slane %v10127_v61, 1  ;;  %v5158_v61 = vrot.slane %v10160_v31, 1 }
 0x4d2   : > { %7985 = vmatprep.subr.bf16.mxu1 %v8806_v20  ;;  %v5167_v31 = vrot.slane %v10191_v25, 1  ;;  %v8828_v25 = vld [vmem:[%s11323_s3 + $0x210] sm:$0xff]  }
 0x4d4   : > { %7954 = vmatmul.mubr.bf16.gmra.mrb[8].mxu1 %v10390_v49 }
 0x4d5   : > { %7957 = vmatprep.mubr.bf16.mxu1 %v10406_v23  ;;  %7986 = vmatpush3.bf16.msra.mxu1 %v8806_v20  ;;  %v8823_v20 = vld [vmem:[%s11323_s3 + $0x168] sm:$0xff]  }
 0x4d6   : > { %7987 = vmatprep.subr.bf16.mxu1 %v8807_v38 }
 0x4d9   : > { %7988 = vmatpush3.bf16.msra.mxu1 %v8807_v38 }
 0x4da   : > { %7989 = vmatprep.subr.bf16.mxu1 %v8808_v34 }
 0x4dc   : > { %7958 = vmatmul.mubr.bf16.gmra.mrb[12].mxu1 %v10410_v35 }
 0x4dd   : > { %7961 = vmatprep.mubr.bf16.mxu1 %v10423_v17  ;;  %7990 = vmatpush3.bf16.msra.mxu1 %v8808_v34  ;;  %v10594_v34 = vsel %vm2066_vm1, %v5142_v48, %v5143_v0 }
 0x4de   : > { %7991 = vmatprep.subr.bf16.mxu1 %v8809_v45 }
 0x4e1   : > { %7992 = vmatpush3.bf16.msra.mxu1 %v8809_v45  ;;  %v5149_v45 = vrot.slane %v10102_v57, 1  ;;  %v5151_v57 = vrot.slane %v10186_v56, 1  ;;  %v5157_v56 = vrot.slane %v10219_v33, 1  ;;  %v5166_v33 = vrot.slane %v10240_v63, 1  ;;  %v8831_v63 = vld [vmem:[%s11323_s3 + $0x228] sm:$0xff]  }
 0x4e2   : > { %8025 = vmatprep.subr.bf16.mxu1 %v8810_v4 }
 0x4e3   : > { %v10612_v29 = vsel %vm2066_vm1, %v5148_v39, %v5149_v45  ;;  %v10623_v12 = vsel %vm2066_vm1, %v5151_v57, %v5152_v7  ;;  %v10635_v22 = vsel %vm2066_vm1, %v5157_v56, %v5158_v61 }
 0x4e4   : > { %7962 = vmatmul.mubr.bf16.gmra.mrb[16].mxu1 %v10427_v3 }
 0x4e5   : > { %7965 = vmatprep.mubr.bf16.mxu1 %v10437_v8 }
 0x4ec   : > { %7966 = vmatmul.mubr.bf16.gmra.mrb[20].mxu1 %v10441_v53 }
 0x4ed   : > { %7969 = vmatprep.mubr.bf16.mxu1 %v10450_v6 }
 0x4f4   : > { %7970 = vmatmul.mubr.bf16.gmra.mrb[24].mxu1 %v10454_v44 }
 0x4f5   : > { %7973 = vmatprep.mubr.bf16.mxu1 %v10460_v50 }
 0x4fc   : > { %7974 = vmatmul.mubr.bf16.gmra.mrb[28].mxu1 %v4579_v30 }
 0x4fd   : > { %7993 = vmatprep.mubr.bf16.mxu1 %v10338_v59  ;;  %v8813_v59 = vld [vmem:[%s11323_s3 + $0x98] sm:$0xff]  }
 0x504   : > { %7994 = vmatmul.mubr.bf16.vlgmr.msra.gmra.mrb[0].mxu1 %v10366_v21  ;;  %v8814_v21 = vld [vmem:[%s11323_s3 + $0xa0] sm:$0xff]  }
 0x505   : > { %7997 = vmatprep.mubr.bf16.mxu1 %v10370_v2  ;;  %8026 = vmatpush3.bf16.msra.mxu1 %v8810_v4  ;;  %v8815_v2 = vld [vmem:[%s11323_s3 + $0xa8] sm:$0xff]   ;;  %v8825_v4 = vld [vmem:[%s11323_s3 + $0x178] sm:$0xff]  }
 0x506   : > { %8027 = vmatprep.subr.bf16.mxu1 %v8811_v1 }
 0x509   : > { %8028 = vmatpush3.bf16.msra.mxu1 %v8811_v1  ;;  %v5163_v1 = vrot.slane %v10235_v26, 1  ;;  %v8830_v26 = vld [vmem:[%s11323_s3 + $0x220] sm:$0xff]  }
 0x50a   : > { %8029 = vmatprep.subr.bf16.mxu1 %v8812_v32 }
 0x50c   : > { %7998 = vmatmul.mubr.bf16.gmra.mrb[4].mxu1 %v10386_v43  ;;  %v8816_v43 = vld [vmem:[%s11323_s3 + $0xb0] sm:$0xff]  }
 0x50d   : > { %8001 = vmatprep.mubr.bf16.mxu1 %v10390_v49  ;;  %8030 = vmatpush3.bf16.msra.mxu1 %v8812_v32  ;;  %v8817_v49 = vld [vmem:[%s11323_s3 + $0xb8] sm:$0xff]   ;;  %v5168_v32 = vsel %vm2066_vm1, %v5166_v33, %v5167_v31 }
 0x50e   : > { %8031 = vmatprep.subr.bf16.mxu1 %v8813_v59 }
 0x511   : > { %8032 = vmatpush3.bf16.msra.mxu1 %v8813_v59  ;;  %v5169_v59 = vrot.slane %v10245_v14, 1  ;;  %v8832_v14 = vld [vmem:[%s11323_s3 + $0x230] sm:$0xff]  }
 0x512   : > { %8033 = vmatprep.subr.bf16.mxu1 %v8814_v21 }
 0x514   : > { %8002 = vmatmul.mubr.bf16.gmra.mrb[8].mxu1 %v10406_v23  ;;  %v8818_v23 = vld [vmem:[%s11323_s3 + $0x140] sm:$0xff]  }
 0x515   : > { %8005 = vmatprep.mubr.bf16.mxu1 %v10410_v35  ;;  %8034 = vmatpush3.bf16.msra.mxu1 %v8814_v21  ;;  %v5127_v35 = vrot.slane %v9978_v27, 1  ;;  %v8820_v27 = vld [vmem:[%s11323_s3 + $0x150] sm:$0xff]   ;;  %v5170_v21 = vrot.slane %v10200_v54, 1  ;;  %v8829_v54 = vld [vmem:[%s11323_s3 + $0x218] sm:$0xff]  }
 0x516   : > { %8035 = vmatprep.subr.bf16.mxu1 %v8815_v2 }
 0x519   : > { %8036 = vmatpush3.bf16.msra.mxu1 %v8815_v2  ;;  %v5171_v2 = vsel %vm2066_vm1, %v5169_v59, %v5170_v21 }
 0x51a   : > { %8037 = vmatprep.subr.bf16.mxu1 %v8816_v43 }
 0x51c   : > { %8006 = vmatmul.mubr.bf16.gmra.mrb[12].mxu1 %v10423_v17  ;;  %v5128_v17 = vrot.slane %v10009_v41, 1  ;;  %v5136_v41 = vrot.slane %v10050_v15, 1  ;;  %v5140_v15 = vrot.slane %v10054_v40, 1  ;;  %v8824_v40 = vld [vmem:[%s11323_s3 + $0x170] sm:$0xff]  }
 0x51d   : > { %8009 = vmatprep.mubr.bf16.mxu1 %v10427_v3  ;;  %8038 = vmatpush3.bf16.msra.mxu1 %v8816_v43  ;;  %v8833_v43 = vld [vmem:[%s11323_s3 + $0x238] sm:$0xff]  }
 0x51e   : > { %8039 = vmatprep.subr.bf16.mxu1 %v8817_v49  ;;  %v10548_v3 = vsel %vm2066_vm1, %v5127_v35, %v5128_v17  ;;  %v10576_v62 = vsel %vm2066_vm1, %v5136_v41, %v5137_v18 }
 0x521   : > { %8040 = vmatpush3.bf16.msra.mxu1 %v8817_v49  ;;  %v5447_v49 = vrot.slane %v10250_v24, 1  ;;  %v10701_v24 = vld [vmem:[%s11324_s4] ss:$0 sm:$0xff] }
 0x522   : > { %8073 = vmatprep.subr.bf16.mxu1 %v8818_v23 }
 0x524   : > { %8010 = vmatmul.mubr.bf16.gmra.mrb[16].mxu1 %v10437_v8  ;;  %v5130_v8 = vrot.slane %v9984_v46, 1  ;;  %v5133_v46 = vrot.slane %v10001_v10, 1  ;;  %v8822_v10 = vld [vmem:[%s11323_s3 + $0x160] sm:$0xff]  }
 0x525   : > { %8013 = vmatprep.mubr.bf16.mxu1 %v10441_v53  ;;  %v5131_v53 = vrot.slane %v10019_v37, 1  ;;  %v5134_v37 = vrot.slane %v10023_v36, 1  ;;  %v5139_v36 = vrot.slane %v10065_v55, 1  ;;  %v5145_v55 = vrot.slane %v10137_v42, 1 }
 0x526   : > { %v5154_v42 = vrot.slane %v10212_v16, 1  ;;  %v5160_v16 = vrot.slane %v10228_v19, 1  ;;  %v5164_v19 = vrot.slane %v10179_v11, 1  ;;  %v8827_v11 = vld [vmem:[%s11323_s3 + $0x208] sm:$0xff]  }
 0x527   : > { %v10572_v51 = vsel %vm2066_vm1, %v5133_v46, %v5134_v37  ;;  %v10590_v38 = vsel %vm2066_vm1, %v5139_v36, %v5140_v15  ;;  %v10608_v47 = vsel %vm2066_vm1, %v5145_v55, %v5146_v60 }
 0x528   : > { %v10627_v9 = vsel %vm2066_vm1, %v5154_v42, %v5155_v13  ;;  %v5165_v58 = vsel %vm2066_vm1, %v5163_v1, %v5164_v19 }
 0x52c   : > { %8014 = vmatmul.mubr.bf16.gmra.mrb[20].mxu1 %v10450_v6  ;;  %v8819_v6 = vld [vmem:[%s11323_s3 + $0x148] sm:$0xff]  }
 0x52d   : > { %8017 = vmatprep.mubr.bf16.mxu1 %v10454_v44  ;;  %v10557_v44 = vsel %vm2066_vm1, %v5130_v8, %v5131_v53 }
 0x534   : > { %8018 = vmatmul.mubr.bf16.gmra.mrb[24].mxu1 %v10460_v50 }
 0x535   : > { %8021 = vmatprep.mubr.bf16.mxu1 %v4579_v30  ;;  %v10639_v30 = vsel %vm2066_vm1, %v5160_v16, %v5161_v28 }
 0x53c   : > { %8022 = vmatmul.mubr.bf16.gmra.mrb[28].mxu1 %v10460_v50  ;;  %v8821_v50 = vld [vmem:[%s11323_s3 + $0x158] sm:$0xff]  }
 0x53d   : > { %8041 = vmatprep.mubr.bf16.mxu1 %v10548_v3 }
 0x544   : > { %8042 = vmatmul.mubr.bf16.vlgmr.msra.gmra.mrb[0].mxu1 %v10557_v44 }
 0x545   : > { %8045 = vmatprep.mubr.bf16.mxu1 %v10548_v3  ;;  %8074 = vmatpush3.bf16.msra.mxu1 %v8818_v23  ;;  %v5448_v23 = vrot.slane %v10206_v52, 1 }
 0x546   : > { %8075 = vmatprep.subr.bf16.mxu1 %v8819_v6 }
 0x547   : > { %v5449_v35 = vsel %vm2066_vm1, %v5447_v49, %v5448_v23 }
 0x549   : > { %8076 = vmatpush3.bf16.msra.mxu1 %v8819_v6 }
 0x54a   : > { %8077 = vmatprep.subr.bf16.mxu1 %v8820_v27 }
 0x54c   : > { %8046 = vmatmul.mubr.bf16.gmra.mrb[4].mxu1 %v10572_v51 }
 0x54d   : > { %8049 = vmatprep.mubr.bf16.mxu1 %v10576_v62  ;;  %8078 = vmatpush3.bf16.msra.mxu1 %v8820_v27 }
 0x54e   : > { %8079 = vmatprep.subr.bf16.mxu1 %v8821_v50 }
 0x551   : > { %8080 = vmatpush3.bf16.msra.mxu1 %v8821_v50 }
 0x552   : > { %8081 = vmatprep.subr.bf16.mxu1 %v8822_v10 }
 0x554   : > { %8050 = vmatmul.mubr.bf16.gmra.mrb[8].mxu1 %v10590_v38 }
 0x555   : > { %8053 = vmatprep.mubr.bf16.mxu1 %v10594_v34  ;;  %8082 = vmatpush3.bf16.msra.mxu1 %v8822_v10 }
 0x556   : > { %8083 = vmatprep.subr.bf16.mxu1 %v8823_v20 }
 0x559   : > { %8084 = vmatpush3.bf16.msra.mxu1 %v8823_v20 }
 0x55a   : > { %8085 = vmatprep.subr.bf16.mxu1 %v8824_v40 }
 0x55c   : > { %8054 = vmatmul.mubr.bf16.gmra.mrb[12].mxu1 %v10608_v47 }
 0x55d   : > { %8057 = vmatprep.mubr.bf16.mxu1 %v10612_v29  ;;  %8086 = vmatpush3.bf16.msra.mxu1 %v8824_v40 }
 0x55e   : > { %8087 = vmatprep.subr.bf16.mxu1 %v8825_v4 }
 0x561   : > { %8088 = vmatpush3.bf16.msra.mxu1 %v8825_v4 }
 0x562   : > { %8121 = vmatprep.subr.bf16.mxu1 %v8826_v5 }
 0x564   : > { %8058 = vmatmul.mubr.bf16.gmra.mrb[16].mxu1 %v10623_v12 }
 0x565   : > { %8061 = vmatprep.mubr.bf16.mxu1 %v10627_v9 }
 0x56c   : > { %8062 = vmatmul.mubr.bf16.gmra.mrb[20].mxu1 %v10635_v22 }
 0x56d   : > { %8065 = vmatprep.mubr.bf16.mxu1 %v10639_v30 }
 0x574   : > { %8066 = vmatmul.mubr.bf16.gmra.mrb[24].mxu1 %v5165_v58 }
 0x575   : > { %8069 = vmatprep.mubr.bf16.mxu1 %v5168_v32 }
 0x57c   : > { %8070 = vmatmul.mubr.bf16.gmra.mrb[28].mxu1 %v5171_v2 }
 0x57d   : > { %8089 = vmatprep.mubr.bf16.mxu1 %v10557_v44 }
 0x584   : > { %8090 = vmatmul.mubr.bf16.vlgmr.msra.gmra.mrb[0].mxu1 %v10548_v3 }
 0x585   : > { %8093 = vmatprep.mubr.bf16.mxu1 %v10572_v51  ;;  %8122 = vmatpush3.bf16.msra.mxu1 %v8826_v5 }
 0x586   : > { %8123 = vmatprep.subr.bf16.mxu1 %v8827_v11 }
 0x589   : > { %8124 = vmatpush3.bf16.msra.mxu1 %v8827_v11 }
 0x58a   : > { %8125 = vmatprep.subr.bf16.mxu1 %v8828_v25 }
 0x58c   : > { %8094 = vmatmul.mubr.bf16.gmra.mrb[4].mxu1 %v10576_v62 }
 0x58d   : > { %8097 = vmatprep.mubr.bf16.mxu1 %v10590_v38  ;;  %8126 = vmatpush3.bf16.msra.mxu1 %v8828_v25 }
 0x58e   : > { %8127 = vmatprep.subr.bf16.mxu1 %v8829_v54 }
 0x591   : > { %8128 = vmatpush3.bf16.msra.mxu1 %v8829_v54 }
 0x592   : > { %8129 = vmatprep.subr.bf16.mxu1 %v8830_v26 }
 0x594   : > { %8098 = vmatmul.mubr.bf16.gmra.mrb[8].mxu1 %v10594_v34 }
 0x595   : > { %8101 = vmatprep.mubr.bf16.mxu1 %v10608_v47  ;;  %8130 = vmatpush3.bf16.msra.mxu1 %v8830_v26 }
 0x596   : > { %8131 = vmatprep.subr.bf16.mxu1 %v8831_v63 }
 0x599   : > { %8132 = vmatpush3.bf16.msra.mxu1 %v8831_v63 }
 0x59a   : > { %8133 = vmatprep.subr.bf16.mxu1 %v8832_v14 }
 0x59c   : > { %8102 = vmatmul.mubr.bf16.gmra.mrb[12].mxu1 %v10612_v29 }
 0x59d   : > { %8105 = vmatprep.mubr.bf16.mxu1 %v10623_v12  ;;  %8134 = vmatpush3.bf16.msra.mxu1 %v8832_v14 }
 0x59e   : > { %8135 = vmatprep.subr.bf16.mxu1 %v8833_v43 }
 0x5a1   : > { %8136 = vmatpush3.bf16.msra.mxu1 %v8833_v43 }
 0x5a4   : > { %8106 = vmatmul.mubr.bf16.gmra.mrb[16].mxu1 %v10627_v9 }
 0x5a5   : > { %8109 = vmatprep.mubr.bf16.mxu1 %v10635_v22 }
 0x5ac   : > { %8110 = vmatmul.mubr.bf16.gmra.mrb[20].mxu1 %v10639_v30 }
 0x5ad   : > { %8113 = vmatprep.mubr.bf16.mxu1 %v5165_v58 }
 0x5b4   : > { %8114 = vmatmul.mubr.bf16.gmra.mrb[24].mxu1 %v5168_v32 }
 0x5b5   : > { %8117 = vmatprep.mubr.bf16.mxu1 %v5171_v2 }
 0x5bc   : > { %8118 = vmatmul.mubr.bf16.gmra.mrb[28].mxu1 %v5449_v35 }
 0x5bd   : > { %8137 = vmatprep.mubr.bf16.mxu1 %v10548_v3 }
 0x5c4   : > { %8138 = vmatmul.mubr.bf16.vlgmr.msra.gmra.mrb[0].mxu1 %v10572_v51 }
 0x5c5   : > { %8141 = vmatprep.mubr.bf16.mxu1 %v10576_v62 }
 0x5cc   : > { %8142 = vmatmul.mubr.bf16.gmra.mrb[4].mxu1 %v10590_v38 }
 0x5cd   : > { %8145 = vmatprep.mubr.bf16.mxu1 %v10594_v34 }
 0x5d4   : > { %8146 = vmatmul.mubr.bf16.gmra.mrb[8].mxu1 %v10608_v47 }
 0x5d5   : > { %8149 = vmatprep.mubr.bf16.mxu1 %v10612_v29 }
 0x5dc   : > { %8150 = vmatmul.mubr.bf16.gmra.mrb[12].mxu1 %v10623_v12 }
 0x5dd   : > { %8153 = vmatprep.mubr.bf16.mxu1 %v10627_v9 }
 0x5e4   : > { %8154 = vmatmul.mubr.bf16.gmra.mrb[16].mxu1 %v10635_v22 }
 0x5e5   : > { %8157 = vmatprep.mubr.bf16.mxu1 %v10639_v30 }
 0x5ec   : > { %8158 = vmatmul.mubr.bf16.gmra.mrb[20].mxu1 %v5165_v58 }
 0x5ed   : > { %8161 = vmatprep.mubr.bf16.mxu1 %v5168_v32 }
 0x5f4   : > { %8162 = vmatmul.mubr.bf16.gmra.mrb[24].mxu1 %v5171_v2 }
 0x5f5   : > { %8165 = vmatprep.mubr.bf16.mxu1 %v5449_v35 }
 0x5fc   : > { %8166 = vmatmul.mubr.bf16.gmra.mrb[28].mxu1 %v5171_v2 }
 0x697   : > { %v8139_v52 = vpop.f32.mrb[0].mxu1 }
 0x698   : > { %v5808_v17 = vpop.f32.mrb[1].mxu1  ;;  %v10710_v44 = vadd.f32 %v8139_v52, %v10701_v24 }
 0x699   : > { %v8140_v3 = vpop.f32.mrb[2].mxu1  ;;  %v10704_v53 = vadd.f32 %v10701_v24, %v5808_v17 }
 0x69a   : > { %v5811_v8 = vpop.f32.mrb[3].mxu1  ;;  %v10715_v46 = vadd.f32 %v8140_v3, %v10701_v24 }
 0x69b   : > { %v10707_v6 = vadd.f32 %v10701_v24, %v5811_v8 }
 0x69d   : > { %v6006_v27 = vadd.f32 %v10707_v6, %v10704_v53 }
 0x69f   : > { %v6007_v41 = vadd.f32 %v6006_v27, %v10710_v44  ;;  %v8143_v37 = vpop.f32.mrb[4].mxu1 }
 0x6a0   : > { %v5824_v18 = vpop.f32.mrb[5].mxu1  ;;  %v10727_v15 = vadd.f32 %v8143_v37, %v10701_v24 }
 0x6a1   : > { %v10719_v50 = vadd.f32 %v10701_v24, %v5824_v18  ;;  %v6008_v51 = vadd.f32 %v6007_v41, %v10715_v46  ;;  %v8144_v62 = vpop.f32.mrb[6].mxu1 }
 0x6a2   : > { %v5827_v10 = vpop.f32.mrb[7].mxu1  ;;  %v10731_v20 = vadd.f32 %v8144_v62, %v10701_v24 }
 0x6a3   : > { %v6009_v36 = vadd.f32 %v6008_v51, %v10719_v50  ;;  %v10724_v48 = vadd.f32 %v10701_v24, %v5827_v10 }
 0x6a5   : > { %v6010_v0 = vadd.f32 %v6009_v36, %v10724_v48 }
 0x6a7   : > { %v6011_v38 = vadd.f32 %v6010_v0, %v10727_v15  ;;  %v8147_v34 = vpop.f32.mrb[8].mxu1 }
 0x6a8   : > { %v5840_v40 = vpop.f32.mrb[9].mxu1  ;;  %v10743_v29 = vadd.f32 %v8147_v34, %v10701_v24 }
 0x6a9   : > { %v10735_v55 = vadd.f32 %v10701_v24, %v5840_v40  ;;  %v6012_v39 = vadd.f32 %v6011_v38, %v10731_v20  ;;  %v8148_v60 = vpop.f32.mrb[10].mxu1 }
 0x6aa   : > { %v5843_v45 = vpop.f32.mrb[11].mxu1  ;;  %v10747_v57 = vadd.f32 %v8148_v60, %v10701_v24 }
 0x6ab   : > { %v6013_v4 = vadd.f32 %v6012_v39, %v10735_v55  ;;  %v10740_v47 = vadd.f32 %v10701_v24, %v5843_v45 }
 0x6ad   : > { %v6014_v5 = vadd.f32 %v6013_v4, %v10740_v47 }
 0x6af   : > { %v6015_v42 = vadd.f32 %v6014_v5, %v10743_v29  ;;  %v8151_v7 = vpop.f32.mrb[12].mxu1 }
 0x6b0   : > { %v5856_v13 = vpop.f32.mrb[13].mxu1  ;;  %v10759_v22 = vadd.f32 %v8151_v7, %v10701_v24 }
 0x6b1   : > { %v10751_v12 = vadd.f32 %v10701_v24, %v5856_v13  ;;  %v6016_v9 = vadd.f32 %v6015_v42, %v10747_v57  ;;  %v8152_v56 = vpop.f32.mrb[14].mxu1 }
 0x6b2   : > { %v5859_v16 = vpop.f32.mrb[15].mxu1  ;;  %v10763_v1 = vadd.f32 %v8152_v56, %v10701_v24 }
 0x6b3   : > { %v6017_v61 = vadd.f32 %v6016_v9, %v10751_v12  ;;  %v10756_v28 = vadd.f32 %v10701_v24, %v5859_v16 }
 0x6b5   : > { %v6018_v30 = vadd.f32 %v6017_v61, %v10756_v28 }
 0x6b7   : > { %v6019_v33 = vadd.f32 %v6018_v30, %v10759_v22  ;;  %v8155_v19 = vpop.f32.mrb[16].mxu1 }
 0x6b8   : > { %v5872_v31 = vpop.f32.mrb[17].mxu1  ;;  %v5992_v25 = vadd.f32 %v8155_v19, %v10701_v24 }
 0x6b9   : > { %v5990_v58 = vadd.f32 %v10701_v24, %v5872_v31  ;;  %v6020_v32 = vadd.f32 %v6019_v33, %v10763_v1  ;;  %v8156_v59 = vpop.f32.mrb[18].mxu1 }
 0x6ba   : > { %v5875_v21 = vpop.f32.mrb[19].mxu1  ;;  %v5993_v26 = vadd.f32 %v8156_v59, %v10701_v24 }
 0x6bb   : > { %v6021_v2 = vadd.f32 %v6020_v32, %v5990_v58  ;;  %v5991_v11 = vadd.f32 %v10701_v24, %v5875_v21 }
 0x6bd   : > { %v6022_v54 = vadd.f32 %v6021_v2, %v5991_v11 }
 0x6bf   : > { %v6023_v63 = vadd.f32 %v6022_v54, %v5992_v25  ;;  %v8159_v14 = vpop.f32.mrb[20].mxu1 }
 0x6c0   : > { %v5888_v43 = vpop.f32.mrb[21].mxu1  ;;  %v5996_v8 = vadd.f32 %v8159_v14, %v10701_v24 }
 0x6c1   : > { %v5994_v49 = vadd.f32 %v10701_v24, %v5888_v43  ;;  %v6024_v23 = vadd.f32 %v6023_v63, %v5993_v26  ;;  %v8160_v35 = vpop.f32.mrb[22].mxu1 }
 0x6c2   : > { %v5891_v52 = vpop.f32.mrb[23].mxu1  ;;  %v5997_v41 = vadd.f32 %v8160_v35, %v10701_v24 }
 0x6c3   : > { %v6025_v17 = vadd.f32 %v6024_v23, %v5994_v49  ;;  %v5995_v3 = vadd.f32 %v10701_v24, %v5891_v52 }
 0x6c5   : > { %v6026_v27 = vadd.f32 %v6025_v17, %v5995_v3 }
 0x6c7   : > { %v6027_v37 = vadd.f32 %v6026_v27, %v5996_v8  ;;  %v8163_v18 = vpop.f32.mrb[24].mxu1 }
 0x6c8   : > { %v5904_v51 = vpop.f32.mrb[25].mxu1  ;;  %v6000_v40 = vadd.f32 %v8163_v18, %v10701_v24 }
 0x6c9   : > { %v5998_v62 = vadd.f32 %v10701_v24, %v5904_v51  ;;  %v6028_v10 = vadd.f32 %v6027_v37, %v5997_v41  ;;  %v8164_v36 = vpop.f32.mrb[26].mxu1 }
 0x6ca   : > { %v5907_v0 = vpop.f32.mrb[27].mxu1  ;;  %v6001_v60 = vadd.f32 %v8164_v36, %v10701_v24 }
 0x6cb   : > { %v6029_v38 = vadd.f32 %v6028_v10, %v5998_v62  ;;  %v5999_v34 = vadd.f32 %v10701_v24, %v5907_v0 }
 0x6cd   : > { %v6030_v39 = vadd.f32 %v6029_v38, %v5999_v34 }
 0x6cf   : > { %v6031_v45 = vadd.f32 %v6030_v39, %v6000_v40  ;;  %v8167_v4 = vpop.f32.mrb[28].mxu1 }
 0x6d0   : > { %v5920_v5 = vpop.f32.mrb[29].mxu1  ;;  %v6004_v61 = vadd.f32 %v8167_v4, %v10701_v24 }
 0x6d1   : > { %v6002_v42 = vadd.f32 %v10701_v24, %v5920_v5  ;;  %v6032_v7 = vadd.f32 %v6031_v45, %v6001_v60  ;;  %v8168_v13 = vpop.f32.mrb[30].mxu1 }
 0x6d2   : > { %v5923_v9 = vpop.f32.mrb[31].mxu1  ;;  %v6005_v33 = vadd.f32 %v8168_v13, %v10701_v24 }
 0x6d3   : > { %v6033_v56 = vadd.f32 %v6032_v7, %v6002_v42  ;;  %v6003_v16 = vadd.f32 %v10701_v24, %v5923_v9 }
 0x6d5   : > { %v6034_v30 = vadd.f32 %v6033_v56, %v6003_v16 }
 0x6d7   : > { %v6035_v19 = vadd.f32 %v6034_v30, %v6004_v61 }
 0x6d9   : > { %v6036_v31 = vadd.f32 %v6035_v19, %v6005_v33 }
 0x6db   : > { %v6037_v32 = vrot.slane %v6036_v31, 4 }
 0x6dd   : > { %v6038_v59 = vadd.f32 %v6037_v32, %v6036_v31 }
 0x6df   : > { %v6039_v21 = vrot.slane %v6038_v59, 2 }
 0x6e1   : > { %v6040_v2 = vadd.f32 %v6039_v21, %v6038_v59 }
 0x6e3   : > { %v6041_v54 = vrot.slane %v6040_v2, 1 }
 0x6e5   : > { %v6042_v63 = vadd.f32 %v6041_v54, %v6040_v2 }
 0x6e7   : > { %v6043_v14 = vmul.f32 0.00390625, %v6042_v63 }
 0x6e9   : > { %v10784_v43 = vsub.f32 %v10735_v55, %v6043_v14  ;;  %v10787_v23 = vsub.f32 %v10740_v47, %v6043_v14  ;;  %v10790_v35 = vsub.f32 %v10743_v29, %v6043_v14  ;;  %v10793_v24 = vsub.f32 %v10747_v57, %v6043_v14 }
 0x6ea   : > { %v10796_v52 = vsub.f32 %v10751_v12, %v6043_v14  ;;  %v10799_v17 = vsub.f32 %v10756_v28, %v6043_v14  ;;  %v10802_v27 = vsub.f32 %v10759_v22, %v6043_v14  ;;  %v10805_v55 = vsub.f32 %v10763_v1, %v6043_v14 }
 0x6eb   : > { %v10807_v47 = vsub.f32 %v5990_v58, %v6043_v14  ;;  %v10809_v37 = vsub.f32 %v5991_v11, %v6043_v14  ;;  %v10811_v29 = vsub.f32 %v5992_v25, %v6043_v14  ;;  %v10813_v57 = vsub.f32 %v5993_v26, %v6043_v14 }
 0x6ec   : > { %v10815_v18 = vsub.f32 %v5994_v49, %v6043_v14  ;;  %v10817_v12 = vsub.f32 %v5995_v3, %v6043_v14  ;;  %v10819_v28 = vsub.f32 %v5996_v8, %v6043_v14  ;;  %v10821_v51 = vsub.f32 %v5997_v41, %v6043_v14 }
 0x6ed   : > { %v10823_v22 = vsub.f32 %v5998_v62, %v6043_v14  ;;  %v10825_v1 = vsub.f32 %v5999_v34, %v6043_v14  ;;  %v10827_v58 = vsub.f32 %v6000_v40, %v6043_v14  ;;  %v10829_v11 = vsub.f32 %v6001_v60, %v6043_v14 }
 0x6ee   : > { %v10831_v25 = vsub.f32 %v6002_v42, %v6043_v14  ;;  %v10833_v26 = vsub.f32 %v6003_v16, %v6043_v14  ;;  %v10835_v49 = vsub.f32 %v6004_v61, %v6043_v14  ;;  %v10837_v3 = vsub.f32 %v6005_v33, %v6043_v14 }
 0x6ef   : > { %v10840_v8 = vsub.f32 %v10704_v53, %v6043_v14  ;;  %v10843_v41 = vsub.f32 %v10707_v6, %v6043_v14  ;;  %v10846_v62 = vsub.f32 %v10710_v44, %v6043_v14  ;;  %v10853_v0 = vsub.f32 %v10715_v46, %v6043_v14 }
 0x6f0   : > { %v10856_v38 = vsub.f32 %v10719_v50, %v6043_v14  ;;  %v10861_v34 = vsub.f32 %v10724_v48, %v6043_v14  ;;  %v10866_v39 = vsub.f32 %v10727_v15, %v6043_v14  ;;  %v10871_v50 = vsub.f32 %v10731_v20, %v6043_v14 }
 0x6f1   : > { %v6076_v10 = vmul.f32 %v10840_v8, %v10840_v8  ;;  %v6077_v36 = vmul.f32 %v10843_v41, %v10843_v41  ;;  %v6078_v53 = vmul.f32 %v10846_v62, %v10846_v62  ;;  %v6079_v44 = vmul.f32 %v10853_v0, %v10853_v0 }
 0x6f2   : > { %v6080_v46 = vmul.f32 %v10856_v38, %v10856_v38  ;;  %v6081_v45 = vmul.f32 %v10861_v34, %v10861_v34  ;;  %v6082_v48 = vmul.f32 %v10866_v39, %v10866_v39  ;;  %v6083_v42 = vmul.f32 %v10871_v50, %v10871_v50 }
 0x6f3   : > { %v6108_v6 = vadd.f32 %v6077_v36, %v6076_v10  ;;  %v6084_v7 = vmul.f32 %v10784_v43, %v10784_v43  ;;  %v6085_v20 = vmul.f32 %v10787_v23, %v10787_v23  ;;  %v6086_v56 = vmul.f32 %v10790_v35, %v10790_v35 }
 0x6f4   : > { %v6087_v61 = vmul.f32 %v10793_v24, %v10793_v24  ;;  %v6088_v33 = vmul.f32 %v10796_v52, %v10796_v52  ;;  %v6089_v31 = vmul.f32 %v10799_v17, %v10799_v17  ;;  %v6090_v59 = vmul.f32 %v10802_v27, %v10802_v27 }
 0x6f5   : > { %v6109_v40 = vadd.f32 %v6108_v6, %v6078_v53  ;;  %v6091_v2 = vmul.f32 %v10805_v55, %v10805_v55  ;;  %v6092_v63 = vmul.f32 %v10807_v47, %v10807_v47  ;;  %v6093_v10 = vmul.f32 %v10809_v37, %v10809_v37 }
 0x6f6   : > { %v6094_v53 = vmul.f32 %v10811_v29, %v10811_v29 }
 0x6f7   : > { %v6110_v60 = vadd.f32 %v6109_v40, %v6079_v44  ;;  %v6095_v44 = vmul.f32 %v10813_v57, %v10813_v57 }
 0x6f9   : > { %v6111_v4 = vadd.f32 %v6110_v60, %v6080_v46  ;;  %v6096_v46 = vmul.f32 %v10815_v18, %v10815_v18 }
 0x6fb   : > { %v6112_v5 = vadd.f32 %v6111_v4, %v6081_v45  ;;  %v6097_v45 = vmul.f32 %v10817_v12, %v10817_v12 }
 0x6fd   : > { %v6113_v15 = vadd.f32 %v6112_v5, %v6082_v48  ;;  %v6098_v48 = vmul.f32 %v10819_v28, %v10819_v28 }
 0x6ff   : > { %v6114_v13 = vadd.f32 %v6113_v15, %v6083_v42  ;;  %v6099_v42 = vmul.f32 %v10821_v51, %v10821_v51 }
 0x701   : > { %v6115_v9 = vadd.f32 %v6114_v13, %v6084_v7  ;;  %v6100_v7 = vmul.f32 %v10823_v22, %v10823_v22 }
 0x703   : > { %v6116_v16 = vadd.f32 %v6115_v9, %v6085_v20  ;;  %v6101_v20 = vmul.f32 %v10825_v1, %v10825_v1 }
 0x705   : > { %v6117_v30 = vadd.f32 %v6116_v16, %v6086_v56  ;;  %v6102_v56 = vmul.f32 %v10827_v58, %v10827_v58 }
 0x707   : > { %v6118_v19 = vadd.f32 %v6117_v30, %v6087_v61  ;;  %v6103_v61 = vmul.f32 %v10829_v11, %v10829_v11 }
 0x709   : > { %v6119_v32 = vadd.f32 %v6118_v19, %v6088_v33  ;;  %v6104_v33 = vmul.f32 %v10831_v25, %v10831_v25 }
 0x70b   : > { %v6120_v21 = vadd.f32 %v6119_v32, %v6089_v31  ;;  %v6105_v31 = vmul.f32 %v10833_v26, %v10833_v26 }
 0x70d   : > { %v6121_v54 = vadd.f32 %v6120_v21, %v6090_v59  ;;  %v6106_v59 = vmul.f32 %v10835_v49, %v10835_v49 }
 0x70f   : > { %v6122_v14 = vadd.f32 %v6121_v54, %v6091_v2  ;;  %v6107_v2 = vmul.f32 %v10837_v3, %v10837_v3 }
 0x711   : > { %v6123_v36 = vadd.f32 %v6122_v14, %v6092_v63 }
 0x713   : > { %v6124_v6 = vadd.f32 %v6123_v36, %v6093_v10 }
 0x715   : > { %v6125_v40 = vadd.f32 %v6124_v6, %v6094_v53 }
 0x717   : > { %v6126_v60 = vadd.f32 %v6125_v40, %v6095_v44 }
 0x719   : > { %v6127_v4 = vadd.f32 %v6126_v60, %v6096_v46 }
 0x71b   : > { %v6128_v5 = vadd.f32 %v6127_v4, %v6097_v45 }
 0x71d   : > { %v6129_v15 = vadd.f32 %v6128_v5, %v6098_v48 }
 0x71f   : > { %v6130_v13 = vadd.f32 %v6129_v15, %v6099_v42 }
 0x721   : > { %v6131_v9 = vadd.f32 %v6130_v13, %v6100_v7 }
 0x723   : > { %v6132_v16 = vadd.f32 %v6131_v9, %v6101_v20 }
 0x725   : > { %v6133_v30 = vadd.f32 %v6132_v16, %v6102_v56 }
 0x727   : > { %v6134_v19 = vadd.f32 %v6133_v30, %v6103_v61 }
 0x729   : > { %v6135_v32 = vadd.f32 %v6134_v19, %v6104_v33 }
 0x72b   : > { %v6136_v21 = vadd.f32 %v6135_v32, %v6105_v31 }
 0x72d   : > { %v6137_v54 = vadd.f32 %v6136_v21, %v6106_v59 }
 0x72f   : > { %v6138_v63 = vadd.f32 %v6137_v54, %v6107_v2 }
 0x731   : > { %v6139_v14 = vrot.slane %v6138_v63, 4 }
 0x733   : > { %v6140_v10 = vadd.f32 %v6139_v14, %v6138_v63 }
 0x735   : > { %v6141_v36 = vrot.slane %v6140_v10, 2 }
 0x737   : > { %v6142_v53 = vadd.f32 %v6141_v36, %v6140_v10 }
 0x739   : > { %v6143_v6 = vrot.slane %v6142_v53, 1 }
 0x73b   : > { %v6144_v44 = vadd.f32 %v6143_v6, %v6142_v53 }
 0x73d   : > { %v6145_v40 = vmul.f32 0.00390625, %v6144_v44 }
 0x73f   : > { %v6146_v46 = vadd.f32 1e-05, %v6145_v40 }
 0x741   : > { %8836 = vrsqrt.f32 %v6146_v46 }
 0x74b   : > { %v8837_v60 = vpop.eup %8836 }
 0x74c   : > { %v10928_v45 = vmul.f32 %v8837_v60, %v10840_v8  ;;  %v10931_v4 = vmul.f32 %v8837_v60, %v10843_v41  ;;  %v10934_v48 = vmul.f32 %v8837_v60, %v10846_v62  ;;  %v10937_v5 = vmul.f32 %v8837_v60, %v10853_v0 }
 0x74d   : > { %v10940_v42 = vmul.f32 %v8837_v60, %v10856_v38  ;;  %v10943_v15 = vmul.f32 %v8837_v60, %v10861_v34  ;;  %v10946_v7 = vmul.f32 %v8837_v60, %v10866_v39  ;;  %v10949_v8 = vmul.f32 %v8837_v60, %v10871_v50 }
 0x74e   : > { %v10952_v41 = vmul.f32 %v8837_v60, %v10784_v43  ;;  %v10955_v62 = vmul.f32 %v8837_v60, %v10787_v23  ;;  %v10958_v0 = vmul.f32 %v8837_v60, %v10790_v35  ;;  %v10961_v38 = vmul.f32 %v8837_v60, %v10793_v24 }
 0x74f   : > { %v10964_v34 = vmul.f32 %v8837_v60, %v10796_v52  ;;  %v10967_v39 = vmul.f32 %v8837_v60, %v10799_v17  ;;  %v10970_v50 = vmul.f32 %v8837_v60, %v10802_v27  ;;  %v10973_v43 = vmul.f32 %v8837_v60, %v10805_v55 }
 0x750   : > { %v10976_v23 = vmul.f32 %v8837_v60, %v10807_v47  ;;  %v10979_v35 = vmul.f32 %v8837_v60, %v10809_v37  ;;  %v10982_v24 = vmul.f32 %v8837_v60, %v10811_v29  ;;  %v10985_v52 = vmul.f32 %v8837_v60, %v10813_v57 }
 0x751   : > { %v10988_v17 = vmul.f32 %v8837_v60, %v10815_v18  ;;  %v10991_v27 = vmul.f32 %v8837_v60, %v10817_v12  ;;  %v10994_v55 = vmul.f32 %v8837_v60, %v10819_v28  ;;  %v10997_v47 = vmul.f32 %v8837_v60, %v10821_v51 }
 0x752   : > { %v11000_v37 = vmul.f32 %v8837_v60, %v10823_v22  ;;  %v11003_v29 = vmul.f32 %v8837_v60, %v10825_v1  ;;  %v11006_v57 = vmul.f32 %v8837_v60, %v10827_v58  ;;  %v11009_v18 = vmul.f32 %v8837_v60, %v10829_v11 }
 0x753   : > { %v11012_v12 = vmul.f32 %v8837_v60, %v10831_v25  ;;  %v11015_v28 = vmul.f32 %v8837_v60, %v10833_v26  ;;  %v11018_v51 = vmul.f32 %v8837_v60, %v10835_v49  ;;  %v11021_v22 = vmul.f32 %v8837_v60, %v10837_v3 }
 0x754   : > { %v6213_v1 = vrot.slane %v10928_v45, 7  ;;  %v6214_v58 = vrot.slane %v10931_v4, 7  ;;  %v6216_v13 = vrot.slane %v10934_v48, 7  ;;  %v6217_v11 = vrot.slane %v10937_v5, 7 }
 0x755   : > { %v6219_v25 = vrot.slane %v10940_v42, 7  ;;  %v6220_v20 = vrot.slane %v10943_v15, 7  ;;  %v6222_v26 = vrot.slane %v10946_v7, 7  ;;  %v6223_v49 = vrot.slane %v10949_v8, 7  ;;  %v8850_v15 = vld [vmem:[%s8947_s29 + $0x78] sm:$0xff] }
 0x756   : > { %v6215_v9 = vsel %vm3371_vm2, %v6213_v1, %v6214_v58  ;;  %v6218_v3 = vsel %vm3371_vm2, %v6216_v13, %v6217_v11  ;;  %v6225_v56 = vrot.slane %v10952_v41, 7  ;;  %v11344_v16 = vrot.slane %v10955_v62, 7  ;;  %v8854_v41 = vld [vmem:[%s8947_s29 + $0x98] sm:$0xff] }
 0x757   : > { %v6221_v61 = vsel %vm3371_vm2, %v6219_v25, %v6220_v20  ;;  %v6224_v30 = vsel %vm3371_vm2, %v6222_v26, %v6223_v49  ;;  %v11343_v33 = vrot.slane %v10958_v0, 7  ;;  %v11342_v19 = vrot.slane %v10961_v38, 7 }
 0x758   : > { %v11050_v31 = vsel %vm3371_vm2, %v6225_v56, %v11344_v16  ;;  %v11339_v32 = vrot.slane %v10964_v34, 7  ;;  %v11336_v59 = vrot.slane %v10967_v39, 7  ;;  %v11333_v21 = vrot.slane %v10970_v50, 7  ;;  %v8842_v16 = vld [vmem:[%s8947_s29 + $0x38] sm:$0xff] }
 0x759   : > { %v11060_v2 = vsel %vm3371_vm2, %v11343_v33, %v11342_v19  ;;  %v11332_v54 = vrot.slane %v10973_v43, 7  ;;  %v11331_v63 = vrot.slane %v10976_v23, 7  ;;  %v11326_v14 = vrot.slane %v10979_v35, 7  ;;  %v8841_v19 = vld [vmem:[%s8947_s29 + $0x30] sm:$0xff] }
 0x75a   : > { %v11070_v10 = vsel %vm3371_vm2, %v11339_v32, %v11336_v59  ;;  %v11328_v36 = vrot.slane %v10982_v24, 7  ;;  %v11327_v53 = vrot.slane %v10985_v52, 7  ;;  %v11330_v6 = vrot.slane %v10988_v17, 7 }
 0x75b   : > { %v11081_v44 = vsel %vm3371_vm2, %v11333_v21, %v11332_v54  ;;  %v11088_v40 = vsel %vm3371_vm2, %v11331_v63, %v11326_v14  ;;  %v11329_v46 = vrot.slane %v10991_v27, 7  ;;  %v11335_v60 = vrot.slane %v10994_v55, 7 }
 0x75c   : > { %v11097_v45 = vsel %vm3371_vm2, %v11328_v36, %v11327_v53  ;;  %v11334_v4 = vrot.slane %v10997_v47, 7  ;;  %v11338_v48 = vrot.slane %v11000_v37, 7  ;;  %v11337_v5 = vrot.slane %v11003_v29, 7 }
 0x75d   : > { %v11107_v42 = vsel %vm3371_vm2, %v11330_v6, %v11329_v46  ;;  %v11341_v14 = vrot.slane %v11006_v57, 7  ;;  %v11340_v53 = vrot.slane %v11009_v18, 7  ;;  %v6255_v36 = vrot.slane %v11012_v12, 7 }
 0x75e   : > { %v11122_v46 = vsel %vm3371_vm2, %v11335_v60, %v11334_v4  ;;  %v11129_v6 = vsel %vm3371_vm2, %v11338_v48, %v11337_v5  ;;  %v11345_v63 = vrot.slane %v11015_v28, 7  ;;  %v6258_v54 = vrot.slane %v11018_v51, 7  ;;  %v8838_v60 = vld [vmem:[%s8947_s29 + $0x18] sm:$0xff]  ;;  %v8839_v5 = vld [vmem:[%s8947_s29 + $0x20] sm:$0xff] }
 0x75f   : > { %v11138_v21 = vsel %vm3371_vm2, %v11341_v14, %v11340_v53  ;;  %v6259_v4 = vrot.slane %v11021_v22, 7  ;;  %v6309_v59 = vadd.f32 %v8838_v60, %v6213_v1  ;;  %v6310_v48 = vadd.f32 %v8839_v5, %v6215_v9  ;;  %v8840_v53 = vld [vmem:[%s8947_s29 + $0x28] sm:$0x3]  ;;  %v8843_v60 = vld [vmem:[%s8947_s29 + $0x40] sm:$0x3] }
 0x760   : > { %v11148_v32 = vsel %vm3371_vm2, %v6255_v36, %v11345_v63  ;;  %v6311_v14 = vadd.f32 %v8840_v53, %v6214_v58  ;;  %v6312_v33 = vadd.f32 %v8841_v19, %v6216_v13  ;;  %v6313_v1 = vadd.f32 %v8842_v16, %v6218_v3  ;;  %v8844_v63 = vld [vmem:[%s8947_s29 + $0x48] sm:$0xff]  ;;  %v8845_v13 = vld [vmem:[%s8947_s29 + $0x50] sm:$0xff]  ;;  %v8846_v3 = vld [vmem:[%s8947_s29 + $0x58] sm:$0x3] }
 0x761   : > { %v11158_v9 = vsel %vm3371_vm2, %v6258_v54, %v6259_v4  ;;  %v6314_v5 = vadd.f32 %v8843_v60, %v6217_v11  ;;  %v6315_v58 = vadd.f32 %v8844_v63, %v6219_v25  ;;  %v6316_v19 = vadd.f32 %v8845_v13, %v6221_v61  ;;  %6357 = vst [vmem:[%s11115_s7 - $0x1] sm:$0xfe] %v6309_v59  ;;  %v8847_v53 = vld [vmem:[%s8947_s29 + $0x60] sm:$0xff]  ;;  %v8848_v60 = vld [vmem:[%s8947_s29 + $0x68] sm:$0xff]  ;;  %v8849_v63 = vld [vmem:[%s8947_s29 + $0x70] sm:$0x3] }
 0x762   : > { %6358 = vst [vmem:[%s11115_s7 + $0x7] sm:$0xff] %v6310_v48  ;;  %v6317_v16 = vadd.f32 %v8846_v3, %v6220_v20  ;;  %v6318_v11 = vadd.f32 %v8847_v53, %v6222_v26  ;;  %v6319_v25 = vadd.f32 %v8848_v60, %v6224_v30  ;;  %v6320_v61 = vadd.f32 %v8849_v63, %v6223_v49  ;;  %v8851_v20 = vld [vmem:[%s8947_s29 + $0x80] sm:$0xff]  ;;  %v8852_v30 = vld [vmem:[%s8947_s29 + $0x88] sm:$0x3]  ;;  %v8853_v49 = vld [vmem:[%s8947_s29 + $0x90] sm:$0xff] }
 0x763   : > { %6359 = vst [vmem:[%s11115_s7 + $0xf] sm:$0x1] %v6311_v14  ;;  %6360 = vst [vmem:[%s11115_s7 + $0xf] sm:$0xfe] %v6312_v33  ;;  %v6321_v7 = vadd.f32 %v8850_v15, %v6225_v56  ;;  %v6322_v26 = vadd.f32 %v8851_v20, %v11050_v31  ;;  %v11348_v59 = vrot.slane %v10955_v62, 7  ;;  %v11349_v33 = vrot.slane %v10958_v0, 7 }
 0x764   : > { %6361 = vst [vmem:[%s11115_s7 + $0x17] sm:$0xff] %v6313_v1  ;;  %6362 = vst [vmem:[%s11115_s7 + $0x1f] sm:$0x1] %v6314_v5  ;;  %v6325_v56 = vadd.f32 %v8854_v41, %v11060_v2  ;;  %v8855_v31 = vld [vmem:[%s8947_s29 + $0xa0] sm:$0x3]  ;;  %v11350_v62 = vrot.slane %v10961_v38, 7 }
 0x765   : > { %v6323_v8 = vadd.f32 %v8852_v30, %v11348_v59  ;;  %v6324_v14 = vadd.f32 %v8853_v49, %v11349_v33  ;;  %6363 = vst [vmem:[%s11115_s7 + $0x1f] sm:$0xfe] %v6315_v58  ;;  %6364 = vst [vmem:[%s11115_s7 + $0x27] sm:$0xff] %v6316_v19  ;;  %v8856_v1 = vld [vmem:[%s8947_s29 + $0xa8] sm:$0xff]  ;;  %v11351_v13 = vrot.slane %v10964_v34, 7  ;;  %v8857_v3 = vld [vmem:[%s8947_s29 + $0xb0] sm:$0xff] }
 0x766   : > { %v6326_v48 = vadd.f32 %v8855_v31, %v11350_v62  ;;  %v6328_v5 = vadd.f32 %v8857_v3, %v11070_v10  ;;  %6365 = vst [vmem:[%s11115_s7 + $0x2f] sm:$0x1] %v6317_v16  ;;  %6366 = vst [vmem:[%s11115_s7 + $0x2f] sm:$0xfe] %v6318_v11  ;;  %v8858_v38 = vld [vmem:[%s8947_s29 + $0xb8] sm:$0x3] }
 0x767   : > { %v6327_v0 = vadd.f32 %v8856_v1, %v11351_v13  ;;  %6367 = vst [vmem:[%s11115_s7 + $0x37] sm:$0xff] %v6319_v25  ;;  %6368 = vst [vmem:[%s11115_s7 + $0x3f] sm:$0x1] %v6320_v61  ;;  %v11352_v2 = vrot.slane %v10967_v39, 7  ;;  %v8859_v34 = vld [vmem:[%s8947_s29 + $0xc0] sm:$0xff]  ;;  %v11353_v19 = vrot.slane %v10970_v50, 7 }
 0x768   : > { %v8860_v60 = vld [vmem:[%s8947_s29 + $0xc8] sm:$0xff]  ;;  %v8861_v16 = vld [vmem:[%s8947_s29 + $0xd0] sm:$0x3]  ;;  %v11354_v11 = vrot.slane %v10973_v43, 7  ;;  %6369 = vst [vmem:[%s11115_s7 + $0x3f] sm:$0xfe] %v6321_v7 }
 0x769   : > { %v6329_v58 = vadd.f32 %v8858_v38, %v11352_v2  ;;  %v6330_v53 = vadd.f32 %v8859_v34, %v11353_v19  ;;  %v6331_v10 = vadd.f32 %v8860_v60, %v11081_v44  ;;  %6370 = vst [vmem:[%s11115_s7 + $0x47] sm:$0xff] %v6322_v26  ;;  %6371 = vst [vmem:[%s11115_s7 + $0x4f] sm:$0x1] %v6323_v8  ;;  %v8862_v39 = vld [vmem:[%s8947_s29 + $0xd8] sm:$0xff]  ;;  %v11355_v50 = vrot.slane %v10976_v23, 7  ;;  %v8863_v61 = vld [vmem:[%s8947_s29 + $0xe0] sm:$0xff] }
 0x76a   : > { %v6332_v25 = vadd.f32 %v8861_v16, %v11354_v11  ;;  %6372 = vst [vmem:[%s11115_s7 + $0x4f] sm:$0xfe] %v6324_v14  ;;  %v6334_v44 = vadd.f32 %v8863_v61, %v11088_v40  ;;  %v8864_v15 = vld [vmem:[%s8947_s29 + $0xe8] sm:$0x3]  ;;  %v11356_v43 = vrot.slane %v10979_v35, 7  ;;  %v8865_v7 = vld [vmem:[%s8947_s29 + $0xf0] sm:$0xff] }
 0x76b   : > { %v6333_v63 = vadd.f32 %v8862_v39, %v11355_v50  ;;  %v11357_v26 = vrot.slane %v10982_v24, 7  ;;  %6373 = vst [vmem:[%s11115_s7 + $0x57] sm:$0xff] %v6325_v56  ;;  %6374 = vst [vmem:[%s11115_s7 + $0x5f] sm:$0x1] %v6326_v48  ;;  %v8866_v23 = vld [vmem:[%s8947_s29 + $0xf8] sm:$0xff]  ;;  %v11358_v59 = vrot.slane %v10985_v52, 7 }
 0x76c   : > { %v6335_v20 = vadd.f32 %v8864_v15, %v11356_v43  ;;  %6375 = vst [vmem:[%s11115_s7 + $0x5f] sm:$0xfe] %v6327_v0  ;;  %6376 = vst [vmem:[%s11115_s7 + $0x67] sm:$0xff] %v6328_v5  ;;  %v6337_v40 = vadd.f32 %v8866_v23, %v11097_v45  ;;  %v8867_v35 = vld [vmem:[%s8947_s29 + $0x100] sm:$0x3]  ;;  %v8868_v49 = vld [vmem:[%s8947_s29 + $0x108] sm:$0xff] }
 0x76d   : > { %v6336_v30 = vadd.f32 %v8865_v7, %v11357_v26  ;;  %v6338_v8 = vadd.f32 %v8867_v35, %v11358_v59  ;;  %v11359_v24 = vrot.slane %v10988_v17, 7  ;;  %v8869_v14 = vld [vmem:[%s8947_s29 + $0x110] sm:$0xff]  ;;  %6377 = vst [vmem:[%s11115_s7 + $0x6f] sm:$0x1] %v6329_v58  ;;  %6378 = vst [vmem:[%s11115_s7 + $0x6f] sm:$0xfe] %v6330_v53 }
 0x76e   : > { %v6340_v41 = vadd.f32 %v8869_v14, %v11107_v42  ;;  %6379 = vst [vmem:[%s11115_s7 + $0x77] sm:$0xff] %v6331_v10  ;;  %6380 = vst [vmem:[%s11115_s7 + $0x7f] sm:$0x1] %v6332_v25  ;;  %v8870_v52 = vld [vmem:[%s8947_s29 + $0x118] sm:$0x3]  ;;  %v11360_v45 = vrot.slane %v10991_v27, 7 }
 0x76f   : > { %v6339_v33 = vadd.f32 %v8868_v49, %v11359_v24  ;;  %v8871_v17 = vld [vmem:[%s8947_s29 + $0x120] sm:$0xff]  ;;  %v11361_v31 = vrot.slane %v10994_v55, 7  ;;  %v8872_v48 = vld [vmem:[%s8947_s29 + $0x128] sm:$0xff]  ;;  %v8873_v1 = vld [vmem:[%s8947_s29 + $0x130] sm:$0x3]  ;;  %v11362_v13 = vrot.slane %v10997_v47, 7 }
 0x770   : > { %v6341_v56 = vadd.f32 %v8870_v52, %v11360_v45  ;;  %v6343_v42 = vadd.f32 %v8872_v48, %v11122_v46  ;;  %6381 = vst [vmem:[%s11115_s7 + $0x7f] sm:$0xfe] %v6333_v63  ;;  %6382 = vst [vmem:[%s11115_s7 + $0x87] sm:$0xff] %v6334_v44  ;;  %v8874_v27 = vld [vmem:[%s8947_s29 + $0x138] sm:$0xff]  ;;  %v11363_v55 = vrot.slane %v11000_v37, 7  ;;  %v8875_v5 = vld [vmem:[%s8947_s29 + $0x140] sm:$0xff] }
 0x771   : > { %v6342_v62 = vadd.f32 %v8871_v17, %v11361_v31  ;;  %v6344_v0 = vadd.f32 %v8873_v1, %v11362_v13  ;;  %6383 = vst [vmem:[%s11115_s7 + $0x8f] sm:$0x1] %v6335_v20  ;;  %6384 = vst [vmem:[%s11115_s7 + $0x8f] sm:$0xfe] %v6336_v30  ;;  %v6346_v46 = vadd.f32 %v8875_v5, %v11129_v6  ;;  %v8876_v38 = vld [vmem:[%s8947_s29 + $0x148] sm:$0x3] }
 0x772   : > { %v6345_v3 = vadd.f32 %v8874_v27, %v11363_v55  ;;  %v11364_v47 = vrot.slane %v11003_v29, 7  ;;  %v8877_v58 = vld [vmem:[%s8947_s29 + $0x150] sm:$0xff]  ;;  %v11365_v34 = vrot.slane %v11006_v57, 7  ;;  %6385 = vst [vmem:[%s11115_s7 + $0x97] sm:$0xff] %v6337_v40  ;;  %6386 = vst [vmem:[%s11115_s7 + $0x9f] sm:$0x1] %v6338_v8 }
 0x773   : > { %6387 = vst [vmem:[%s11115_s7 + $0x9f] sm:$0xfe] %v6339_v33  ;;  %6388 = vst [vmem:[%s11115_s7 + $0xa7] sm:$0xff] %v6340_v41  ;;  %v8878_v37 = vld [vmem:[%s8947_s29 + $0x158] sm:$0xff]  ;;  %v8879_v29 = vld [vmem:[%s8947_s29 + $0x160] sm:$0x3] }
 0x774   : > { %v6347_v2 = vadd.f32 %v8876_v38, %v11364_v47  ;;  %v6348_v19 = vadd.f32 %v8877_v58, %v11365_v34  ;;  %v6349_v6 = vadd.f32 %v8878_v37, %v11138_v21  ;;  %v11366_v53 = vrot.slane %v11009_v18, 7  ;;  %v8880_v10 = vld [vmem:[%s8947_s29 + $0x168] sm:$0xff]  ;;  %v8881_v16 = vld [vmem:[%s8947_s29 + $0x170] sm:$0xff]  ;;  %6389 = vst [vmem:[%s11115_s7 + $0xaf] sm:$0x1] %v6341_v56  ;;  %6391 = vst [vmem:[%s11115_s7 + $0xb7] sm:$0xff] %v6343_v42 }
 0x775   : > { %v6351_v57 = vadd.f32 %v8880_v10, %v6255_v36  ;;  %v6352_v11 = vadd.f32 %v8881_v16, %v11148_v32  ;;  %6390 = vst [vmem:[%s11115_s7 + $0xaf] sm:$0xfe] %v6342_v62  ;;  %6392 = vst [vmem:[%s11115_s7 + $0xbf] sm:$0x1] %v6344_v0  ;;  %v8882_v18 = vld [vmem:[%s8947_s29 + $0x178] sm:$0x3] }
 0x776   : > { %v6350_v60 = vadd.f32 %v8879_v29, %v11366_v53  ;;  %v11367_v21 = vrot.slane %v11015_v28, 7  ;;  %v8883_v36 = vld [vmem:[%s8947_s29 + $0x180] sm:$0xff]  ;;  %v8884_v25 = vld [vmem:[%s8947_s29 + $0x188] sm:$0xff]  ;;  %v8885_v50 = vld [vmem:[%s8947_s29 + $0x190] sm:$0x3]  ;;  %6394 = vst [vmem:[%s11115_s7 + $0xc7] sm:$0xff] %v6346_v46 }
 0x777   : > { %v6354_v32 = vadd.f32 %v8883_v36, %v6258_v54  ;;  %v6355_v39 = vadd.f32 %v8884_v25, %v11158_v9  ;;  %v6356_v63 = vadd.f32 %v8885_v50, %v6259_v4  ;;  %6393 = vst [vmem:[%s11115_s7 + $0xbf] sm:$0xfe] %v6345_v3  ;;  %6395 = vst [vmem:[%s11115_s7 + $0xcf] sm:$0x1] %v6347_v2 }
 0x778   : > { %v6353_v12 = vadd.f32 %v8882_v18, %v11367_v21  ;;  %6396 = vst [vmem:[%s11115_s7 + $0xcf] sm:$0xfe] %v6348_v19  ;;  %6397 = vst [vmem:[%s11115_s7 + $0xd7] sm:$0xff] %v6349_v6 }
 0x779   : > { %6398 = vst [vmem:[%s11115_s7 + $0xdf] sm:$0x1] %v6350_v60  ;;  %6399 = vst [vmem:[%s11115_s7 + $0xdf] sm:$0xfe] %v6351_v57 }
 0x77a   : > { %6400 = vst [vmem:[%s11115_s7 + $0xe7] sm:$0xff] %v6352_v11  ;;  %6401 = vst [vmem:[%s11115_s7 + $0xef] sm:$0x1] %v6353_v12 }
 0x77b   : > { %6402 = vst [vmem:[%s11115_s7 + $0xef] sm:$0xfe] %v6354_v32  ;;  %6403 = vst [vmem:[%s11115_s7 + $0xf7] sm:$0xff] %v6355_v39 }
 0x77c   : > { %6404 = vst [vmem:[%s11115_s7 + $0xff] sm:$0x1] %v6356_v63 }
 0x77d PF: > { %s15_s18 = sadd.s32 1, %s8892_s18  }
 0x77e   : > { %p12_p4 = scmp.ge.s32.totalorder %s15_s18, 4  }
 0x780   :  { %14 = sbr.rel (!%p12_p4) target bundleno = 1 (0x1), region = 86 }

</bundles_post_ra>
